<compile_context>
chip_gen: v7x
topology: tpu7x:2x2x1
jax: 0.10.0
libtpu: 0.0.40
codegen_flags: <defaults>
</compile_context>

<pallas_src>
import functools
import math

import jax
import jax.numpy as jnp
from jax.experimental import pallas as pl
from jax.experimental.pallas import tpu as pltpu

EPS = 1e-5
LANE = 128
TM = 256                      # node-row tile
TK = 512                      # adjacency-column (reduction) tile
_NODE_ALIGN = (TM * TK) // math.gcd(TM, TK)
VMEM_LIMIT = 48 * 1024 * 1024


def _round_up(v, m):
    return ((v + m - 1) // m) * m


# ----------------------------------------------------------------------------
# Kernels
# ----------------------------------------------------------------------------

def _accumulate(adj_ref, xk_ref, acc_ref, deg_ref):
    """Shared reduction step: mean-agg accumulator + fused degree row-sum."""
    k = pl.program_id(1)

    @pl.when(k == 0)
    def _():
        acc_ref[...] = jnp.zeros_like(acc_ref)
        deg_ref[...] = jnp.zeros_like(deg_ref)

    adj = adj_ref[...]                                   # (TM, TK) bf16, 0/1 exact
    acc_ref[...] += jnp.dot(adj, xk_ref[...], preferred_element_type=jnp.float32)
    deg_ref[...] += jnp.sum(adj.astype(jnp.float32), axis=-1, keepdims=True)


def _conv_epilogue(acc_ref, deg_ref, xi_ref, wl_ref, wr_ref, bl_ref):
    """agg = (adj@x)*invdeg ; h = agg@W_l + x@W_r + b_l  (f32)."""
    deg = deg_ref[...]
    invdeg = jnp.where(deg > 0.0, 1.0 / jnp.maximum(deg, 1.0), 0.0)
    agg = (acc_ref[...] * invdeg).astype(jnp.bfloat16)
    h = (jnp.dot(agg, wl_ref[...], preferred_element_type=jnp.float32)
         + jnp.dot(xi_ref[...], wr_ref[...], preferred_element_type=jnp.float32)
         + bl_ref[...])
    return h


def _sage_hidden_kernel(d_valid, adj_ref, xk_ref, xi_ref, wl_ref, wr_ref,
                        bl_ref, gamma_ref, beta_ref, o_ref, acc_ref, deg_ref):
    _accumulate(adj_ref, xk_ref, acc_ref, deg_ref)

    @pl.when(pl.program_id(1) == pl.num_programs(1) - 1)
    def _():
        h = _conv_epilogue(acc_ref, deg_ref, xi_ref, wl_ref, wr_ref, bl_ref)
        # masked LayerNorm over the true (unpadded) feature count, f32 math
        col = jax.lax.broadcasted_iota(jnp.int32, h.shape, 1)
        valid = (col < d_valid).astype(jnp.float32)
        inv_d = 1.0 / float(d_valid)
        mean = jnp.sum(h * valid, axis=-1, keepdims=True) * inv_d
        cent = (h - mean) * valid
        var = jnp.sum(cent * cent, axis=-1, keepdims=True) * inv_d
        hn = cent * jax.lax.rsqrt(var + EPS)
        hn = hn * gamma_ref[...] + beta_ref[...]
        # ReLU (dropout is identity at inference); padded cols stay exactly 0
        o_ref[...] = jnp.maximum(hn, 0.0).astype(o_ref.dtype)


def _sage_final_kernel(d_valid, adj_ref, xk_ref, xi_ref, wl_ref, wr_ref,
                       bl_ref, o_ref, acc_ref, deg_ref):
    _accumulate(adj_ref, xk_ref, acc_ref, deg_ref)

    @pl.when(pl.program_id(1) == pl.num_programs(1) - 1)
    def _():
        h = _conv_epilogue(acc_ref, deg_ref, xi_ref, wl_ref, wr_ref, bl_ref)
        # masked log_softmax over the true feature count, f32 math
        col = jax.lax.broadcasted_iota(jnp.int32, h.shape, 1)
        valid = col < d_valid
        hm = jnp.where(valid, h, -1e30)
        m = jnp.max(hm, axis=-1, keepdims=True)
        ex = jnp.where(valid, jnp.exp(hm - m), 0.0)
        lse = m + jnp.log(jnp.sum(ex, axis=-1, keepdims=True))
        o_ref[...] = hm - lse


# ----------------------------------------------------------------------------
# Layer wrapper
# ----------------------------------------------------------------------------

def _sage_layer(adj, x, wl, wr, bl, gamma, beta, *, d_out_valid, final):
    n_pad = adj.shape[0]
    f_in = x.shape[1]
    f_out = wl.shape[1]
    grid = (n_pad // TM, n_pad // TK)

    kernel = functools.partial(
        _sage_final_kernel if final else _sage_hidden_kernel, d_out_valid)

    in_specs = [
        pl.BlockSpec((TM, TK), lambda i, k: (i, k)),       # adj tile
        pl.BlockSpec((TK, f_in), lambda i, k: (k, 0)),     # x K-slice (aggregation)
        pl.BlockSpec((TM, f_in), lambda i, k: (i, 0)),     # x row tile (lin_r)
        pl.BlockSpec((f_in, f_out), lambda i, k: (0, 0)),  # W_l
        pl.BlockSpec((f_in, f_out), lambda i, k: (0, 0)),  # W_r
        pl.BlockSpec((1, f_out), lambda i, k: (0, 0)),     # b_l
    ]
    args = [adj, x, x, wl, wr, bl]
    if not final:
        in_specs += [pl.BlockSpec((1, f_out), lambda i, k: (0, 0)),   # gamma
                     pl.BlockSpec((1, f_out), lambda i, k: (0, 0))]   # beta
        args += [gamma, beta]

    out_dtype = jnp.float32 if final else jnp.bfloat16
    return pl.pallas_call(
        kernel,
        out_shape=jax.ShapeDtypeStruct((n_pad, f_out), out_dtype),
        grid_spec=pltpu.PrefetchScalarGridSpec(
            num_scalar_prefetch=0,
            grid=grid,
            in_specs=in_specs,
            out_specs=pl.BlockSpec((TM, f_out), lambda i, k: (i, 0)),
            scratch_shapes=[pltpu.VMEM((TM, f_in), jnp.float32),   # agg accumulator
                            pltpu.VMEM((TM, 1), jnp.float32)]),    # degree accumulator
        compiler_params=pltpu.CompilerParams(
            dimension_semantics=("parallel", "arbitrary"),
            vmem_limit_bytes=VMEM_LIMIT),
    )(*args)


# ----------------------------------------------------------------------------
# Parameters / forward
# ----------------------------------------------------------------------------

def init_sage_params(key, in_channels, hidden_channels, out_channels,
                     num_layers):
    """Deterministic glorot-ish init mirroring module shapes, padded to 128 lanes."""
    dims = ([in_channels]
            + [hidden_channels] * (num_layers - 1)
            + [out_channels])
    params = []
    for i in range(num_layers):
        d_in, d_out = dims[i], dims[i + 1]
        p_in, p_out = _round_up(d_in, LANE), _round_up(d_out, LANE)
        key, k1, k2 = jax.random.split(key, 3)
        scale = 1.0 / jnp.sqrt(jnp.float32(d_in))
        wl = jax.random.uniform(k1, (d_in, d_out), jnp.float32, -scale, scale)
        wr = jax.random.uniform(k2, (d_in, d_out), jnp.float32, -scale, scale)
        # zero-padded so padded feature columns/rows stay exactly 0 end-to-end
        wl_p = jnp.zeros((p_in, p_out), jnp.bfloat16).at[:d_in, :d_out].set(
            wl.astype(jnp.bfloat16))
        wr_p = jnp.zeros((p_in, p_out), jnp.bfloat16).at[:d_in, :d_out].set(
            wr.astype(jnp.bfloat16))
        bl_p = jnp.zeros((1, p_out), jnp.float32)
        gamma_p = jnp.zeros((1, p_out), jnp.float32).at[:, :d_out].set(1.0)
        beta_p = jnp.zeros((1, p_out), jnp.float32)
        params.append(dict(wl=wl_p, wr=wr_p, bl=bl_p, gamma=gamma_p,
                           beta=beta_p, d_in=d_in, d_out=d_out))
    return params


def sage_forward(x, adj, params):
    """Eval-mode SAGE.forward (layer_norm_first=False, use_ln=True)."""
    n, f_in = x.shape
    n_pad = _round_up(n, _NODE_ALIGN)
    f_in_pad = _round_up(f_in, LANE)

    # adj is 0/1 -> exact in bf16; halves the dominant N^2 HBM traffic.
    adj_p = jnp.zeros((n_pad, n_pad), jnp.bfloat16).at[:n, :n].set(
        adj.astype(jnp.bfloat16))
    h = jnp.zeros((n_pad, f_in_pad), jnp.bfloat16).at[:n, :f_in].set(
        x.astype(jnp.bfloat16))

    for p in params[:-1]:
        h = _sage_layer(adj_p, h, p["wl"], p["wr"], p["bl"], p["gamma"],
                        p["beta"], d_out_valid=p["d_out"], final=False)
    p = params[-1]
    out = _sage_layer(adj_p, h, p["wl"], p["wr"], p["bl"], None, None,
                      d_out_valid=p["d_out"], final=True)
    return out[:n, :p["d_out"]]


if __name__ == "__main__":
    key = jax.random.PRNGKey(0)
    k_x, k_adj, k_par = jax.random.split(key, 3)

    N = 16              # number of graph nodes
    in_channels = 8
    hidden_channels = 32
    out_channels = 8
    num_layers = 3

    x = jax.random.normal(k_x, (N, in_channels), jnp.float32)
    adj = jax.random.bernoulli(k_adj, 0.3, (N, N)).astype(jnp.float32)

    params = init_sage_params(k_par, in_channels, hidden_channels,
                              out_channels, num_layers)

    out = sage_forward(x, adj, params)
    out = jax.block_until_ready(out)

    assert out.shape == (N, out_channels)
    # log_softmax rows should sum to ~1 after exp
    assert jnp.allclose(jnp.sum(jnp.exp(out), axis=-1), 1.0, atol=1e-4)
    assert jnp.all(jnp.isfinite(out))
    print("KERNEL_OK")
</pallas_src>

<mosaic_0001>
module attributes {stable_mosaic.version = 11 : i64} {
  func.func @_sage_hidden_kernel(%arg0: i32, %arg1: i32, %arg2: memref<256x512xbf16, #tpu.memory_space<vmem>>, %arg3: memref<512x128xbf16, #tpu.memory_space<vmem>>, %arg4: memref<256x128xbf16, #tpu.memory_space<vmem>>, %arg5: memref<128x128xbf16, #tpu.memory_space<vmem>>, %arg6: memref<128x128xbf16, #tpu.memory_space<vmem>>, %arg7: memref<1x128xf32, #tpu.memory_space<vmem>>, %arg8: memref<1x128xf32, #tpu.memory_space<vmem>>, %arg9: memref<1x128xf32, #tpu.memory_space<vmem>>, %arg10: memref<256x128xbf16, #tpu.memory_space<vmem>>, %arg11: memref<256x128xf32, #tpu.memory_space<vmem>>, %arg12: memref<256x1xf32, #tpu.memory_space<vmem>>) attributes {dimension_semantics = [#tpu.dimension_semantics<parallel>, #tpu.dimension_semantics<arbitrary>], iteration_bounds = array<i64: 2, 1>, scalar_prefetch = 0 : i64, scratch_operands = 2 : i64, tpu.core_type = #tpu.core_type<tc>, window_params = [{transform_indices = @transform_0, window_bounds = array<i64: 256, 512>}, {transform_indices = @transform_1, window_bounds = array<i64: 512, 128>}, {transform_indices = @transform_2, window_bounds = array<i64: 256, 128>}, {pipeline_mode = #tpu.pipeline_mode<synchronous>, transform_indices = @transform_3, window_bounds = array<i64: 128, 128>}, {pipeline_mode = #tpu.pipeline_mode<synchronous>, transform_indices = @transform_4, window_bounds = array<i64: 128, 128>}, {pipeline_mode = #tpu.pipeline_mode<synchronous>, transform_indices = @transform_5, window_bounds = array<i64: 1, 128>}, {pipeline_mode = #tpu.pipeline_mode<synchronous>, transform_indices = @transform_6, window_bounds = array<i64: 1, 128>}, {pipeline_mode = #tpu.pipeline_mode<synchronous>, transform_indices = @transform_7, window_bounds = array<i64: 1, 128>}, {transform_indices = @transform_8, window_bounds = array<i64: 256, 128>}]} {
    %c0_i32 = arith.constant 0 : i32
    %0 = arith.cmpi eq, %arg1, %c0_i32 : i32
    %1 = arith.extui %0 : i1 to i32
    %c0_i32_0 = arith.constant 0 : i32
    %2 = arith.cmpi ne, %1, %c0_i32_0 : i32
    scf.if %2 {
      %cst_15 = arith.constant 0.000000e+00 : f32
      %18 = vector.broadcast %cst_15 : f32 to vector<256x128xf32>
      %c0_16 = arith.constant 0 : index
      %c0_17 = arith.constant 0 : index
      %19 = vector.load %arg11[%c0_16, %c0_17] : memref<256x128xf32, #tpu.memory_space<vmem>>, vector<256x128xf32>
      tpu.vector_store %arg11[%c0_16, %c0_17], %18 {strides = array<i32>} : memref<256x128xf32, #tpu.memory_space<vmem>>, vector<256x128xf32>,
      %cst_18 = arith.constant 0.000000e+00 : f32
      %20 = vector.broadcast %cst_18 : f32 to vector<256x1xf32>
      %c0_19 = arith.constant 0 : index
      %c0_20 = arith.constant 0 : index
      %21 = vector.load %arg12[%c0_19, %c0_20] : memref<256x1xf32, #tpu.memory_space<vmem>>, vector<256x1xf32>
      tpu.vector_store %arg12[%c0_19, %c0_20], %20 {strides = array<i32>} : memref<256x1xf32, #tpu.memory_space<vmem>>, vector<256x1xf32>,
    } else {
    }
    %c0 = arith.constant 0 : index
    %c0_1 = arith.constant 0 : index
    %3 = vector.load %arg2[%c0, %c0_1] : memref<256x512xbf16, #tpu.memory_space<vmem>>, vector<256x512xbf16>
    %c0_2 = arith.constant 0 : index
    %c0_3 = arith.constant 0 : index
    %4 = vector.load %arg11[%c0_2, %c0_3] : memref<256x128xf32, #tpu.memory_space<vmem>>, vector<256x128xf32>
    %c0_4 = arith.constant 0 : index
    %c0_5 = arith.constant 0 : index
    %5 = vector.load %arg3[%c0_4, %c0_5] : memref<512x128xbf16, #tpu.memory_space<vmem>>, vector<512x128xbf16>
    %cst = arith.constant dense<0.000000e+00> : vector<256x128xf32>
    %6 = tpu.matmul %3, %5, %cst {dimension_numbers = #tpu.dot_dimension_numbers<[1], [0], [0], [1], [0, 0, 1, 1], [], []>} : vector<256x512xbf16>, vector<512x128xbf16>, vector<256x128xf32> -> vector<256x128xf32>
    %7 = arith.addf %4, %6 : vector<256x128xf32>
    %c0_6 = arith.constant 0 : index
    %c0_7 = arith.constant 0 : index
    %8 = vector.load %arg11[%c0_6, %c0_7] : memref<256x128xf32, #tpu.memory_space<vmem>>, vector<256x128xf32>
    tpu.vector_store %arg11[%c0_6, %c0_7], %7 {strides = array<i32>} : memref<256x128xf32, #tpu.memory_space<vmem>>, vector<256x128xf32>,
    %c0_8 = arith.constant 0 : index
    %c0_9 = arith.constant 0 : index
    %9 = vector.load %arg12[%c0_8, %c0_9] : memref<256x1xf32, #tpu.memory_space<vmem>>, vector<256x1xf32>
    %10 = arith.extf %3 : vector<256x512xbf16> to vector<256x512xf32>
    %cst_10 = arith.constant dense<0.000000e+00> : vector<256xf32>
    %11 = vector.multi_reduction <add>, %10, %cst_10 [1] : vector<256x512xf32> to vector<256xf32>
    %12 = vector.shape_cast %11 : vector<256xf32> to vector<256x1xf32>
    %13 = arith.addf %9, %12 : vector<256x1xf32>
    %c0_11 = arith.constant 0 : index
    %c0_12 = arith.constant 0 : index
    %14 = vector.load %arg12[%c0_11, %c0_12] : memref<256x1xf32, #tpu.memory_space<vmem>>, vector<256x1xf32>
    tpu.vector_store %arg12[%c0_11, %c0_12], %13 {strides = array<i32>} : memref<256x1xf32, #tpu.memory_space<vmem>>, vector<256x1xf32>,
    %c0_i32_13 = arith.constant 0 : i32
    %15 = arith.cmpi eq, %arg1, %c0_i32_13 : i32
    %16 = arith.extui %15 : i1 to i32
    %c0_i32_14 = arith.constant 0 : i32
    %17 = arith.cmpi ne, %16, %c0_i32_14 : i32
    scf.if %17 {
      %c0_15 = arith.constant 0 : index
      %c0_16 = arith.constant 0 : index
      %18 = vector.load %arg12[%c0_15, %c0_16] : memref<256x1xf32, #tpu.memory_space<vmem>>, vector<256x1xf32>
      %cst_17 = arith.constant 0.000000e+00 : f32
      %19 = vector.broadcast %cst_17 : f32 to vector<256x1xf32>
      %20 = arith.cmpf ogt, %18, %19 : vector<256x1xf32>
      %cst_18 = arith.constant 1.000000e+00 : f32
      %21 = vector.broadcast %cst_18 : f32 to vector<256x1xf32>
      %22 = arith.maximumf %18, %21 : vector<256x1xf32>
      %cst_19 = arith.constant 1.000000e+00 : f32
      %23 = vector.broadcast %cst_19 : f32 to vector<256x1xf32>
      %24 = arith.divf %23, %22 : vector<256x1xf32>
      %cst_20 = arith.constant 0.000000e+00 : f32
      %25 = vector.broadcast %cst_20 : f32 to vector<256x1xf32>
      %26 = arith.select %20, %24, %25 : vector<256x1xi1>, vector<256x1xf32>
      %c0_21 = arith.constant 0 : index
      %c0_22 = arith.constant 0 : index
      %27 = vector.load %arg11[%c0_21, %c0_22] : memref<256x128xf32, #tpu.memory_space<vmem>>, vector<256x128xf32>
      %28 = vector.broadcast %26 : vector<256x1xf32> to vector<256x128xf32>
      %29 = arith.mulf %27, %28 : vector<256x128xf32>
      %30 = arith.truncf %29 : vector<256x128xf32> to vector<256x128xbf16>
      %c0_23 = arith.constant 0 : index
      %c0_24 = arith.constant 0 : index
      %31 = vector.load %arg5[%c0_23, %c0_24] : memref<128x128xbf16, #tpu.memory_space<vmem>>, vector<128x128xbf16>
      %cst_25 = arith.constant dense<0.000000e+00> : vector<256x128xf32>
      %32 = tpu.matmul %30, %31, %cst_25 {dimension_numbers = #tpu.dot_dimension_numbers<[1], [0], [0], [1], [0, 0, 1, 1], [], []>} : vector<256x128xbf16>, vector<128x128xbf16>, vector<256x128xf32> -> vector<256x128xf32>
      %c0_26 = arith.constant 0 : index
      %c0_27 = arith.constant 0 : index
      %33 = vector.load %arg4[%c0_26, %c0_27] : memref<256x128xbf16, #tpu.memory_space<vmem>>, vector<256x128xbf16>
      %c0_28 = arith.constant 0 : index
      %c0_29 = arith.constant 0 : index
      %34 = vector.load %arg6[%c0_28, %c0_29] : memref<128x128xbf16, #tpu.memory_space<vmem>>, vector<128x128xbf16>
      %cst_30 = arith.constant dense<0.000000e+00> : vector<256x128xf32>
      %35 = tpu.matmul %33, %34, %cst_30 {dimension_numbers = #tpu.dot_dimension_numbers<[1], [0], [0], [1], [0, 0, 1, 1], [], []>} : vector<256x128xbf16>, vector<128x128xbf16>, vector<256x128xf32> -> vector<256x128xf32>
      %36 = arith.addf %32, %35 : vector<256x128xf32>
      %c0_31 = arith.constant 0 : index
      %c0_32 = arith.constant 0 : index
      %37 = vector.load %arg7[%c0_31, %c0_32] : memref<1x128xf32, #tpu.memory_space<vmem>>, vector<1x128xf32>
      %38 = vector.broadcast %37 : vector<1x128xf32> to vector<256x128xf32>
      %39 = arith.addf %36, %38 : vector<256x128xf32>
      %40 = tpu.iota {dimensions = array<i32: 1>} : vector<256x128xi32>
      %c32_i32 = arith.constant 32 : i32
      %41 = vector.broadcast %c32_i32 : i32 to vector<256x128xi32>
      %42 = arith.cmpi slt, %40, %41 : vector<256x128xi32>
      %43 = arith.extui %42 : vector<256x128xi1> to vector<256x128xi32>
      %44 = arith.sitofp %43 : vector<256x128xi32> to vector<256x128xf32>
      %45 = arith.mulf %39, %44 : vector<256x128xf32>
      %cst_33 = arith.constant dense<0.000000e+00> : vector<256xf32>
      %46 = vector.multi_reduction <add>, %45, %cst_33 [1] : vector<256x128xf32> to vector<256xf32>
      %47 = vector.shape_cast %46 : vector<256xf32> to vector<256x1xf32>
      %cst_34 = arith.constant 3.125000e-02 : f32
      %48 = vector.broadcast %cst_34 : f32 to vector<256x1xf32>
      %49 = arith.mulf %47, %48 : vector<256x1xf32>
      %50 = vector.broadcast %49 : vector<256x1xf32> to vector<256x128xf32>
      %51 = arith.subf %39, %50 : vector<256x128xf32>
      %52 = arith.mulf %51, %44 : vector<256x128xf32>
      %53 = arith.mulf %52, %52 : vector<256x128xf32>
      %cst_35 = arith.constant dense<0.000000e+00> : vector<256xf32>
      %54 = vector.multi_reduction <add>, %53, %cst_35 [1] : vector<256x128xf32> to vector<256xf32>
      %55 = vector.shape_cast %54 : vector<256xf32> to vector<256x1xf32>
      %cst_36 = arith.constant 3.125000e-02 : f32
      %56 = vector.broadcast %cst_36 : f32 to vector<256x1xf32>
      %57 = arith.mulf %55, %56 : vector<256x1xf32>
      %cst_37 = arith.constant 9.99999974E-6 : f32
      %58 = vector.broadcast %cst_37 : f32 to vector<256x1xf32>
      %59 = arith.addf %57, %58 : vector<256x1xf32>
      %60 = math.rsqrt %59 : vector<256x1xf32>
      %61 = vector.broadcast %60 : vector<256x1xf32> to vector<256x128xf32>
      %62 = arith.mulf %52, %61 : vector<256x128xf32>
      %c0_38 = arith.constant 0 : index
      %c0_39 = arith.constant 0 : index
      %63 = vector.load %arg8[%c0_38, %c0_39] : memref<1x128xf32, #tpu.memory_space<vmem>>, vector<1x128xf32>
      %64 = vector.broadcast %63 : vector<1x128xf32> to vector<256x128xf32>
      %65 = arith.mulf %62, %64 : vector<256x128xf32>
      %c0_40 = arith.constant 0 : index
      %c0_41 = arith.constant 0 : index
      %66 = vector.load %arg9[%c0_40, %c0_41] : memref<1x128xf32, #tpu.memory_space<vmem>>, vector<1x128xf32>
      %67 = vector.broadcast %66 : vector<1x128xf32> to vector<256x128xf32>
      %68 = arith.addf %65, %67 : vector<256x128xf32>
      %cst_42 = arith.constant 0.000000e+00 : f32
      %69 = vector.broadcast %cst_42 : f32 to vector<256x128xf32>
      %70 = arith.maximumf %68, %69 : vector<256x128xf32>
      %71 = arith.truncf %70 : vector<256x128xf32> to vector<256x128xbf16>
      %c0_43 = arith.constant 0 : index
      %c0_44 = arith.constant 0 : index
      %72 = vector.load %arg10[%c0_43, %c0_44] : memref<256x128xbf16, #tpu.memory_space<vmem>>, vector<256x128xbf16>
      tpu.vector_store %arg10[%c0_43, %c0_44], %71 {strides = array<i32>} : memref<256x128xbf16, #tpu.memory_space<vmem>>, vector<256x128xbf16>,
    } else {
    }
    return
  }
  func.func @transform_0(%arg0: i32, %arg1: i32) -> (i32, i32) {
    %c0_i32 = arith.constant 0 : i32
    return %arg0, %arg1 : i32, i32
  }
  func.func @transform_1(%arg0: i32, %arg1: i32) -> (i32, i32) {
    %c0_i32 = arith.constant 0 : i32
    %c0_i32_0 = arith.constant 0 : i32
    return %arg1, %c0_i32 : i32, i32
  }
  func.func @transform_2(%arg0: i32, %arg1: i32) -> (i32, i32) {
    %c0_i32 = arith.constant 0 : i32
    %c0_i32_0 = arith.constant 0 : i32
    return %arg0, %c0_i32 : i32, i32
  }
  func.func @transform_3(%arg0: i32, %arg1: i32) -> (i32, i32) {
    %c0_i32 = arith.constant 0 : i32
    %c0_i32_0 = arith.constant 0 : i32
    %c0_i32_1 = arith.constant 0 : i32
    return %c0_i32, %c0_i32_0 : i32, i32
  }
  func.func @transform_4(%arg0: i32, %arg1: i32) -> (i32, i32) {
    %c0_i32 = arith.constant 0 : i32
    %c0_i32_0 = arith.constant 0 : i32
    %c0_i32_1 = arith.constant 0 : i32
    return %c0_i32, %c0_i32_0 : i32, i32
  }
  func.func @transform_5(%arg0: i32, %arg1: i32) -> (i32, i32) {
    %c0_i32 = arith.constant 0 : i32
    %c0_i32_0 = arith.constant 0 : i32
    %c0_i32_1 = arith.constant 0 : i32
    return %c0_i32, %c0_i32_0 : i32, i32
  }
  func.func @transform_6(%arg0: i32, %arg1: i32) -> (i32, i32) {
    %c0_i32 = arith.constant 0 : i32
    %c0_i32_0 = arith.constant 0 : i32
    %c0_i32_1 = arith.constant 0 : i32
    return %c0_i32, %c0_i32_0 : i32, i32
  }
  func.func @transform_7(%arg0: i32, %arg1: i32) -> (i32, i32) {
    %c0_i32 = arith.constant 0 : i32
    %c0_i32_0 = arith.constant 0 : i32
    %c0_i32_1 = arith.constant 0 : i32
    return %c0_i32, %c0_i32_0 : i32, i32
  }
  func.func @transform_8(%arg0: i32, %arg1: i32) -> (i32, i32) {
    %c0_i32 = arith.constant 0 : i32
    %c0_i32_0 = arith.constant 0 : i32
    return %arg0, %c0_i32 : i32, i32
  }
}

</mosaic_0001>

<bundles_post_ra>
// kernel: tpu_custom_call.1
= control target key start
LH: loop header
LB: loop body
LE: loop exit
PB: predicated region body
PF: predicated region fallthrough
CT: control target
= control target key end

     0   :  { %s6949_s0 = inlined_call_operand.hbm [shape: bf16[512,512], index: 0, kind: input, shape index: {}]   ;;  %s6950_s1 = inlined_call_operand.hbm [shape: bf16[512,128], index: 1, kind: input, shape index: {}]   ;;  %s6951_s2 = inlined_call_operand.hbm [shape: bf16[512,128], index: 2, kind: input, shape index: {}]   ;;  %s6952_s3 = inlined_call_operand.hbm [shape: bf16[128,128], index: 3, kind: input, shape index: {}]   ;;  %s6953_s4 = inlined_call_operand.hbm [shape: bf16[128,128], index: 4, kind: input, shape index: {}]   ;;  %s6954_s5 = inlined_call_operand.vmem [shape: f32[1,128], index: 5, kind: input, shape index: {}]   ;;  %s6955_s6 = inlined_call_operand.vmem [shape: f32[1,128], index: 6, kind: input, shape index: {}]   ;;  %s6956_s7 = inlined_call_operand.vmem [shape: f32[1,128], index: 7, kind: input, shape index: {}]   ;;  %s6957_s8 = inlined_call_operand.hbm [shape: bf16[512,128], index: 8, kind: output, shape index: {}]  }
   0x1   :  { %6998 = sst [smem:[#allocation36_spill]] %s6949_s0 }
   0x2   :  { %6999 = sst [smem:[#allocation37_spill]] %s6950_s1 }
   0x3   :  { %7000 = sst [smem:[#allocation38_spill]] %s6956_s7 }
   0x4   :  { %7001 = sst [smem:[#allocation39_spill]] %s6957_s8 }
   0x5   :  { %13 = vsyncpa [#allocation5], 0 }
   0x6   :  { %15 = vsyncpa [#allocation5 + $0x1], 0 }
   0x7   :  { %16 = vsyncpa [#allocation8], 0 }
   0x8   :  { %17 = vsyncpa [#allocation12], 0 }
   0x9   :  { %18 = vsyncpa [#allocation6], 0 }
   0xa   :  { %20 = vsyncpa [#allocation6 + $0x1], 0  ;;  %s5224_s27 = smov 0   ;;  %s5226_s28 = smov 0  }
   0xb   :  { %s5228_s29 = smov 0   ;;  %s5230_s30 = smov 0  }
   0xc   :  { %s5232_s9 = smov 0   ;;  %s5234_s10 = smov 0  }
   0xd LB: > { %7002 = sst [smem:[#allocation20_spill]] %s5143_s27  ;;  %s5255_s11 = sadd.s32 4294967295, %s5163_s10   ;;  %s5163_s10 = sphi %s5234_s10, %s26_s10   ;;  %s5159_s9 = sphi %s5232_s9, %s7082_s9   ;;  %s5155_s30 = sphi %s5230_s30, %s7081_s30   ;;  %s5151_s29 = sphi %s5228_s29, %s7080_s29   ;;  %s5147_s28 = sphi %s5226_s28, %s7079_s28   ;;  %s5143_s27 = sphi %s5224_s27, %s7078_s27  }
   0xe   : > { %7003 = sst [smem:[#allocation21_spill]] %s5155_s30  ;;  %s3841_s12 = sadd.s32 4294967294, %s5163_s10  }
   0xf   : > { %7004 = sst [smem:[#allocation22_spill]] %s5163_s10  ;;  %p60_p0 = scmp.ne.s32.totalorder %s5147_s28, %s5143_s27 }
  0x10   : > { %p6958_p1 = scmp.eq.s32.totalorder %s5255_s11, 0  ;;  %p247_p3 = scmp.eq.s32.totalorder %s3841_s12, 1 }
  0x11   : > { %p3842_p5 = scmp.ge.s32.totalorder %s5163_s10, 1  ;;  %p254_p7 = scmp.lt.s32.totalorder %s5163_s10, 3 }
  0x12   : > { %p5264_p4 = por %p6958_p1, %p60_p0  ;;  %p5269_p6 = por %p247_p3, %p60_p0 }
  0x13   : > { %p5274_p8 = pnand %p3842_p5, %p254_p7  ;;  %s5165_s16 = smov [#allocation7]  }
  0x14   : > { %s7005_s13 = scalar_select %p5264_p4, 1, 0 }
  0x15   : > { %s7006_s14 = scalar_select %p5269_p6, 1, 0 }
  0x16   : > { %s7008_s15 = scalar_select %p5274_p8, 1, 0 }
  0x17   : > { %7007 = sst [smem:[#allocation23_spill]] %s7006_s14  ;;  %s269_s17 = sshll.u32 %s5165_s16, 4  ;;  %s270_s17 = int_to_ptr.vmem [resolvable:$true] %s269_s17 }
  0x18   : > { %p4595_p9 = pneg %p5274_p8  ;;  %s38_s19 = sadd.s32 1, %s5159_s9 }
  0x19   : > { %s7010_s1 = sld [smem:[#allocation37_spill]] }
  0x1a   : > { %p5283_p11 = pnand %p4595_p9, %p6958_p1 }
  0x1c   : > { %s7009_s18 = scalar_select %p5283_p11, 1, 0 }
  0x1d   : > { %p5296_p13 = pneg %p5283_p11 }
  0x1f   : > { %s4921_s22 = scalar_lea.hbm %s7010_s1, 4096 }
  0x20   : > { %p4922_p12 = scmp.ne.s32.totalorder %s7010_s1, %s4921_s22  ;;  %p4928_p5 = scmp.lt.u32.totalorder %s4921_s22, %s7010_s1 }
  0x22   : > { %p4924_p0 = pnand %p5296_p13, %p4922_p12 }
  0x24   : > { %p4925_p3 = pneg %p4924_p0 }
  0x26   : > { %p4930_p7 = pnand %p4928_p5, %p4925_p3 }
  0x28   : > { %4933 = shalt.err (!%p4930_p7)
}
  0x29   : > { %s4934_s16 = scalar_lea.vmem %s270_s17, 4096  ;;  %p4942_p2 = scmp.lt.s32.totalorder %s270_s17, %s270_s17 }
  0x2a   : > { %p4935_p9 = scmp.ne.s32.totalorder %s270_s17, %s4934_s16  ;;  %p4943_p6 = scmp.lt.s32.totalorder %s4934_s16, %s4934_s16 }
  0x2c   : > { %p4937_p10 = pnand %p4935_p9, %p5296_p13  ;;  %p4944_p4 = por %p4943_p6, %p4942_p2 }
  0x2e   : > { %p4938_p1 = pneg %p4937_p10 }
  0x30   : > { %p4945_p8 = pnand %p4944_p4, %p4938_p1 }
  0x32   : > { %4948 = shalt.err (!%p4945_p8)
}
  0x33   : > { %s6961_s20 = smov 64   ;;  %s6963_s21 = smov 4  }
  0x34   : > { %4598 = dma.hbm_to_vmem [thread:$0]  (!%p5283_p11), %s7010_s1, 4096, %s270_s17, [#allocation8], %s6961_s20, %s6961_s20, %s6963_s21  }
  0x35   : > { %p40_p1 = scmp.ge.s32.totalorder %s38_s19, 2  ;;  %s47_s24 = sadd.s32 1, %s5151_s29 }
  0x36   : > { %p54_p2 = scmp.ne.s32.totalorder %s5151_s29, %s5147_s28  ;;  %p55_p4 = scmp.eq.s32.totalorder %s5163_s10, 0 }
  0x37   : > { %s7084_s19 = smov (%p40_p1, %s38_s19), 0  ;;  %p7014_p8 = scmp.eq.s32.totalorder %s5255_s11, 1 }
  0x38   : > { %7012 = sst [smem:[#allocation24_spill]] %s7084_s19  ;;  %p5321_p6 = por %p55_p4, %p54_p2 }
  0x39   : > { %p5327_p10 = por %p7014_p8, %p54_p2  ;;  %s42_s16 = ssub.s32 %s5159_s9, %s7084_s19 }
  0x3a   : > { %p4619_p12 = scmp.lt.s32.totalorder %s5163_s10, 2  ;;  %p45_p0 = scmp.eq.s32.totalorder %s42_s16, 0 }
  0x3b   : > { %s7015_s12 = scalar_select %p5327_p10, 1, 0 }
  0x3c   : > { %s318_s17 = sand.u32 1, %s5163_s10   ;;  %s320_s22 = sand.u32 1, %s5151_s29  }
  0x3d   : > { %7016 = sst [smem:[#allocation25_spill]] %s7015_s12  ;;  %s3847_s20 = sshll.u32 %s320_s22, 9 }
  0x3e   : > { %s5337_s23 = scalar_select %p45_p0, %s5151_s29, %s47_s24  }
  0x3f   : > { %s4031_s21 = sshll.u32 %s5159_s9, 13  ;;  %s7018_s0 = sld [smem:[#allocation36_spill]] }
  0x40   : > { %7017 = sst [smem:[#allocation26_spill]] %s5337_s23  ;;  %s322_s8 = scalar_lea.vmem [#allocation4], %s3847_s20 }
  0x41   : > { %s332_s19 = sshll.u32 %s322_s8, 4  ;;  %p5349_p3 = pnand %p4619_p12, %p5321_p6  ;;  %s5353_s19 = int_to_ptr.vmem [resolvable:$true] %s332_s19 }
  0x42   : > { %s5355_s24 = scalar_lea.sflag [#allocation5], %s318_s17 }
  0x43   : > { %s7019_s16 = scalar_select %p5349_p3, 1, 0 }
  0x44   : > { %p6976_p7 = pneg %p5349_p3 }
  0x45   : > { %s5345_s27 = scalar_lea.hbm %s7018_s0, %s4031_s21  ;;  %s4954_s20 = scalar_lea.hbm %s7018_s0, 16384 }
  0x46   : > { %s4949_s1 = scalar_lea.hbm %s5345_s27, 8192  ;;  %p4955_p2 = scmp.lt.u32.totalorder %s5345_s27, %s7018_s0 }
  0x47   : > { %p4950_p5 = scmp.ne.s32.totalorder %s5345_s27, %s4949_s1  ;;  %p4956_p4 = scmp.lt.u32.totalorder %s4954_s20, %s4949_s1 }
  0x48   : > { %p4958_p8 = scmp.lt.u32.totalorder %s4949_s1, %s5345_s27 }
  0x49   : > { %p4952_p9 = pnand %p6976_p7, %p4950_p5  ;;  %p4957_p6 = por %p4956_p4, %p4955_p2 }
  0x4b   : > { %p4953_p1 = pneg %p4952_p9  ;;  %p4959_p12 = por %p4958_p8, %p4957_p6 }
  0x4d   : > { %p4960_p0 = pnand %p4959_p12, %p4953_p1 }
  0x4f   : > { %4963 = shalt.err (!%p4960_p0)
}
  0x50   : > { %s4964_s17 = scalar_lea.vmem %s5353_s19, 8192  ;;  %s5168_s8 = smov [#allocation4]  }
  0x51   : > { %p4965_p5 = scmp.ne.s32.totalorder %s5353_s19, %s4964_s17  ;;  %s4969_s14 = sshll.u32 %s5168_s8, 4  ;;  %s4970_s14 = int_to_ptr.vmem [resolvable:$false] %s4969_s14 }
  0x52   : > { %s4971_s21 = scalar_lea.vmem %s4970_s14, 16384  ;;  %p4972_p11 = scmp.lt.s32.totalorder %s5353_s19, %s4970_s14 }
  0x53   : > { %p4967_p9 = pnand %p4965_p5, %p6976_p7  ;;  %p4973_p2 = scmp.lt.s32.totalorder %s4971_s21, %s4964_s17 }
  0x55   : > { %p4968_p10 = pneg %p4967_p9  ;;  %p4974_p4 = por %p4973_p2, %p4972_p11 }
  0x57   : > { %p4975_p6 = pnand %p4974_p4, %p4968_p10 }
  0x59   : > { %4978 = shalt.err (!%p4975_p6)
}
  0x5a   : > { %s5169_s1 = smov 256   ;;  %s5170_s20 = smov 16  }
  0x5b   : > { %4608 = dma.hbm_to_vmem [thread:$0]  (!%p5349_p3), %s5345_s27, 8192, %s5353_s19, %s5355_s24, %s5169_s1, %s5169_s1, %s5170_s20  }
  0x5c   : > { %s3851_s26 = sshll.u32 %s320_s22, 7  ;;  %s5171_s8 = smov [#allocation10]  }
  0x5d   : > { %s282_s0 = sshll.u32 %s5171_s8, 4  ;;  %s346_s23 = scalar_lea.vmem [#allocation9], %s3851_s26  ;;  %s283_s0 = int_to_ptr.vmem [resolvable:$true] %s282_s0 }
  0x5e   : > { %s353_s14 = sshll.u32 %s346_s23, 4  ;;  %s4979_s10 = scalar_lea.hbm %s6952_s3, 1024  ;;  %s5412_s14 = int_to_ptr.vmem [resolvable:$true] %s353_s14 }
  0x5f   : > { %p4980_p11 = scmp.ne.s32.totalorder %s6952_s3, %s4979_s10  ;;  %p4986_p8 = scmp.lt.u32.totalorder %s4979_s10, %s6952_s3 }
  0x61   : > { %p4982_p10 = pnand %p4980_p11, %p5296_p13 }
  0x63   : > { %p4983_p1 = pneg %p4982_p10 }
  0x65   : > { %p4988_p12 = pnand %p4986_p8, %p4983_p1 }
  0x67   : > { %4991 = shalt.err (!%p4988_p12)
}
  0x68   : > { %s4992_s19 = scalar_lea.vmem %s283_s0, 1024  ;;  %p5000_p2 = scmp.lt.s32.totalorder %s283_s0, %s283_s0 }
  0x69   : > { %p4993_p0 = scmp.ne.s32.totalorder %s283_s0, %s4992_s19  ;;  %p5001_p4 = scmp.lt.s32.totalorder %s4992_s19, %s4992_s19 }
  0x6b   : > { %p4995_p5 = pnand %p4993_p0, %p5296_p13  ;;  %p5002_p6 = por %p5001_p4, %p5000_p2 }
  0x6d   : > { %p4996_p9 = pneg %p4995_p5 }
  0x6f   : > { %p5003_p7 = pnand %p5002_p6, %p4996_p9 }
  0x71   : > { %5006 = shalt.err (!%p5003_p7)
}
  0x72   : > { %p7020_p11 = scmp.ne.s32.totalorder %s7009_s18, 0  ;;  %s7021_s30 = smov 4  }
  0x73   : > { %s7022_s12 = smov 64   ;;  %s4032_s22 = sshll.u32 %s5159_s9, 11 }
  0x74   : > { %4601 = dma.hbm_to_vmem [thread:$0]  (!%p7020_p11), %s6952_s3, 1024, %s283_s0, [#allocation8], %s7022_s12, %s7022_s12, %s7021_s30  }
  0x75   : > { %s5172_s23 = smov [#allocation11]   ;;  %s5410_s8 = scalar_lea.hbm %s6951_s2, %s4032_s22 }
  0x76   : > { %s295_s1 = sshll.u32 %s5172_s23, 4  ;;  %s5007_s27 = scalar_lea.hbm %s6953_s4, 1024  ;;  %s296_s1 = int_to_ptr.vmem [resolvable:$true] %s295_s1 }
  0x77   : > { %p5008_p7 = scmp.ne.s32.totalorder %s6953_s4, %s5007_s27  ;;  %p5014_p8 = scmp.lt.u32.totalorder %s5007_s27, %s6953_s4 }
  0x79   : > { %p5010_p10 = pnand %p5008_p7, %p5296_p13 }
  0x7b   : > { %p5011_p1 = pneg %p5010_p10 }
  0x7d   : > { %p5016_p12 = pnand %p5014_p8, %p5011_p1 }
  0x7f   : > { %5019 = shalt.err (!%p5016_p12)
}
  0x80   : > { %s5020_s22 = scalar_lea.vmem %s296_s1, 1024  ;;  %p5028_p2 = scmp.lt.s32.totalorder %s296_s1, %s296_s1 }
  0x81   : > { %p5021_p0 = scmp.ne.s32.totalorder %s296_s1, %s5020_s22  ;;  %p5029_p4 = scmp.lt.s32.totalorder %s5020_s22, %s5020_s22 }
  0x83   : > { %p5023_p5 = pnand %p5021_p0, %p5296_p13  ;;  %p5030_p6 = por %p5029_p4, %p5028_p2 }
  0x85   : > { %p5024_p9 = pneg %p5023_p5 }
  0x87   : > { %p5031_p3 = pnand %p5030_p6, %p5024_p9 }
  0x89   : > { %5034 = shalt.err (!%p5031_p3)
}
  0x8a   : > { %4604 = dma.hbm_to_vmem [thread:$0]  (!%p7020_p11), %s6953_s4, 1024, %s296_s1, [#allocation12], %s7022_s12, %s7022_s12, %s7021_s30  }
  0x8b   : > { %s5035_s25 = scalar_lea.hbm %s5410_s8, 2048  ;;  %p7023_p7 = scmp.ne.s32.totalorder %s7019_s16, 0 }
  0x8c   : > { %p5036_p13 = scmp.ne.s32.totalorder %s5410_s8, %s5035_s25  ;;  %s5040_s17 = scalar_lea.hbm %s6951_s2, 4096 }
  0x8d   : > { %p7024_p10 = pneg %p7023_p7  ;;  %p5041_p8 = scmp.lt.u32.totalorder %s5410_s8, %s6951_s2 }
  0x8e   : > { %p5042_p12 = scmp.lt.u32.totalorder %s5040_s17, %s5035_s25  ;;  %p5044_p5 = scmp.lt.u32.totalorder %s5035_s25, %s5410_s8 }
  0x8f   : > { %p5038_p1 = pnand %p5036_p13, %p7024_p10 }
  0x90   : > { %p5043_p0 = por %p5042_p12, %p5041_p8 }
  0x91   : > { %p5039_p3 = pneg %p5038_p1 }
  0x92   : > { %p5045_p9 = por %p5044_p5, %p5043_p0 }
  0x94   : > { %p5046_p2 = pnand %p5045_p9, %p5039_p3 }
  0x96   : > { %5049 = shalt.err (!%p5046_p2)
}
  0x97   : > { %s5050_s1 = scalar_lea.vmem %s5412_s14, 2048  ;;  %p7025_p4 = pmov %p7024_p10 }
  0x98   : > { %p5051_p11 = scmp.ne.s32.totalorder %s5412_s14, %s5050_s1  ;;  %s5173_s19 = smov [#allocation9]  }
  0x99   : > { %s5055_s7 = sshll.u32 %s5173_s19, 4  ;;  %s5056_s7 = int_to_ptr.vmem [resolvable:$false] %s5055_s7 }
  0x9a   : > { %p5053_p6 = pnand %p5051_p11, %p7025_p4  ;;  %s5057_s0 = scalar_lea.vmem %s5056_s7, 4096 }
  0x9b   : > { %p5058_p10 = scmp.lt.s32.totalorder %s5412_s14, %s5056_s7  ;;  %p5059_p1 = scmp.lt.s32.totalorder %s5057_s0, %s5050_s1 }
  0x9c   : > { %p5054_p13 = pneg %p5053_p6 }
  0x9d   : > { %p5060_p8 = por %p5059_p1, %p5058_p10 }
  0x9f   : > { %p5061_p12 = pnand %p5060_p8, %p5054_p13 }
  0xa1   : > { %5064 = shalt.err (!%p5061_p12)
}
  0xa2   : > { %4611 = dma.hbm_to_vmem [thread:$0]  (!%p7023_p7), %s5410_s8, 2048, %s5412_s14, %s5355_s24, %s7022_s12, %s7022_s12, %s7021_s30  }
  0xa3   : > { %p7026_p3 = scmp.ne.s32.totalorder %s7008_s15, 0 }
  0xa5   : > { %365 = sbr.rel (%p7026_p3) target bundleno = 1184 (0x4a0), region = 52 }
  0xac   : > { %s367_s10 = sand.u32 1, %s5255_s11   ;;  %s5466_s22 = sand.u32 1, %s5147_s28  }
  0xad   : > { %s3855_s23 = sshll.u32 %s5466_s22, 9  ;;  %s368_s20 = scalar_lea.sflag [#allocation5], %s367_s10 }
  0xae   : > { %s5469_s16 = scalar_lea.vmem [#allocation4], %s3855_s23  ;;  %p7027_p0 = scmp.ne.s32.totalorder %s7005_s13, 0 }
  0xb0   : > { %5118 = dma.done.wait (%p7027_p0), %s368_s20, 8192  }
  0xb1   : > { %5120 = vsyncadd (%p7027_p0), %s368_s20, 4294959104  ;;  %p7028_p7 = scmp.eq.s32.totalorder %s5255_s11, 0 }
  0xb3   : > { %5122 = dma.done.wait (%p7028_p7), [#allocation8], 4096   ;;  %p7029_p5 = pmov %p7028_p7 }
  0xb4   : > { %s3857_s15 = sshll.u32 %s5466_s22, 7 }
  0xb5   : > { %5124 = vsyncadd (%p7029_p5), [#allocation8], 4294963200  ;;  %s5482_s24 = scalar_lea.vmem [#allocation9], %s3857_s15 }
  0xb6   : > { %5126 = dma.done.wait (%p7027_p0), %s368_s20, 2048  }
  0xb7   : > { %5128 = vsyncadd (%p7027_p0), %s368_s20, 4294965248  ;;  %p7030_p9 = pmov %p7029_p5 }
  0xb8   : > { %p7031_p2 = pmov %p7029_p5 }
  0xb9   : > { %5130 = dma.done.wait (%p7030_p9), [#allocation8], 1024  }
  0xba   : > { %5132 = vsyncadd (%p7031_p2), [#allocation8], 4294966272  ;;  %p7032_p11 = pmov %p7031_p2 }
  0xbb   : > { %p7033_p4 = pmov %p7031_p2 }
  0xbc   : > { %5134 = dma.done.wait (%p7032_p11), [#allocation12], 1024  }
  0xbd   : > { %5136 = vsyncadd (%p7033_p4), [#allocation12], 4294966272  ;;  %v4685_v0 = vld [vmem:[#allocation7 + $0x40] sm:$0xff]   ;;  %v4687_v2 = vld [vmem:[#allocation7 + $0x48] sm:$0xff]   ;;  %vm472_vm0 = vcmask 7168   ;;  %s7066_s25 = sld [smem:[#allocation38_spill]] }
  0xbe   : > { %v4686_v1 = vld [vmem:[#allocation7] sm:$0xff]   ;;  %4529 = vmatprep.subr.bf16.mxu1 %v4685_v0  ;;  %4161 = vmatprep.subr.bf16.mxu0 %v4685_v0  ;;  %v4688_v3 = vld [vmem:[#allocation7 + $0x8] sm:$0xff]   ;;  %v4689_v9 = vld [vmem:[#allocation7 + $0x50] sm:$0xff]   ;;  %s6791_s26 = scalar_lea.vmem [#allocation13], %s3857_s15  ;;  %s7067_s18 = sld [smem:[#allocation21_spill]] }
  0xbf   : > { %4537 = vmatpush3.bf16.msra.mxu1 %v4686_v1  ;;  %4162 = vmatpush3.bf16.msra.mxu0 %v4686_v1  ;;  %v5497_v4 = vld [vmem:[%s5469_s16] sm:$0xff]  ;;  %v5500_v5 = vld [vmem:[%s5469_s16 + $0x8] sm:$0xff]  ;;  %v4690_v11 = vld [vmem:[#allocation7 + $0x10] sm:$0xff]   ;;  %s7068_s17 = sld [smem:[#allocation25_spill]]  ;;  %s3705_s27 = sshll.u32 %s6791_s26, 4  ;;  %s6899_s27 = int_to_ptr.vmem [resolvable:$true] %s3705_s27 }
  0xc0   : > { %4530 = vmatprep.subr.bf16.mxu1 %v4687_v2  ;;  %7034 = vst [vmem:[#allocation27_spill] sm:$0xff] %v5500_v5  ;;  %4163 = vmatprep.subr.bf16.mxu0 %v4687_v2  ;;  %v1595_v6 = vunpack.c.l.bf16 %v5497_v4  ;;  %v1596_v7 = vunpack.c.h.bf16 %v5497_v4  ;;  %v1597_v8 = vunpack.c.l.bf16 %v5500_v5  ;;  %v1598_v10 = vunpack.c.h.bf16 %v5500_v5  ;;  %v5507_v12 = vld [vmem:[%s5469_s16 + $0x10] sm:$0xff]  ;;  %v5510_v14 = vld [vmem:[%s5469_s16 + $0x18] sm:$0xff]  ;;  %v5523_v25 = vld [vmem:[%s5469_s16 + $0x20] sm:$0xff]  ;;  %s7069_s7 = sld [smem:[#allocation39_spill]]  ;;  %s3692_s10 = scalar_lea.sflag [#allocation6], %s5466_s22 }
  0xc1   : > { %7035 = vst [vmem:[#allocation28_spill] sm:$0xff] %v5510_v14  ;;  %v1599_v15 = vunpack.c.l.bf16 %v5507_v12  ;;  %v1600_v16 = vunpack.c.h.bf16 %v5507_v12  ;;  %v3862_v17 = vcombine.high %v5497_v4, %v5507_v12  ;;  %v1601_v19 = vunpack.c.l.bf16 %v5510_v14  ;;  %v4692_v20 = vld [vmem:[#allocation7 + $0x58] sm:$0xff]   ;;  %v5526_v26 = vld [vmem:[%s5469_s16 + $0x28] sm:$0xff]  ;;  %v4694_v33 = vld [vmem:[#allocation7 + $0x60] sm:$0xff]   ;;  %s5065_s23 = scalar_lea.vmem %s6899_s27, 2048  ;;  %s5176_s20 = smov [#allocation13]  }
  0xc2   : > { %v1723_v13 = vadd.f32 %v1596_v7, %v1595_v6  ;;  %v1602_v23 = vunpack.c.h.bf16 %v5510_v14  ;;  %7036 = vst [vmem:[#allocation29_spill] sm:$0xff] %v5526_v26  ;;  %v4693_v27 = vld [vmem:[#allocation7 + $0x18] sm:$0xff]   ;;  %v1603_v28 = vunpack.c.l.bf16 %v5523_v25  ;;  %v1604_v29 = vunpack.c.h.bf16 %v5523_v25  ;;  %v5533_v36 = vld [vmem:[%s5469_s16 + $0x30] sm:$0xff]  ;;  %v4695_v43 = vld [vmem:[#allocation7 + $0x20] sm:$0xff]   ;;  %p5066_p6 = scmp.ne.s32.totalorder %s6899_s27, %s5065_s23 }
  0xc3   : > { %4538 = vmatpush3.bf16.msra.mxu1 %v4688_v3  ;;  %4164 = vmatpush3.bf16.msra.mxu0 %v4688_v3  ;;  %v1728_v24 = vadd.f32 %v1600_v16, %v1599_v15  ;;  %v1605_v30 = vunpack.c.l.bf16 %v5526_v26  ;;  %v1606_v34 = vunpack.c.h.bf16 %v5526_v26  ;;  %v5536_v37 = vld [vmem:[%s5469_s16 + $0x38] sm:$0xff]  ;;  %v1607_v39 = vunpack.c.l.bf16 %v5533_v36  ;;  %v5542_v44 = vld [vmem:[%s5469_s16 + $0x40] sm:$0xff]  ;;  %v5548_v48 = vld [vmem:[%s5469_s16 + $0x48] sm:$0xff] }
  0xc4   : > { %4531 = vmatprep.subr.bf16.mxu1 %v4689_v9  ;;  %4165 = vmatprep.subr.bf16.mxu0 %v4689_v9  ;;  %v1724_v22 = vadd.f32 %v1723_v13, %v1597_v8  ;;  %v1733_v35 = vadd.f32 %v1604_v29, %v1603_v28  ;;  %7037 = vst [vmem:[#allocation30_spill] sm:$0xff] %v5536_v37  ;;  %v1608_v40 = vunpack.c.h.bf16 %v5533_v36  ;;  %v1609_v41 = vunpack.c.l.bf16 %v5536_v37  ;;  %v4696_v52 = vld [vmem:[#allocation7 + $0x68] sm:$0xff]   ;;  %v5557_v58 = vld [vmem:[%s5469_s16 + $0x50] sm:$0xff]  ;;  %v5560_v59 = vld [vmem:[%s5469_s16 + $0x58] sm:$0xff]  ;;  %s4065_s21 = sshll.u32 %s7067_s18, 11 }
  0xc5   : > { %1209 = vmatprep.mubr.bf16.mxu0 %v3862_v17  ;;  %v1729_v32 = vadd.f32 %v1728_v24, %v1601_v19  ;;  %v1610_v46 = vunpack.c.h.bf16 %v5536_v37  ;;  %v1611_v49 = vunpack.c.l.bf16 %v5542_v44  ;;  %v1612_v50 = vunpack.c.h.bf16 %v5542_v44  ;;  %v5564_v61 = vld [vmem:[#allocation7 + $0x28] sm:$0xff]   ;;  %v5571_v6 = vld [vmem:[#allocation7 + $0x70] sm:$0xff]   ;;  %v5583_v13 = vld [vmem:[%s5469_s16 + $0x100] sm:$0xff]  ;;  %p7070_p13 = scmp.ne.s32.totalorder %s7068_s17, 0 }
  0xc6   : > { %v1725_v31 = vadd.f32 %v1724_v22, %v1598_v10  ;;  %v1734_v42 = vadd.f32 %v1733_v35, %v1605_v30  ;;  %v1738_v47 = vadd.f32 %v1608_v40, %v1607_v39  ;;  %v1613_v53 = vunpack.c.l.bf16 %v5548_v48  ;;  %v5577_v10 = vld [vmem:[%s5469_s16 + $0x60] sm:$0xff]  ;;  %v5591_v22 = vld [vmem:[%s5469_s16 + $0x110] sm:$0xff]  ;;  %v5778_v7 = vld [vmem:[%s5469_s16 + $0x108] sm:$0xff]  ;;  %s6897_s0 = scalar_lea.hbm %s7069_s7, %s4065_s21 }
  0xc7   : > { %4539 = vmatpush3.bf16.msra.mxu1 %v4690_v11  ;;  %4166 = vmatpush3.bf16.msra.mxu0 %v4690_v11  ;;  %v1730_v38 = vadd.f32 %v1729_v32, %v1602_v23  ;;  %v1614_v56 = vunpack.c.h.bf16 %v5548_v48  ;;  %v1743_v57 = vadd.f32 %v1612_v50, %v1611_v49  ;;  %v3861_v60 = vcombine.low %v5497_v4, %v5507_v12  ;;  %v5580_v11 = vld [vmem:[%s5469_s16 + $0x68] sm:$0xff]  ;;  %v4699_v24 = vld [vmem:[#allocation7 + $0x30] sm:$0xff]   ;;  %v5685_v49 = vld [vmem:[%s5469_s16 + $0x120] sm:$0xff]  ;;  %p5067_p10 = pnand %p5066_p6, %p7070_p13 }
  0xc8   : > { %4532 = vmatprep.subr.bf16.mxu1 %v4692_v20  ;;  %4167 = vmatprep.subr.bf16.mxu0 %v4692_v20  ;;  %v1735_v51 = vadd.f32 %v1734_v42, %v1606_v34  ;;  %v1739_v55 = vadd.f32 %v1738_v47, %v1609_v41  ;;  %v1615_v62 = vunpack.c.l.bf16 %v5557_v58  ;;  %v1616_v63 = vunpack.c.h.bf16 %v5557_v58  ;;  %v5668_v35 = vld [vmem:[%s5469_s16 + $0x70] sm:$0xff]  ;;  %v5682_v47 = vld [vmem:[%s5469_s16 + $0x88] sm:$0xff]  ;;  %v5753_v30 = vld [vmem:[%s5469_s16 + $0x140] sm:$0xff] }
  0xc9   : > { %1726 = vadd.xlane.f32.xlu0 %v1725_v31  ;;  %v1617_v0 = vunpack.c.l.bf16 %v5560_v59  ;;  %v3866_v1 = vcombine.high %v5523_v25, %v5533_v36  ;;  %v1744_v3 = vadd.f32 %v1743_v57, %v1613_v53  ;;  %v1618_v8 = vunpack.c.h.bf16 %v5560_v59  ;;  %v4700_v31 = vld [vmem:[#allocation7 + $0x78] sm:$0xff]   ;;  %v5690_v53 = vld [vmem:[%s5469_s16 + $0x130] sm:$0xff]  ;;  %v5793_v12 = vld [vmem:[%s5469_s16 + $0x160] sm:$0xff]  ;;  %p5068_p1 = pneg %p5067_p10 }
  0xca   : > { %1736 = vadd.xlane.f32.xlu1 %v1735_v51  ;;  %v1740_v2 = vadd.f32 %v1739_v55, %v1610_v46  ;;  %v1748_v9 = vadd.f32 %v1616_v63, %v1615_v62  ;;  %v1619_v17 = vunpack.c.l.bf16 %v5577_v10  ;;  %v1620_v19 = vunpack.c.h.bf16 %v5577_v10  ;;  %v5679_v46 = vld [vmem:[%s5469_s16 + $0x80] sm:$0xff]  ;;  %v5693_v55 = vld [vmem:[%s5469_s16 + $0x90] sm:$0xff]  ;;  %v4701_v62 = vld [vmem:[#allocation7 + $0x38] sm:$0xff]  }
  0xcb   : > { %4540 = vmatpush3.bf16.msra.mxu1 %v4693_v27  ;;  %4168 = vmatpush3.bf16.msra.mxu0 %v4693_v27  ;;  %v1745_v16 = vadd.f32 %v1744_v3, %v1614_v56  ;;  %v1621_v20 = vunpack.c.l.bf16 %v5580_v11  ;;  %v6979_v23 = vmov 0.0   ;;  %v3894_v28 = vcombine.high %v5583_v13, %v5591_v22  ;;  %v5696_v56 = vld [vmem:[%s5469_s16 + $0x98] sm:$0xff]  ;;  %v5735_v45 = vld [vmem:[%s5469_s16 + $0xd0] sm:$0xff] }
  0xcc   : > { %4533 = vmatprep.subr.bf16.mxu1 %v4694_v33  ;;  %4169 = vmatprep.subr.bf16.mxu0 %v4694_v33  ;;  %473 = vst.msk [vmem:[#allocation3] sm:$0xff] %vm472_vm0, %v6979_v23  ;;  %474 = vst.msk [vmem:[#allocation3 + $0x8] sm:$0xff] %vm472_vm0, %v6979_v23  ;;  %v1749_v27 = vadd.f32 %v1748_v9, %v1617_v0  ;;  %v1622_v32 = vunpack.c.h.bf16 %v5580_v11  ;;  %v1753_v33 = vadd.f32 %v1620_v19, %v1619_v17  ;;  %v4704_v9 = vld [vmem:[#allocation7 + $0xc0] sm:$0xff]  }
  0xcd   : > { %1731 = vadd.xlane.f32.xlu0 %v1730_v38  ;;  %475 = vst.msk [vmem:[#allocation3 + $0x10] sm:$0xff] %vm472_vm0, %v6979_v23  ;;  %476 = vst.msk [vmem:[#allocation3 + $0x18] sm:$0xff] %vm472_vm0, %v6979_v23  ;;  %v3893_v34 = vcombine.low %v5583_v13, %v5591_v22  ;;  %v5671_v38 = vld [vmem:[%s5469_s16 + $0x78] sm:$0xff]  ;;  %v1659_v39 = vunpack.c.l.bf16 %v5583_v13  ;;  %1273 = vmatprep.mubr.bf16.mxu1 %v3894_v28  ;;  %v1623_v41 = vunpack.c.l.bf16 %v5668_v35  ;;  %v1624_v42 = vunpack.c.h.bf16 %v5668_v35 }
  0xce   : > { %477 = vst.msk [vmem:[#allocation3 + $0x20] sm:$0xff] %vm472_vm0, %v6979_v23  ;;  %478 = vst.msk [vmem:[#allocation3 + $0x28] sm:$0xff] %vm472_vm0, %v6979_v23  ;;  %1741 = vadd.xlane.f32.xlu1 %v1740_v2  ;;  %v1750_v40 = vadd.f32 %v1749_v27, %v1618_v8  ;;  %v1754_v50 = vadd.f32 %v1753_v33, %v1621_v20  ;;  %v1627_v51 = vunpack.c.l.bf16 %v5679_v46  ;;  %v1626_v63 = vunpack.c.h.bf16 %v5671_v38  ;;  %v5717_v33 = vld [vmem:[%s5469_s16 + $0xb0] sm:$0xff] }
  0xcf   : > { %4541 = vmatpush3.bf16.msra.mxu1 %v4695_v43  ;;  %4170 = vmatpush3.bf16.msra.mxu0 %v4695_v43  ;;  %479 = vst.msk [vmem:[#allocation3 + $0x30] sm:$0xff] %vm472_vm0, %v6979_v23  ;;  %480 = vst.msk [vmem:[#allocation3 + $0x38] sm:$0xff] %vm472_vm0, %v6979_v23  ;;  %v1625_v43 = vunpack.c.l.bf16 %v5671_v38  ;;  %v1758_v0 = vadd.f32 %v1624_v42, %v1623_v41  ;;  %v1629_v2 = vunpack.c.l.bf16 %v5682_v47  ;;  %v1630_v3 = vunpack.c.h.bf16 %v5682_v47 }
  0xd0   : > { %4534 = vmatprep.subr.bf16.mxu1 %v4696_v52  ;;  %4171 = vmatprep.subr.bf16.mxu0 %v4696_v52  ;;  %481 = vst.msk [vmem:[#allocation3 + $0x40] sm:$0xff] %vm472_vm0, %v6979_v23  ;;  %482 = vst.msk [vmem:[#allocation3 + $0x48] sm:$0xff] %vm472_vm0, %v6979_v23  ;;  %v1628_v52 = vunpack.c.h.bf16 %v5679_v46  ;;  %v1755_v8 = vadd.f32 %v1754_v50, %v1622_v32  ;;  %v1632_v17 = vunpack.c.h.bf16 %v5693_v55  ;;  %v1633_v27 = vunpack.c.l.bf16 %v5696_v56  ;;  %v5714_v32 = vld [vmem:[%s5469_s16 + $0xa8] sm:$0xff]  ;;  %v5722_v50 = vld [vmem:[%s5469_s16 + $0xb8] sm:$0xff] }
  0xd1   : > { %483 = vst.msk [vmem:[#allocation3 + $0x50] sm:$0xff] %vm472_vm0, %v6979_v23  ;;  %484 = vst.msk [vmem:[#allocation3 + $0x58] sm:$0xff] %vm472_vm0, %v6979_v23  ;;  %1746 = vadd.xlane.f32.xlu0 %v1745_v16  ;;  %v1759_v19 = vadd.f32 %v1758_v0, %v1625_v43  ;;  %v3898_v20 = vcombine.high %v5685_v49, %v5690_v53  ;;  %v1634_v28 = vunpack.c.h.bf16 %v5696_v56  ;;  %v1637_v15 = vunpack.c.l.bf16 %v5714_v32 }
  0xd2   : > { %485 = vst.msk [vmem:[#allocation3 + $0x60] sm:$0xff] %vm472_vm0, %v6979_v23  ;;  %486 = vst.msk [vmem:[#allocation3 + $0x68] sm:$0xff] %vm472_vm0, %v6979_v23  ;;  %1751 = vadd.xlane.f32.xlu1 %v1750_v40  ;;  %v1763_v16 = vadd.f32 %v1628_v52, %v1627_v51  ;;  %v5725_v51 = vld [vmem:[%s5469_s16 + $0xc0] sm:$0xff]  ;;  %v1638_v54 = vunpack.c.h.bf16 %v5714_v32  ;;  %v1662_v37 = vunpack.c.h.bf16 %v5778_v7 }
  0xd3   : > { %487 = vst.msk [vmem:[#allocation3 + $0x70] sm:$0xff] %vm472_vm0, %v6979_v23  ;;  %488 = vst.msk [vmem:[#allocation3 + $0x78] sm:$0xff] %vm472_vm0, %v6979_v23  ;;  %4542 = vmatpush3.bf16.msra.mxu1 %v5564_v61  ;;  %4172 = vmatpush3.bf16.msra.mxu0 %v5564_v61  ;;  %v1631_v61 = vunpack.c.l.bf16 %v5693_v55  ;;  %v4705_v52 = vld [vmem:[#allocation7 + $0x80] sm:$0xff]   ;;  %v1760_v0 = vadd.f32 %v1759_v19, %v1626_v63  ;;  %v1641_v63 = vunpack.c.l.bf16 %v5722_v50  ;;  %v1642_v19 = vunpack.c.h.bf16 %v5722_v50 }
  0xd4   : > { %489 = vst.msk [vmem:[#allocation3 + $0x80] sm:$0xff] %vm472_vm0, %v6979_v23  ;;  %490 = vst.msk [vmem:[#allocation3 + $0x88] sm:$0xff] %vm472_vm0, %v6979_v23  ;;  %4535 = vmatprep.subr.bf16.mxu1 %v5571_v6  ;;  %4173 = vmatprep.subr.bf16.mxu0 %v5571_v6  ;;  %v5711_v6 = vld [vmem:[%s5469_s16 + $0xa0] sm:$0xff]  ;;  %v1764_v40 = vadd.f32 %v1763_v16, %v1629_v2  ;;  %v1639_v2 = vunpack.c.l.bf16 %v5717_v33  ;;  %v1643_v18 = vunpack.c.l.bf16 %v5725_v51 }
  0xd5   : > { %491 = vst.msk [vmem:[#allocation3 + $0x90] sm:$0xff] %vm472_vm0, %v6979_v23  ;;  %492 = vst.msk [vmem:[#allocation3 + $0x98] sm:$0xff] %vm472_vm0, %v6979_v23  ;;  %1756 = vadd.xlane.f32.xlu0 %v1755_v8  ;;  %v1768_v41 = vadd.f32 %v1632_v17, %v1631_v61  ;;  %v1635_v42 = vunpack.c.l.bf16 %v5711_v6  ;;  %v1636_v43 = vunpack.c.h.bf16 %v5711_v6  ;;  %v5731_v8 = vld [vmem:[%s5469_s16 + $0xc8] sm:$0xff] }
  0xd6   : > { %493 = vst.msk [vmem:[#allocation3 + $0xa0] sm:$0xff] %vm472_vm0, %v6979_v23  ;;  %494 = vst.msk [vmem:[#allocation3 + $0xa8] sm:$0xff] %vm472_vm0, %v6979_v23  ;;  %v1765_v16 = vadd.f32 %v1764_v40, %v1630_v3  ;;  %1761 = vadd.xlane.f32.xlu1 %v1760_v0  ;;  %v5742_v3 = vld [vmem:[%s5469_s16 + $0xd8] sm:$0xff]  ;;  %v1646_v0 = vunpack.c.h.bf16 %v5731_v8 }
  0xd7   : > { %495 = vst.msk [vmem:[#allocation3 + $0xb0] sm:$0xff] %vm472_vm0, %v6979_v23  ;;  %496 = vst.msk [vmem:[#allocation3 + $0xb8] sm:$0xff] %vm472_vm0, %v6979_v23  ;;  %4543 = vmatpush3.bf16.msra.mxu1 %v4699_v24  ;;  %4174 = vmatpush3.bf16.msra.mxu0 %v4699_v24  ;;  %v1769_v61 = vadd.f32 %v1768_v41, %v1633_v27  ;;  %v1773_v17 = vadd.f32 %v1636_v43, %v1635_v42  ;;  %v1640_v24 = vunpack.c.h.bf16 %v5717_v33  ;;  %v5746_v42 = vld [vmem:[%s5469_s16 + $0xe0] sm:$0xff]  ;;  %v4709_v43 = vld [vmem:[#allocation7 + $0x88] sm:$0xff]  }
  0xd8   : > { %497 = vst.msk [vmem:[#allocation3 + $0xc0] sm:$0xff] %vm472_vm0, %v6979_v23  ;;  %498 = vst.msk [vmem:[#allocation3 + $0xc8] sm:$0xff] %vm472_vm0, %v6979_v23  ;;  %4536 = vmatprep.subr.bf16.mxu1 %v4700_v31  ;;  %4175 = vmatprep.subr.bf16.mxu0 %v4700_v31  ;;  %v1644_v31 = vunpack.c.h.bf16 %v5725_v51 }
  0xd9   : > { %499 = vst.msk [vmem:[#allocation3 + $0xd0] sm:$0xff] %vm472_vm0, %v6979_v23  ;;  %500 = vst.msk [vmem:[#allocation3 + $0xd8] sm:$0xff] %vm472_vm0, %v6979_v23  ;;  %1766 = vadd.xlane.f32.xlu0 %v1765_v16  ;;  %v1770_v27 = vadd.f32 %v1769_v61, %v1634_v28  ;;  %v1774_v40 = vadd.f32 %v1773_v17, %v1637_v15  ;;  %v1778_v41 = vadd.f32 %v1640_v24, %v1639_v2  ;;  %v5757_v28 = vld [vmem:[%s5469_s16 + $0xe8] sm:$0xff]  ;;  %v5761_v61 = vld [vmem:[%s5469_s16 + $0x150] sm:$0xff] }
  0xda   : > { %501 = vst.msk [vmem:[#allocation3 + $0xe0] sm:$0xff] %vm472_vm0, %v6979_v23  ;;  %502 = vst.msk [vmem:[#allocation3 + $0xe8] sm:$0xff] %vm472_vm0, %v6979_v23  ;;  %v1783_v21 = vadd.f32 %v1644_v31, %v1643_v18  ;;  %v1647_v15 = vunpack.c.l.bf16 %v5735_v45  ;;  %v1663_v2 = vunpack.c.l.bf16 %v5591_v22  ;;  %v1649_v18 = vunpack.c.l.bf16 %v5742_v3  ;;  %v4712_v17 = vld [vmem:[#allocation7 + $0xd0] sm:$0xff]  }
  0xdb   : > { %503 = vst.msk [vmem:[#allocation3 + $0xf0] sm:$0xff] %vm472_vm0, %v6979_v23  ;;  %504 = vst.msk [vmem:[#allocation3 + $0xf8] sm:$0xff] %vm472_vm0, %v6979_v23  ;;  %v4708_v23 = vld [vmem:[#allocation7 + $0xc8] sm:$0xff]   ;;  %4544 = vmatpush3.bf16.msra.mxu1 %v4701_v62  ;;  %4176 = vmatpush3.bf16.msra.mxu0 %v4701_v62  ;;  %v1775_v62 = vadd.f32 %v1774_v40, %v1638_v54  ;;  %v1779_v16 = vadd.f32 %v1778_v41, %v1641_v63  ;;  %v5766_v24 = vld [vmem:[%s5469_s16 + $0xf0] sm:$0xff]  ;;  %v1651_v54 = vunpack.c.l.bf16 %v5746_v42 }
  0xdc   : > { %7038 = vst [vmem:[#allocation31_spill] sm:$0xff] %v5725_v51  ;;  %7039 = vst [vmem:[#allocation32_spill] sm:$0xff] %v5735_v45  ;;  %4273 = vmatprep.subr.bf16.mxu1 %v4704_v9  ;;  %v1645_v9 = vunpack.c.l.bf16 %v5731_v8  ;;  %1771 = vadd.xlane.f32.xlu1 %v1770_v27  ;;  %v3897_v31 = vcombine.low %v5685_v49, %v5690_v53  ;;  %v1652_v41 = vunpack.c.h.bf16 %v5746_v42  ;;  %v1653_v27 = vunpack.c.l.bf16 %v5757_v28  ;;  %v5932_v51 = vld [vmem:[%s5469_s16 + $0x1e8] sm:$0xff] }
  0xdd   : > { %7040 = vst [vmem:[#allocation33_spill] sm:$0xff] %v5746_v42  ;;  %7041 = vst [vmem:[#allocation34_spill] sm:$0xff] %v5766_v24  ;;  %1776 = vadd.xlane.f32.xlu0 %v1775_v62  ;;  %v1780_v63 = vadd.f32 %v1779_v16, %v1642_v19  ;;  %v1655_v19 = vunpack.c.l.bf16 %v5766_v24  ;;  %v1654_v16 = vunpack.c.h.bf16 %v5757_v28 }
  0xde   : > { %1274 = vmatmul.mubr.bf16.vlgmr.msra.gmra.mrb[0].mxu1 %v3893_v34  ;;  %v1648_v34 = vunpack.c.h.bf16 %v5735_v45  ;;  %v1784_v29 = vadd.f32 %v1783_v21, %v1645_v9  ;;  %1210 = vmatmul.mubr.bf16.vlgmr.msra.gmra.mrb[0].mxu0 %v3861_v60  ;;  %v4713_v9 = vld [vmem:[#allocation7 + $0x90] sm:$0xff]  }
  0xdf   : > { %4274 = vmatpush3.bf16.msra.mxu1 %v4705_v52  ;;  %1281 = vmatprep.mubr.bf16.mxu1 %v3898_v20  ;;  %v1650_v20 = vunpack.c.h.bf16 %v5742_v3  ;;  %v5773_v52 = vld [vmem:[%s5469_s16 + $0xf8] sm:$0xff]  ;;  %v5796_v60 = vld [vmem:[%s5469_s16 + $0x170] sm:$0xff] }
  0xe0   : > { %4275 = vmatprep.subr.bf16.mxu1 %v4708_v23  ;;  %v1788_v40 = vadd.f32 %v1648_v34, %v1647_v15  ;;  %v1785_v21 = vadd.f32 %v1784_v29, %v1646_v0  ;;  %v3902_v23 = vcombine.high %v5753_v30, %v5761_v61  ;;  %v1656_v15 = vunpack.c.h.bf16 %v5766_v24  ;;  %1217 = vmatprep.mubr.bf16.mxu0 %v3866_v1  ;;  %v5799_v29 = vld [vmem:[%s5469_s16 + $0x118] sm:$0xff] }
  0xe1   : > { %v1793_v34 = vadd.f32 %v1652_v41, %v1651_v54  ;;  %v1657_v4 = vunpack.c.l.bf16 %v5773_v52  ;;  %1781 = vadd.xlane.f32.xlu1 %v1780_v63  ;;  %v1658_v0 = vunpack.c.h.bf16 %v5773_v52  ;;  %v1661_v1 = vunpack.c.l.bf16 %v5778_v7  ;;  %v4716_v54 = vld [vmem:[#allocation7 + $0xd8] sm:$0xff]   ;;  %v5810_v63 = vld [vmem:[%s5469_s16 + $0x128] sm:$0xff] }
  0xe2   : > { %v1789_v62 = vadd.f32 %v1788_v40, %v1649_v18  ;;  %v1798_v57 = vadd.f32 %v1656_v15, %v1655_v19  ;;  %1786 = vadd.xlane.f32.xlu0 %v1785_v21  ;;  %v3901_v19 = vcombine.low %v5753_v30, %v5761_v61  ;;  %v4717_v21 = vld [vmem:[#allocation7 + $0x98] sm:$0xff]  }
  0xe3   : > { %4276 = vmatpush3.bf16.msra.mxu1 %v4709_v43  ;;  %v7042_v43 = vunpack.c.h.bf16 %v5583_v13  ;;  %v1794_v41 = vadd.f32 %v1793_v34, %v1653_v27  ;;  %v1665_v13 = vunpack.c.l.bf16 %v5799_v29 }
  0xe4   : > { %4277 = vmatprep.subr.bf16.mxu1 %v4712_v17  ;;  %v1790_v40 = vadd.f32 %v1789_v62, %v1650_v20  ;;  %v1664_v17 = vunpack.c.h.bf16 %v5591_v22  ;;  %v1799_v15 = vadd.f32 %v1798_v57, %v1657_v4  ;;  %v3906_v20 = vcombine.high %v5793_v12, %v5796_v60  ;;  %v5819_v62 = vld [vmem:[%s5469_s16 + $0x138] sm:$0xff] }
  0xe5   : > { %v1803_v18 = vadd.f32 %v7042_v43, %v1659_v39  ;;  %v1795_v39 = vadd.f32 %v1794_v41, %v1654_v16  ;;  %v1667_v22 = vunpack.c.l.bf16 %v5685_v49  ;;  %v1666_v57 = vunpack.c.h.bf16 %v5799_v29  ;;  %v4720_v16 = vld [vmem:[#allocation7 + $0xe0] sm:$0xff]   ;;  %v5836_v41 = vld [vmem:[%s5469_s16 + $0x158] sm:$0xff] }
  0xe6   : > { %1282 = vmatmul.mubr.bf16.gmra.mrb[4].mxu1 %v3897_v31  ;;  %v1808_v27 = vadd.f32 %v1664_v17, %v1663_v2  ;;  %v5822_v31 = vld [vmem:[%s5469_s16 + $0x148] sm:$0xff]  ;;  %1791 = vadd.xlane.f32.xlu1 %v1790_v40  ;;  %v1800_v34 = vadd.f32 %v1799_v15, %v1658_v0  ;;  %v1672_v43 = vunpack.c.h.bf16 %v5690_v53  ;;  %v1670_v0 = vunpack.c.h.bf16 %v5810_v63  ;;  %v4721_v17 = vld [vmem:[#allocation7 + $0xa0] sm:$0xff]  }
  0xe7   : > { %v1804_v26 = vadd.f32 %v1803_v18, %v1661_v1  ;;  %1289 = vmatprep.mubr.bf16.mxu1 %v3902_v23  ;;  %4278 = vmatpush3.bf16.msra.mxu1 %v4713_v9  ;;  %v1668_v23 = vunpack.c.h.bf16 %v5685_v49  ;;  %v1669_v9 = vunpack.c.l.bf16 %v5810_v63  ;;  %v1671_v1 = vunpack.c.l.bf16 %v5690_v53 }
  0xe8   : > { %4279 = vmatprep.subr.bf16.mxu1 %v4716_v54  ;;  %1796 = vadd.xlane.f32.xlu0 %v1795_v39  ;;  %v1809_v4 = vadd.f32 %v1808_v27, %v1665_v13  ;;  %v7043_v18 = vcombine.low %v5523_v25, %v5533_v36  ;;  %v1673_v54 = vunpack.c.l.bf16 %v5819_v62  ;;  %v1675_v49 = vunpack.c.l.bf16 %v5753_v30 }
  0xe9   : > { %v1805_v2 = vadd.f32 %v1804_v26, %v1662_v37  ;;  %v1813_v40 = vadd.f32 %v1668_v23, %v1667_v22  ;;  %v7044_v26 = vcombine.high %v5542_v44, %v5557_v58  ;;  %v1674_v37 = vunpack.c.h.bf16 %v5819_v62 }
  0xea   : > { %1218 = vmatmul.mubr.bf16.gmra.mrb[4].mxu0 %v7043_v18  ;;  %v1818_v53 = vadd.f32 %v1672_v43, %v1671_v1  ;;  %v1676_v25 = vunpack.c.h.bf16 %v5753_v30  ;;  %v1677_v36 = vunpack.c.l.bf16 %v5822_v31  ;;  %1801 = vadd.xlane.f32.xlu1 %v1800_v34  ;;  %v1810_v15 = vadd.f32 %v1809_v4, %v1666_v57  ;;  %v5849_v43 = vld [vmem:[%s5469_s16 + $0x168] sm:$0xff]  ;;  %v5852_v57 = vld [vmem:[%s5469_s16 + $0x180] sm:$0xff]  ;;  %v5860_v18 = vld [vmem:[%s5469_s16 + $0x178] sm:$0xff] }
  0xeb   : > { %1225 = vmatprep.mubr.bf16.mxu0 %v7044_v26  ;;  %4280 = vmatpush3.bf16.msra.mxu1 %v4717_v21  ;;  %v1814_v13 = vadd.f32 %v1813_v40, %v1669_v9  ;;  %v1678_v39 = vunpack.c.h.bf16 %v5822_v31  ;;  %v1679_v27 = vunpack.c.l.bf16 %v5761_v61  ;;  %v4724_v21 = vld [vmem:[#allocation7 + $0xe8] sm:$0xff]   ;;  %v1680_v30 = vunpack.c.h.bf16 %v5761_v61  ;;  %v5855_v9 = vld [vmem:[%s5469_s16 + $0x190] sm:$0xff] }
  0xec   : > { %4281 = vmatprep.subr.bf16.mxu1 %v4720_v16  ;;  %1806 = vadd.xlane.f32.xlu0 %v1805_v2  ;;  %v1819_v22 = vadd.f32 %v1818_v53, %v1673_v54  ;;  %v1823_v23 = vadd.f32 %v1676_v25, %v1675_v49  ;;  %v1681_v1 = vunpack.c.l.bf16 %v5836_v41  ;;  %v1682_v4 = vunpack.c.h.bf16 %v5836_v41  ;;  %v5863_v2 = vld [vmem:[%s5469_s16 + $0x188] sm:$0xff] }
  0xed   : > { %v1815_v34 = vadd.f32 %v1814_v13, %v1670_v0  ;;  %v1683_v16 = vunpack.c.l.bf16 %v5793_v12  ;;  %v1828_v54 = vadd.f32 %v1680_v30, %v1679_v27  ;;  %v4725_v0 = vld [vmem:[#allocation7 + $0xa8] sm:$0xff]   ;;  %v1685_v49 = vunpack.c.l.bf16 %v5849_v43  ;;  %v5879_v30 = vld [vmem:[%s5469_s16 + $0x1a0] sm:$0xff] }
  0xee   : > { %1290 = vmatmul.mubr.bf16.gmra.mrb[8].mxu1 %v3901_v19  ;;  %v1820_v61 = vadd.f32 %v1819_v22, %v1674_v37  ;;  %v1824_v40 = vadd.f32 %v1823_v23, %v1677_v36  ;;  %v1684_v19 = vunpack.c.h.bf16 %v5793_v12  ;;  %1811 = vadd.xlane.f32.xlu1 %v1810_v15  ;;  %v1686_v26 = vunpack.c.h.bf16 %v5849_v43 }
  0xef   : > { %1297 = vmatprep.mubr.bf16.mxu1 %v3906_v20  ;;  %4282 = vmatpush3.bf16.msra.mxu1 %v4721_v17  ;;  %v1687_v53 = vunpack.c.l.bf16 %v5796_v60  ;;  %v1688_v25 = vunpack.c.h.bf16 %v5796_v60  ;;  %v4728_v20 = vld [vmem:[#allocation7 + $0xf0] sm:$0xff]   ;;  %v1829_v36 = vadd.f32 %v1828_v54, %v1681_v1  ;;  %v1689_v15 = vunpack.c.l.bf16 %v5860_v18 }
  0xf0   : > { %4283 = vmatprep.subr.bf16.mxu1 %v4724_v21  ;;  %1816 = vadd.xlane.f32.xlu0 %v1815_v34  ;;  %v1825_v37 = vadd.f32 %v1824_v40, %v1678_v39  ;;  %v1833_v17 = vadd.f32 %v1684_v19, %v1683_v16  ;;  %v7045_v13 = vcombine.low %v5542_v44, %v5557_v58  ;;  %v1691_v21 = vunpack.c.l.bf16 %v5852_v57  ;;  %v5882_v39 = vld [vmem:[%s5469_s16 + $0x198] sm:$0xff]  ;;  %v5889_v16 = vld [vmem:[%s5469_s16 + $0x1b0] sm:$0xff] }
  0xf1   : > { %v3905_v27 = vcombine.low %v5793_v12, %v5796_v60  ;;  %v1838_v22 = vadd.f32 %v1688_v25, %v1687_v53  ;;  %v1692_v23 = vunpack.c.h.bf16 %v5852_v57  ;;  %v3910_v1 = vcombine.high %v5852_v57, %v5855_v9  ;;  %v5892_v12 = vld [vmem:[%s5469_s16 + $0x1a8] sm:$0xff]  ;;  %v5895_v60 = vld [vmem:[%s5469_s16 + $0x1b8] sm:$0xff]  ;;  %v4729_v40 = vld [vmem:[#allocation7 + $0xb0] sm:$0xff]  }
  0xf2   : > { %1226 = vmatmul.mubr.bf16.gmra.mrb[8].mxu0 %v7045_v13  ;;  %v1834_v34 = vadd.f32 %v1833_v17, %v1685_v49  ;;  %v1690_v44 = vunpack.c.h.bf16 %v5860_v18  ;;  %v1693_v58 = vunpack.c.l.bf16 %v5863_v2  ;;  %7046 = vst [vmem:[#allocation35_spill] sm:$0xff] %v5892_v12  ;;  %1821 = vadd.xlane.f32.xlu1 %v1820_v61  ;;  %v1830_v54 = vadd.f32 %v1829_v36, %v1682_v4  ;;  %v5899_v25 = vld [vmem:[%s5469_s16 + $0x1c0] sm:$0xff]  ;;  %v4732_v17 = vld [vmem:[#allocation7 + $0xf8] sm:$0xff]   ;;  %v5905_v61 = vld [vmem:[%s5469_s16 + $0x1c8] sm:$0xff] }
  0xf3   : > { %4284 = vmatpush3.bf16.msra.mxu1 %v4725_v0  ;;  %v1839_v19 = vadd.f32 %v1838_v22, %v1689_v15  ;;  %v1843_v53 = vadd.f32 %v1692_v23, %v1691_v21  ;;  %v1695_v49 = vunpack.c.l.bf16 %v5855_v9  ;;  %v1694_v0 = vunpack.c.h.bf16 %v5863_v2 }
  0xf4   : > { %4285 = vmatprep.subr.bf16.mxu1 %v4728_v20  ;;  %1826 = vadd.xlane.f32.xlu0 %v1825_v37  ;;  %v1835_v13 = vadd.f32 %v1834_v34, %v1686_v26  ;;  %v1696_v42 = vunpack.c.h.bf16 %v5855_v9  ;;  %v1697_v24 = vunpack.c.l.bf16 %v5882_v39  ;;  %v3909_v4 = vcombine.low %v5852_v57, %v5855_v9  ;;  %v5912_v26 = vld [vmem:[%s5469_s16 + $0x1d0] sm:$0xff]  ;;  %v5917_v34 = vld [vmem:[%s5469_s16 + $0x1d8] sm:$0xff] }
  0xf5   : > { %v1844_v36 = vadd.f32 %v1843_v53, %v1693_v58  ;;  %v1698_v15 = vunpack.c.h.bf16 %v5882_v39  ;;  %v1699_v20 = vunpack.c.l.bf16 %v5879_v30  ;;  %v1840_v37 = vadd.f32 %v1839_v19, %v1690_v44  ;;  %v5924_v44 = vld [vmem:[%s5469_s16 + $0x1e0] sm:$0xff] }
  0xf6   : > { %1298 = vmatmul.mubr.bf16.gmra.mrb[12].mxu1 %v3905_v27  ;;  %v1848_v22 = vadd.f32 %v1696_v42, %v1695_v49  ;;  %v1700_v21 = vunpack.c.h.bf16 %v5879_v30  ;;  %v1701_v23 = vunpack.c.l.bf16 %v5892_v12  ;;  %v4733_v27 = vld [vmem:[#allocation7 + $0xb8] sm:$0xff]   ;;  %1831 = vadd.xlane.f32.xlu1 %v1830_v54  ;;  %v1702_v57 = vunpack.c.h.bf16 %v5892_v12 }
  0xf7   : > { %1305 = vmatprep.mubr.bf16.mxu1 %v3910_v1  ;;  %4286 = vmatpush3.bf16.msra.mxu1 %v4729_v40  ;;  %v1703_v9 = vunpack.c.l.bf16 %v5889_v16  ;;  %v1704_v58 = vunpack.c.h.bf16 %v5889_v16  ;;  %v1705_v1 = vunpack.c.l.bf16 %v5895_v60  ;;  %v1845_v42 = vadd.f32 %v1844_v36, %v1694_v0  ;;  %v5940_v0 = vld [vmem:[%s5469_s16 + $0x1f8] sm:$0xff] }
  0xf8   : > { %4287 = vmatprep.subr.bf16.mxu1 %v4732_v17  ;;  %1836 = vadd.xlane.f32.xlu0 %v1835_v13  ;;  %v1849_v19 = vadd.f32 %v1848_v22, %v1697_v24  ;;  %v1853_v40 = vadd.f32 %v1700_v21, %v1699_v20  ;;  %v1707_v54 = vunpack.c.l.bf16 %v5899_v25  ;;  %v3914_v53 = vcombine.high %v5879_v30, %v5889_v16  ;;  %v5937_v24 = vld [vmem:[%s5469_s16 + $0x1f0] sm:$0xff]  ;;  %s5069_s16 = sshll.u32 %s5176_s20, 4  ;;  %s5070_s16 = int_to_ptr.vmem [resolvable:$false] %s5069_s16 }
  0xf9   : > { %v1858_v49 = vadd.f32 %v1704_v58, %v1703_v9  ;;  %v1708_v14 = vunpack.c.h.bf16 %v5899_v25  ;;  %v1709_v5 = vunpack.c.l.bf16 %v5905_v61  ;;  %v1706_v17 = vunpack.c.h.bf16 %v5895_v60  ;;  %s5071_s15 = scalar_lea.vmem %s5070_s16, 4096  ;;  %p5072_p8 = scmp.lt.s32.totalorder %s6899_s27, %s5070_s16 }
  0xfa   : > { %v1850_v45 = vadd.f32 %v1849_v19, %v1698_v15  ;;  %v1854_v12 = vadd.f32 %v1853_v40, %v1701_v23  ;;  %v1711_v13 = vunpack.c.l.bf16 %v5912_v26  ;;  %1841 = vadd.xlane.f32.xlu1 %v1840_v37  ;;  %v1712_v22 = vunpack.c.h.bf16 %v5912_v26  ;;  %p5073_p12 = scmp.lt.s32.totalorder %s5071_s15, %s5065_s23 }
  0xfb   : > { %4288 = vmatpush3.bf16.msra.mxu1 %v4733_v27  ;;  %v1859_v36 = vadd.f32 %v1858_v49, %v1705_v1  ;;  %v1863_v20 = vadd.f32 %v1708_v14, %v1707_v54  ;;  %v1713_v21 = vunpack.c.l.bf16 %v5917_v34  ;;  %v1710_v15 = vunpack.c.h.bf16 %v5905_v61 }
  0xfc   : > { %1846 = vadd.xlane.f32.xlu0 %v1845_v42  ;;  %v1855_v9 = vadd.f32 %v1854_v12, %v1702_v57  ;;  %v1715_v23 = vunpack.c.l.bf16 %v5924_v44  ;;  %v3913_v58 = vcombine.low %v5879_v30, %v5889_v16  ;;  %v1868_v40 = vadd.f32 %v1712_v22, %v1711_v13  ;;  %p5074_p3 = por %p5073_p12, %p5072_p8 }
  0xfd   : > { %v1864_v19 = vadd.f32 %v1863_v20, %v1709_v5  ;;  %v1716_v37 = vunpack.c.h.bf16 %v5924_v44  ;;  %v1714_v14 = vunpack.c.h.bf16 %v5917_v34  ;;  %v1717_v27 = vunpack.c.l.bf16 %v5932_v51 }
  0xfe   : > { %1306 = vmatmul.mubr.bf16.gmra.mrb[16].mxu1 %v3909_v4  ;;  %v1719_v1 = vunpack.c.l.bf16 %v5937_v24  ;;  %v1720_v12 = vunpack.c.h.bf16 %v5937_v24  ;;  %1851 = vadd.xlane.f32.xlu1 %v1850_v45  ;;  %v1860_v57 = vadd.f32 %v1859_v36, %v1706_v17  ;;  %v1869_v42 = vadd.f32 %v1868_v40, %v1713_v21  ;;  %p5075_p0 = pnand %p5074_p3, %p5068_p1 }
  0xff   : > { %1313 = vmatprep.mubr.bf16.mxu1 %v3914_v53  ;;  %v1873_v4 = vadd.f32 %v1716_v37, %v1715_v23  ;;  %v1721_v54 = vunpack.c.l.bf16 %v5940_v0  ;;  %v1865_v5 = vadd.f32 %v1864_v19, %v1710_v15  ;;  %v3918_v30 = vcombine.high %v5899_v25, %v5912_v26 }
 0x100   : > { %1856 = vadd.xlane.f32.xlu0 %v1855_v9  ;;  %v1718_v16 = vunpack.c.h.bf16 %v5932_v51  ;;  %v1878_v53 = vadd.f32 %v1720_v12, %v1719_v1  ;;  %v1722_v13 = vunpack.c.h.bf16 %v5940_v0  ;;  %v3871_v20 = vcombine.low %v5548_v48, %v5560_v59 }
 0x101   : > { %v1874_v49 = vadd.f32 %v1873_v4, %v1717_v27  ;;  %v3874_v45 = vcombine.high %v5577_v10, %v5668_v35  ;;  %v3876_v36 = vcombine.high %v5580_v11, %v5671_v38  ;;  %v3873_v22 = vcombine.low %v5577_v10, %v5668_v35 }
 0x102   : > { %v1879_v17 = vadd.f32 %v1878_v53, %v1721_v54  ;;  %v3875_v21 = vcombine.low %v5580_v11, %v5671_v38  ;;  %1861 = vadd.xlane.f32.xlu1 %v1860_v57  ;;  %v1870_v9 = vadd.f32 %v1869_v42, %v1714_v14  ;;  %v3878_v15 = vcombine.high %v5679_v46, %v5693_v55  ;;  %v4768_v11 = vld [vmem:[#allocation11 + $0x38] sm:$0xff]   ;;  %v4769_v38 = vld [vmem:[%s5482_s24] sm:$0xff]  }
 0x103   : > { %1233 = vmatprep.mubr.bf16.mxu0 %v3874_v45  ;;  %v3880_v23 = vcombine.high %v5682_v47, %v5696_v56  ;;  %v1875_v19 = vadd.f32 %v1874_v49, %v1718_v16  ;;  %v3879_v40 = vcombine.low %v5682_v47, %v5696_v56  ;;  %v3917_v10 = vcombine.low %v5899_v25, %v5912_v26  ;;  %v7047_v45 = vld [vmem:[#allocation35_spill] sm:$0xff]  ;;  %v4771_v47 = vld [vmem:[%s5482_s24 + $0x10] sm:$0xff]   ;;  %v4772_v56 = vld [vmem:[%s5482_s24 + $0x18] sm:$0xff]  }
 0x104   : > { %1866 = vadd.xlane.f32.xlu0 %v1865_v5  ;;  %1234 = vmatmul.mubr.bf16.gmra.mrb[12].mxu0 %v3873_v22  ;;  %v3922_v35 = vcombine.high %v5924_v44, %v5937_v24  ;;  %v3884_v37 = vcombine.high %v5714_v32, %v5722_v50  ;;  %v1880_v14 = vadd.f32 %v1879_v17, %v1722_v13  ;;  %v5175_v54 = vmov 0   ;;  %v7049_v17 = vld [vmem:[#allocation31_spill] sm:$0xff] }
 0x105   : > { %1241 = vmatprep.mubr.bf16.mxu0 %v3878_v15  ;;  %v3883_v27 = vcombine.low %v5714_v32, %v5722_v50  ;;  %v3888_v1 = vcombine.high %v5731_v8, %v5742_v3  ;;  %v3882_v25 = vcombine.high %v5711_v6, %v5717_v33  ;;  %v3887_v26 = vcombine.low %v5731_v8, %v5742_v3  ;;  %v4773_v32 = vld [vmem:[%s5482_s24 + $0x20] sm:$0xff]   ;;  %v1564_v8 = vld [vmem:[#allocation3 + $0x8] sm:$0xff]  ;;  %v1565_v3 = vld [vmem:[#allocation3 + $0x10] sm:$0xff] }
 0x106   : > { %1314 = vmatmul.mubr.bf16.gmra.mrb[20].mxu1 %v3913_v58  ;;  %1871 = vadd.xlane.f32.xlu1 %v1870_v9  ;;  %v3877_v58 = vcombine.low %v5679_v46, %v5693_v55  ;;  %v3892_v12 = vcombine.high %v5757_v28, %v5773_v52  ;;  %v3891_v57 = vcombine.low %v5757_v28, %v5773_v52  ;;  %v1563_v50 = vld [vmem:[#allocation3] sm:$0xff]  ;;  %v1566_v28 = vld [vmem:[#allocation3 + $0x18] sm:$0xff] }
 0x107   : > { %1321 = vmatprep.mubr.bf16.mxu1 %v3918_v30  ;;  %v3896_v42 = vcombine.high %v5778_v7, %v5799_v29  ;;  %v3895_v4 = vcombine.low %v5778_v7, %v5799_v29  ;;  %v3900_v46 = vcombine.high %v5810_v63, %v5819_v62  ;;  %v3899_v55 = vcombine.low %v5810_v63, %v5819_v62  ;;  %v4776_v52 = vld [vmem:[%s5482_s24 + $0x38] sm:$0xff]   ;;  %v4777_v29 = vld [vmem:[%s5482_s24 + $0x40] sm:$0xff]   ;;  %v4780_v62 = vld [vmem:[#allocation10 + $0x8] sm:$0xff]  }
 0x108   : > { %1876 = vadd.xlane.f32.xlu0 %v1875_v19  ;;  %4684 = vset.pattern.permute.xlu1 %v5175_v54  ;;  %v3904_v5 = vcombine.high %v5822_v31, %v5836_v41  ;;  %v3903_v30 = vcombine.low %v5822_v31, %v5836_v41  ;;  %v3908_v16 = vcombine.high %v5849_v43, %v5860_v18  ;;  %v1575_v31 = vld [vmem:[#allocation3 + $0x60] sm:$0xff] }
 0x109   : > { %4683 = vset.pattern.permute.xlu0 %v5175_v54  ;;  %v3907_v53 = vcombine.low %v5849_v43, %v5860_v18  ;;  %v3912_v49 = vcombine.high %v5863_v2, %v5882_v39  ;;  %v3915_v22 = vcombine.low %v7047_v45, %v5895_v60  ;;  %v3920_v9 = vcombine.high %v5905_v61, %v5917_v34  ;;  %v1579_v18 = vld [vmem:[#allocation3 + $0x80] sm:$0xff] }
 0x10a   : > { %1881 = vadd.xlane.f32.xlu1 %v1880_v14  ;;  %v3881_v19 = vcombine.low %v5711_v6, %v5717_v33  ;;  %v3921_v54 = vcombine.low %v5924_v44, %v5937_v24  ;;  %v7048_v14 = vld [vmem:[#allocation32_spill] sm:$0xff]  ;;  %v3923_v15 = vcombine.low %v5932_v51, %v5940_v0  ;;  %v7053_v33 = vld [vmem:[#allocation34_spill] sm:$0xff]  ;;  %v7054_v44 = vld [vmem:[#allocation33_spill] sm:$0xff] }
 0x10b   : > { %v3886_v13 = vcombine.high %v7049_v17, %v7048_v14  ;;  %v3885_v6 = vcombine.low %v7049_v17, %v7048_v14  ;;  %v3890_v24 = vcombine.high %v7054_v44, %v7053_v33  ;;  %v4761_v14 = vld [vmem:[#allocation11] sm:$0xff]  }
 0x10c   : > { %1242 = vmatmul.mubr.bf16.gmra.mrb[16].mxu0 %v3877_v58  ;;  %4433 = vmatprep.subr.bf16.mxu0 %v4761_v14 }
 0x10d   : > { %1249 = vmatprep.mubr.bf16.mxu0 %v3882_v25  ;;  %v3889_v25 = vcombine.low %v7054_v44, %v7053_v33  ;;  %4434 = vmatpush3.bf16.msra.mxu0 %v4761_v14  ;;  %v4765_v33 = vld [vmem:[#allocation11 + $0x20] sm:$0xff]  }
 0x10e   : > { %1322 = vmatmul.mubr.bf16.gmra.mrb[24].mxu1 %v3917_v10  ;;  %v7050_v10 = vld [vmem:[#allocation27_spill] sm:$0xff] }
 0x10f   : > { %1329 = vmatprep.mubr.bf16.mxu1 %v3922_v35  ;;  %v7051_v35 = vld [vmem:[#allocation28_spill] sm:$0xff] }
 0x110   : > { %v7052_v58 = vcombine.high %v7050_v10, %v7051_v35 }
 0x114   : > { %1250 = vmatmul.mubr.bf16.gmra.mrb[20].mxu0 %v3881_v19  ;;  %v7056_v19 = vld [vmem:[#allocation29_spill] sm:$0xff] }
 0x115   : > { %1257 = vmatprep.mubr.bf16.mxu0 %v3886_v13  ;;  %v7055_v13 = vcombine.low %v7050_v10, %v7051_v35  ;;  %v4762_v10 = vld [vmem:[#allocation11 + $0x8] sm:$0xff]   ;;  %v4763_v35 = vld [vmem:[#allocation11 + $0x10] sm:$0xff]  }
 0x116   : > { %1330 = vmatmul.mubr.bf16.gmra.mrb[28].mxu1 %v3921_v54  ;;  %v7057_v54 = vld [vmem:[#allocation30_spill] sm:$0xff]  ;;  %4435 = vmatprep.subr.bf16.mxu0 %v4762_v10 }
 0x117   : > { %1370 = vmatprep.mubr.bf16.mxu1 %v7052_v58  ;;  %v7058_v58 = vcombine.high %v7056_v19, %v7057_v54  ;;  %v7059_v17 = vcombine.low %v7056_v19, %v7057_v54  ;;  %4436 = vmatpush3.bf16.msra.mxu0 %v4762_v10  ;;  %v1568_v19 = vld [vmem:[#allocation3 + $0x28] sm:$0xff]  ;;  %v4779_v10 = vld [vmem:[#allocation10] sm:$0xff]  }
 0x118   : > { %4437 = vmatprep.subr.bf16.mxu0 %v4763_v35 }
 0x11b   : > { %4438 = vmatpush3.bf16.msra.mxu0 %v4763_v35 }
 0x11c   : > { %1258 = vmatmul.mubr.bf16.gmra.mrb[24].mxu0 %v3885_v6  ;;  %v7060_v6 = vcombine.high %v5548_v48, %v5560_v59  ;;  %v4766_v48 = vld [vmem:[#allocation11 + $0x28] sm:$0xff]   ;;  %v4767_v59 = vld [vmem:[#allocation11 + $0x30] sm:$0xff]  }
 0x11d   : > { %1265 = vmatprep.mubr.bf16.mxu0 %v3890_v24 }
 0x11e   : > { %1371 = vmatmul.mubr.bf16.vlgmr.msra.gmra.mrb[32].mxu1 %v7055_v13 }
 0x11f   : > { %1378 = vmatprep.mubr.bf16.mxu1 %v7058_v58  ;;  %v1569_v58 = vld [vmem:[#allocation3 + $0x30] sm:$0xff] }
 0x124   : > { %1266 = vmatmul.mubr.bf16.gmra.mrb[28].mxu0 %v3889_v25  ;;  %v4764_v25 = vld [vmem:[#allocation11 + $0x18] sm:$0xff]  }
 0x125   : > { %4439 = vmatprep.subr.bf16.mxu0 %v4764_v25  ;;  %4449 = vmatprep.mubr.bf16.mxu0 %v4769_v38 }
 0x126   : > { %1379 = vmatmul.mubr.bf16.gmra.mrb[36].mxu1 %v7059_v17  ;;  %4440 = vmatpush3.bf16.msra.mxu0 %v4764_v25 }
 0x127   : > { %1386 = vmatprep.mubr.bf16.mxu1 %v7060_v6  ;;  %4441 = vmatprep.subr.bf16.mxu0 %v4765_v33  ;;  %v4778_v6 = vld [vmem:[%s5482_s24 + $0x48] sm:$0xff]  }
 0x12a   : > { %4442 = vmatpush3.bf16.msra.mxu0 %v4765_v33 }
 0x12b   : > { %4443 = vmatprep.subr.bf16.mxu0 %v4766_v48 }
 0x12e   : > { %1387 = vmatmul.mubr.bf16.gmra.mrb[40].mxu1 %v3871_v20  ;;  %4444 = vmatpush3.bf16.msra.mxu0 %v4766_v48  ;;  %v4770_v20 = vld [vmem:[%s5482_s24 + $0x8] sm:$0xff]   ;;  %v1570_v48 = vld [vmem:[#allocation3 + $0x38] sm:$0xff] }
 0x12f   : > { %1394 = vmatprep.mubr.bf16.mxu1 %v3876_v36  ;;  %4445 = vmatprep.subr.bf16.mxu0 %v4767_v59  ;;  %v4774_v36 = vld [vmem:[%s5482_s24 + $0x28] sm:$0xff]  }
 0x132   : > { %4446 = vmatpush3.bf16.msra.mxu0 %v4767_v59  ;;  %v1571_v59 = vld [vmem:[#allocation3 + $0x40] sm:$0xff] }
 0x133   : > { %4447 = vmatprep.subr.bf16.mxu0 %v4768_v11 }
 0x136   : > { %1395 = vmatmul.mubr.bf16.gmra.mrb[44].mxu1 %v3875_v21  ;;  %4448 = vmatpush3.bf16.msra.mxu0 %v4768_v11 }
 0x137   : > { %1402 = vmatprep.mubr.bf16.mxu1 %v3880_v23  ;;  %4481 = vmatprep.subr.bf16.mxu0 %v4779_v10 }
 0x139   : > { %4450 = vmatmul.mubr.bf16.vlgmr.msra.gmra.mrb[32].mxu0 %v4770_v20 }
 0x13a   : > { %4453 = vmatprep.mubr.bf16.mxu0 %v4771_v47  ;;  %4482 = vmatpush3.bf16.msra.mxu0 %v4779_v10  ;;  %v4786_v10 = vld [vmem:[%s5482_s24 + $0x68] sm:$0xff]  }
 0x13b   : > { %4483 = vmatprep.subr.bf16.mxu0 %v4780_v62 }
 0x13e   : > { %1403 = vmatmul.mubr.bf16.gmra.mrb[48].mxu1 %v3879_v40  ;;  %4484 = vmatpush3.bf16.msra.mxu0 %v4780_v62 }
 0x13f   : > { %1410 = vmatprep.mubr.bf16.mxu1 %v3884_v37 }
 0x141   : > { %4454 = vmatmul.mubr.bf16.gmra.mrb[36].mxu0 %v4772_v56  ;;  %v1572_v56 = vld [vmem:[#allocation3 + $0x48] sm:$0xff] }
 0x142   : > { %4457 = vmatprep.mubr.bf16.mxu0 %v4773_v32 }
 0x146   : > { %1411 = vmatmul.mubr.bf16.gmra.mrb[52].mxu1 %v3883_v27 }
 0x147   : > { %1418 = vmatprep.mubr.bf16.mxu1 %v3888_v1  ;;  %v4775_v1 = vld [vmem:[%s5482_s24 + $0x30] sm:$0xff]  }
 0x149   : > { %4458 = vmatmul.mubr.bf16.gmra.mrb[40].mxu0 %v4774_v36  ;;  %v1573_v36 = vld [vmem:[#allocation3 + $0x50] sm:$0xff] }
 0x14a   : > { %4461 = vmatprep.mubr.bf16.mxu0 %v4775_v1 }
 0x14e   : > { %1419 = vmatmul.mubr.bf16.gmra.mrb[56].mxu1 %v3887_v26 }
 0x14f   : > { %1426 = vmatprep.mubr.bf16.mxu1 %v3892_v12  ;;  %v1567_v12 = vld [vmem:[#allocation3 + $0x20] sm:$0xff] }
 0x151   : > { %4462 = vmatmul.mubr.bf16.gmra.mrb[44].mxu0 %v4776_v52 }
 0x152   : > { %4465 = vmatprep.mubr.bf16.mxu0 %v4777_v29  ;;  %v1577_v29 = vld [vmem:[#allocation3 + $0x70] sm:$0xff] }
 0x156   : > { %v1727_v21 = vpop.xlane.xlu0 %1726  ;;  %1427 = vmatmul.mubr.bf16.gmra.mrb[60].mxu1 %v3891_v57 }
 0x157   : > { %v1883_v23 = vadd.f32 %v1727_v21, %v1563_v50  ;;  %1434 = vmatprep.mubr.bf16.mxu1 %v3896_v42  ;;  %v1737_v27 = vpop.xlane.xlu1 %1736  ;;  %v4781_v50 = vld [vmem:[%s5482_s24 + $0x50] sm:$0xff]  }
 0x158   : > { %v1885_v26 = vadd.f32 %v1737_v27, %v1565_v3  ;;  %v4782_v3 = vld [vmem:[%s5482_s24 + $0x58] sm:$0xff]  }
 0x159   : > { %1916 = vst.msk [vmem:[#allocation3] sm:$0xff] %vm472_vm0, %v1883_v23  ;;  %4466 = vmatmul.mubr.bf16.gmra.mrb[48].mxu0 %v4778_v6 }
 0x15a   : > { %v1732_v40 = vpop.xlane.xlu0 %1731  ;;  %1918 = vst.msk [vmem:[#allocation3 + $0x10] sm:$0xff] %vm472_vm0, %v1885_v26  ;;  %4469 = vmatprep.mubr.bf16.mxu0 %v4781_v50 }
 0x15b   : > { %v1884_v37 = vadd.f32 %v1732_v40, %v1564_v8  ;;  %v1742_v57 = vpop.xlane.xlu1 %1741  ;;  %v4783_v40 = vld [vmem:[#allocation10 + $0x10] sm:$0xff]  }
 0x15c   : > { %v1886_v42 = vadd.f32 %v1742_v57, %v1566_v28  ;;  %v1574_v28 = vld [vmem:[#allocation3 + $0x58] sm:$0xff]  ;;  %4485 = vmatprep.subr.bf16.mxu0 %v4783_v40 }
 0x15d   : > { %1917 = vst.msk [vmem:[#allocation3 + $0x8] sm:$0xff] %vm472_vm0, %v1884_v37  ;;  %4486 = vmatpush3.bf16.msra.mxu0 %v4783_v40 }
 0x15e   : > { %1435 = vmatmul.mubr.bf16.gmra.mrb[64].mxu1 %v3895_v4  ;;  %v1747_v44 = vpop.xlane.xlu0 %1746  ;;  %1919 = vst.msk [vmem:[#allocation3 + $0x18] sm:$0xff] %vm472_vm0, %v1886_v42 }
 0x15f   : > { %1442 = vmatprep.mubr.bf16.mxu1 %v3900_v46  ;;  %v1887_v13 = vadd.f32 %v1747_v44, %v1567_v12  ;;  %v1752_v7 = vpop.xlane.xlu1 %1751 }
 0x160   : > { %v1951_v24 = vld [vmem:[#allocation3] sm:$0xff]  ;;  %v1888_v4 = vadd.f32 %v1752_v7, %v1568_v19  ;;  %v1576_v19 = vld [vmem:[#allocation3 + $0x68] sm:$0xff] }
 0x161   : > { %v2015_v54 = vmax.f32 %v1951_v24, 1.0  ;;  %1920 = vst.msk [vmem:[#allocation3 + $0x20] sm:$0xff] %vm472_vm0, %v1887_v13  ;;  %v6112_v14 = vld [vmem:[#allocation3 + $0x10] sm:$0xff]  ;;  %vm1983_vm1 = vcmp.gt.f32.partialorder %v1951_v24, 0.0  ;;  %4470 = vmatmul.mubr.bf16.gmra.mrb[52].mxu0 %v4782_v3  ;;  %v4784_v24 = vld [vmem:[#allocation10 + $0x18] sm:$0xff]  }
 0x162   : > { %1921 = vst.msk [vmem:[#allocation3 + $0x28] sm:$0xff] %vm472_vm0, %v1888_v4  ;;  %v1757_v35 = vpop.xlane.xlu0 %1756  ;;  %v2017_v25 = vmax.f32 %v6112_v14, 1.0  ;;  %vm1985_vm3 = vcmp.gt.f32.partialorder %v6112_v14, 0.0  ;;  %4487 = vmatprep.subr.bf16.mxu0 %v4784_v24 }
 0x163   : > { %4793 = vrcp.f32 %v2015_v54  ;;  %v1889_v33 = vadd.f32 %v1757_v35, %v1569_v58  ;;  %v1762_v11 = vpop.xlane.xlu1 %1761  ;;  %4488 = vmatpush3.bf16.msra.mxu0 %v4784_v24 }
 0x164   : > { %v6109_v17 = vld [vmem:[#allocation3 + $0x8] sm:$0xff] }
 0x165   : > { %v2016_v46 = vmax.f32 %v6109_v17, 1.0  ;;  %1922 = vst.msk [vmem:[#allocation3 + $0x30] sm:$0xff] %vm472_vm0, %v1889_v33  ;;  %v6124_v63 = vld [vmem:[#allocation3 + $0x18] sm:$0xff]  ;;  %vm1984_vm2 = vcmp.gt.f32.partialorder %v6109_v17, 0.0  ;;  %v4785_v17 = vld [vmem:[%s5482_s24 + $0x60] sm:$0xff]  }
 0x166   : > { %1443 = vmatmul.mubr.bf16.gmra.mrb[68].mxu1 %v3899_v55  ;;  %v1890_v55 = vadd.f32 %v1762_v11, %v1570_v48  ;;  %v1767_v38 = vpop.xlane.xlu0 %1766  ;;  %v2018_v20 = vmax.f32 %v6124_v63, 1.0  ;;  %vm1986_vm4 = vcmp.gt.f32.partialorder %v6124_v63, 0.0  ;;  %4473 = vmatprep.mubr.bf16.mxu0 %v4785_v17 }
 0x167   : > { %1450 = vmatprep.mubr.bf16.mxu1 %v3904_v5  ;;  %4795 = vrcp.f32 %v2016_v46  ;;  %v1891_v5 = vadd.f32 %v1767_v38, %v1571_v59  ;;  %v4787_v59 = vld [vmem:[#allocation10 + $0x20] sm:$0xff]  }
 0x168   : > { %4797 = vrcp.f32 %v2017_v25  ;;  %v6127_v47 = vld [vmem:[#allocation3 + $0x20] sm:$0xff]  ;;  %1923 = vst.msk [vmem:[#allocation3 + $0x38] sm:$0xff] %vm472_vm0, %v1890_v55  ;;  %v1578_v25 = vld [vmem:[#allocation3 + $0x78] sm:$0xff]  ;;  %4489 = vmatprep.subr.bf16.mxu0 %v4787_v59 }
 0x169   : > { %v2019_v32 = vmax.f32 %v6127_v47, 1.0  ;;  %4799 = vrcp.f32 %v2018_v20  ;;  %1924 = vst.msk [vmem:[#allocation3 + $0x40] sm:$0xff] %vm472_vm0, %v1891_v5  ;;  %v1772_v23 = vpop.xlane.xlu1 %1771  ;;  %v6133_v8 = vld [vmem:[#allocation3 + $0x28] sm:$0xff]  ;;  %vm1987_vm5 = vcmp.gt.f32.partialorder %v6127_v47, 0.0  ;;  %4474 = vmatmul.mubr.bf16.gmra.mrb[56].mxu0 %v4786_v10  ;;  %v7061_v47 = vcombine.low %v5863_v2, %v5882_v39  ;;  %v1583_v39 = vld [vmem:[#allocation3 + $0xa0] sm:$0xff] }
 0x16a   : > { %v1892_v37 = vadd.f32 %v1772_v23, %v1572_v56  ;;  %v1777_v27 = vpop.xlane.xlu0 %1776  ;;  %v2020_v52 = vmax.f32 %v6133_v8, 1.0  ;;  %4490 = vmatpush3.bf16.msra.mxu0 %v4787_v59  ;;  %v1580_v20 = vld [vmem:[#allocation3 + $0x88] sm:$0xff]  ;;  %vm1988_vm6 = vcmp.gt.f32.partialorder %v6133_v8, 0.0 }
 0x16b   : > { %v1893_v26 = vadd.f32 %v1777_v27, %v1573_v36  ;;  %4801 = vrcp.f32 %v2019_v32  ;;  %v4788_v32 = vld [vmem:[#allocation10 + $0x28] sm:$0xff]   ;;  %v1581_v36 = vld [vmem:[#allocation3 + $0x90] sm:$0xff] }
 0x16c   : > { %1925 = vst.msk [vmem:[#allocation3 + $0x48] sm:$0xff] %vm472_vm0, %v1892_v37  ;;  %v6146_v41 = vld [vmem:[#allocation3 + $0x30] sm:$0xff]  ;;  %4803 = vrcp.f32 %v2020_v52  ;;  %4491 = vmatprep.subr.bf16.mxu0 %v4788_v32 }
 0x16d   : > { %v4794_v21 = vpop.eup %4793  ;;  %1926 = vst.msk [vmem:[#allocation3 + $0x50] sm:$0xff] %vm472_vm0, %v1893_v26  ;;  %v2021_v54 = vmax.f32 %v6146_v41, 1.0  ;;  %v4789_v37 = vld [vmem:[%s5482_s24 + $0x70] sm:$0xff]   ;;  %v4790_v26 = vld [vmem:[%s5482_s24 + $0x78] sm:$0xff]   ;;  %vm1989_vm7 = vcmp.gt.f32.partialorder %v6146_v41, 0.0 }
 0x16e   : > { %1451 = vmatmul.mubr.bf16.gmra.mrb[72].mxu1 %v3903_v30  ;;  %v2111_v1 = vsel %vm1983_vm1, %v4794_v21, 0.0  ;;  %v1782_v12 = vpop.xlane.xlu1 %1781  ;;  %4492 = vmatpush3.bf16.msra.mxu0 %v4788_v32 }
 0x16f   : > { %1458 = vmatprep.mubr.bf16.mxu1 %v3908_v16  ;;  %2177 = vperm.xlu0 %4683, %v2111_v1   ;;  %v1894_v42 = vadd.f32 %v1782_v12, %v1574_v28  ;;  %v1787_v44 = vpop.xlane.xlu0 %1786  ;;  %v6154_v4 = vld [vmem:[#allocation3 + $0x38] sm:$0xff]  ;;  %4805 = vrcp.f32 %v2021_v54  ;;  %v7062_v28 = vcombine.high %v7047_v45, %v5895_v60  ;;  %v1584_v54 = vld [vmem:[#allocation3 + $0xa8] sm:$0xff] }
 0x170   : > { %v1895_v13 = vadd.f32 %v1787_v44, %v1575_v31  ;;  %v2022_v33 = vmax.f32 %v6154_v4, 1.0  ;;  %v1582_v31 = vld [vmem:[#allocation3 + $0x98] sm:$0xff]  ;;  %4477 = vmatprep.mubr.bf16.mxu0 %v4789_v37  ;;  %vm1990_vm9 = vcmp.gt.f32.partialorder %v6154_v4, 0.0 }
 0x171   : > { %v4796_v30 = vpop.eup %4795  ;;  %1927 = vst.msk [vmem:[#allocation3 + $0x58] sm:$0xff] %vm472_vm0, %v1894_v42  ;;  %4478 = vmatmul.mubr.bf16.gmra.mrb[60].mxu0 %v4790_v26 }
 0x172   : > { %v4798_v16 = vpop.eup %4797  ;;  %v2112_v57 = vsel %vm1984_vm2, %v4796_v30, 0.0  ;;  %1928 = vst.msk [vmem:[#allocation3 + $0x60] sm:$0xff] %vm472_vm0, %v1895_v13 }
 0x173   : > { %2182 = vperm.xlu1 %4684, %v2112_v57   ;;  %v2113_v7 = vsel %vm1985_vm3, %v4798_v16, 0.0  ;;  %v1792_v58 = vpop.xlane.xlu1 %1791  ;;  %v4800_v46 = vpop.eup %4799  ;;  %v6167_v48 = vld [vmem:[#allocation3 + $0x48] sm:$0xff]  ;;  %v4791_v16 = vld [vmem:[#allocation10 + $0x30] sm:$0xff]  }
 0x174   : > { %v1896_v14 = vadd.f32 %v1792_v58, %v1576_v19  ;;  %v2114_v43 = vsel %vm1986_vm4, %v4800_v46, 0.0  ;;  %v2024_v11 = vmax.f32 %v6167_v48, 1.0  ;;  %v6183_v21 = vld [vmem:[#allocation3 + $0x50] sm:$0xff]  ;;  %4493 = vmatprep.subr.bf16.mxu0 %v4791_v16  ;;  %vm1992_vm8 = vcmp.gt.f32.partialorder %v6167_v48, 0.0  ;;  %v4792_v58 = vld [vmem:[#allocation10 + $0x38] sm:$0xff]  }
 0x175   : > { %v1797_v6 = vpop.xlane.xlu0 %1796  ;;  %v2025_v30 = vmax.f32 %v6183_v21, 1.0  ;;  %4494 = vmatpush3.bf16.msra.mxu0 %v4791_v16  ;;  %vm1993_vm13 = vcmp.gt.f32.partialorder %v6183_v21, 0.0  ;;  %v1591_v16 = vld [vmem:[#allocation3 + $0xe0] sm:$0xff] }
 0x176   : > { %1459 = vmatmul.mubr.bf16.gmra.mrb[76].mxu1 %v3907_v53  ;;  %v1897_v35 = vadd.f32 %v1797_v6, %v1577_v29  ;;  %1929 = vst.msk [vmem:[#allocation3 + $0x68] sm:$0xff] %vm472_vm0, %v1896_v14  ;;  %v6172_v53 = vld [vmem:[#allocation3 + $0x40] sm:$0xff]  ;;  %4807 = vrcp.f32 %v2024_v11  ;;  %v1585_v14 = vld [vmem:[#allocation3 + $0xb0] sm:$0xff]  ;;  %4495 = vmatprep.subr.bf16.mxu0 %v4792_v58 }
 0x177   : > { %2187 = vperm.xlu1 %4684, %v2113_v7   ;;  %1466 = vmatprep.mubr.bf16.mxu1 %v3912_v49  ;;  %v4802_v49 = vpop.eup %4801  ;;  %v1802_v62 = vpop.xlane.xlu1 %1801  ;;  %4809 = vrcp.f32 %v2022_v33  ;;  %v2023_v5 = vmax.f32 %v6172_v53, 1.0  ;;  %vm1991_vm11 = vcmp.gt.f32.partialorder %v6172_v53, 0.0  ;;  %v7063_v53 = vcombine.low %v5905_v61, %v5917_v34 }
 0x178   : > { %1930 = vst.msk [vmem:[#allocation3 + $0x70] sm:$0xff] %vm472_vm0, %v1897_v35  ;;  %v1898_v55 = vadd.f32 %v1802_v62, %v1578_v25  ;;  %v6178_v56 = vld [vmem:[#allocation3 + $0x58] sm:$0xff]  ;;  %v2115_v50 = vsel %vm1987_vm5, %v4802_v49, 0.0  ;;  %v4804_v3 = vpop.eup %4803 }
 0x179   : > { %v1807_v38 = vpop.xlane.xlu0 %1806  ;;  %v2026_v23 = vmax.f32 %v6178_v56, 1.0  ;;  %v2116_v2 = vsel %vm1988_vm6, %v4804_v3, 0.0  ;;  %v6202_v57 = vld [vmem:[#allocation3 + $0x60] sm:$0xff]  ;;  %v4806_v44 = vpop.eup %4805  ;;  %vm1994_vm10 = vcmp.gt.f32.partialorder %v6178_v56, 0.0  ;;  %4496 = vmatpush3.bf16.msra.mxu0 %v4792_v58  ;;  %v1589_v56 = vld [vmem:[#allocation3 + $0xd0] sm:$0xff] }
 0x17a   : > { %v1899_v63 = vadd.f32 %v1807_v38, %v1579_v18  ;;  %1931 = vst.msk [vmem:[#allocation3 + $0x78] sm:$0xff] %vm472_vm0, %v1898_v55  ;;  %v2027_v7 = vmax.f32 %v6202_v57, 1.0  ;;  %v2117_v46 = vsel %vm1989_vm7, %v4806_v44, 0.0  ;;  %v1586_v18 = vld [vmem:[#allocation3 + $0xb8] sm:$0xff]  ;;  %vm1995_vm15 = vcmp.gt.f32.partialorder %v6202_v57, 0.0 }
 0x17b   : > { %2192 = vperm.xlu1 %4684, %v2114_v43   ;;  %v1812_v40 = vpop.xlane.xlu1 %1811  ;;  %4811 = vrcp.f32 %v2026_v23 }
 0x17c   : > { %1932 = vst.msk [vmem:[#allocation3 + $0x80] sm:$0xff] %vm472_vm0, %v1899_v63  ;;  %v1900_v27 = vadd.f32 %v1812_v40, %v1580_v20  ;;  %4813 = vrcp.f32 %v2023_v5  ;;  %v1588_v5 = vld [vmem:[#allocation3 + $0xc8] sm:$0xff] }
 0x17d   : > { %v1817_v1 = vpop.xlane.xlu0 %1816  ;;  %v6197_v12 = vld [vmem:[#allocation3 + $0x68] sm:$0xff] }
 0x17e   : > { %1467 = vmatmul.mubr.bf16.gmra.mrb[80].mxu1 %v7061_v47  ;;  %v1901_v52 = vadd.f32 %v1817_v1, %v1581_v36  ;;  %1933 = vst.msk [vmem:[#allocation3 + $0x88] sm:$0xff] %vm472_vm0, %v1900_v27  ;;  %v2028_v42 = vmax.f32 %v6197_v12, 1.0  ;;  %vm1996_vm12 = vcmp.gt.f32.partialorder %v6197_v12, 0.0 }
 0x17f   : > { %2197 = vperm.xlu1 %4684, %v2115_v50   ;;  %1474 = vmatprep.mubr.bf16.mxu1 %v7062_v28  ;;  %v1822_v24 = vpop.xlane.xlu1 %1821  ;;  %v6214_v6 = vld [vmem:[#allocation3 + $0x70] sm:$0xff]  ;;  %v7064_v28 = vcombine.high %v5932_v51, %v5940_v0 }
 0x180   : > { %1934 = vst.msk [vmem:[#allocation3 + $0x90] sm:$0xff] %vm472_vm0, %v1901_v52  ;;  %v1902_v13 = vadd.f32 %v1822_v24, %v1582_v31  ;;  %4815 = vrcp.f32 %v2028_v42  ;;  %v4808_v17 = vpop.eup %4807  ;;  %v2029_v48 = vmax.f32 %v6214_v6, 1.0  ;;  %v1590_v31 = vld [vmem:[#allocation3 + $0xd8] sm:$0xff]  ;;  %vm1997_vm2 = vcmp.gt.f32.partialorder %v6214_v6, 0.0 }
 0x181   : > { %v1827_v19 = vpop.xlane.xlu0 %1826  ;;  %4817 = vrcp.f32 %v2025_v30  ;;  %v6209_v29 = vld [vmem:[#allocation3 + $0x78] sm:$0xff]  ;;  %v4810_v35 = vpop.eup %4809  ;;  %v2120_v33 = vsel %vm1992_vm8, %v4808_v17, 0.0 }
 0x182   : > { %v1903_v8 = vadd.f32 %v1827_v19, %v1583_v39  ;;  %1935 = vst.msk [vmem:[#allocation3 + $0x98] sm:$0xff] %vm472_vm0, %v1902_v13  ;;  %v2030_v10 = vmax.f32 %v6209_v29, 1.0  ;;  %2222 = vperm.xlu0 %4683, %v2120_v33   ;;  %v2118_v45 = vsel %vm1990_vm9, %v4810_v35, 0.0  ;;  %vm1998_vm14 = vcmp.gt.f32.partialorder %v6209_v29, 0.0  ;;  %v1593_v29 = vld [vmem:[#allocation3 + $0xf0] sm:$0xff] }
 0x183   : > { %2202 = vperm.xlu1 %4684, %v2116_v2   ;;  %v1832_v25 = vpop.xlane.xlu1 %1831  ;;  %v6234_v49 = vld [vmem:[#allocation3 + $0x80] sm:$0xff] }
 0x184   : > { %1936 = vst.msk [vmem:[#allocation3 + $0xa0] sm:$0xff] %vm472_vm0, %v1903_v8  ;;  %v1904_v41 = vadd.f32 %v1832_v25, %v1584_v54  ;;  %4819 = vrcp.f32 %v2030_v10  ;;  %v2031_v32 = vmax.f32 %v6234_v49, 1.0  ;;  %v1592_v8 = vld [vmem:[#allocation3 + $0xe8] sm:$0xff]  ;;  %vm1999_vm4 = vcmp.gt.f32.partialorder %v6234_v49, 0.0 }
 0x185   : > { %v1837_v59 = vpop.xlane.xlu0 %1836  ;;  %4821 = vrcp.f32 %v2027_v7  ;;  %v6229_v11 = vld [vmem:[#allocation3 + $0x88] sm:$0xff]  ;;  %v4812_v60 = vpop.eup %4811 }
 0x186   : > { %1475 = vmatmul.mubr.bf16.gmra.mrb[84].mxu1 %v3915_v22  ;;  %v1905_v43 = vadd.f32 %v1837_v59, %v1585_v14  ;;  %1937 = vst.msk [vmem:[#allocation3 + $0xa8] sm:$0xff] %vm472_vm0, %v1904_v41  ;;  %v1587_v22 = vld [vmem:[#allocation3 + $0xc0] sm:$0xff]  ;;  %v2032_v62 = vmax.f32 %v6229_v11, 1.0  ;;  %v2122_v38 = vsel %vm1994_vm10, %v4812_v60, 0.0  ;;  %vm2000_vm1 = vcmp.gt.f32.partialorder %v6229_v11, 0.0  ;;  %v1594_v59 = vld [vmem:[#allocation3 + $0xf8] sm:$0xff] }
 0x187   : > { %2207 = vperm.xlu1 %4684, %v2117_v46   ;;  %1482 = vmatprep.mubr.bf16.mxu1 %v3920_v9  ;;  %v4814_v9 = vpop.eup %4813  ;;  %v1842_v55 = vpop.xlane.xlu1 %1841  ;;  %v6248_v3 = vld [vmem:[#allocation3 + $0x90] sm:$0xff] }
 0x188   : > { %1938 = vst.msk [vmem:[#allocation3 + $0xb0] sm:$0xff] %vm472_vm0, %v1905_v43  ;;  %v1906_v63 = vadd.f32 %v1842_v55, %v1586_v18  ;;  %2232 = vperm.xlu0 %4683, %v2122_v38   ;;  %4823 = vrcp.f32 %v2032_v62  ;;  %v2119_v23 = vsel %vm1991_vm11, %v4814_v9, 0.0  ;;  %v2033_v30 = vmax.f32 %v6248_v3, 1.0 }
 0x189   : > { %v1847_v4 = vpop.xlane.xlu0 %1846  ;;  %4825 = vrcp.f32 %v2029_v48  ;;  %v6243_v50 = vld [vmem:[#allocation3 + $0x98] sm:$0xff]  ;;  %vm2001_vm6 = vcmp.gt.f32.partialorder %v6248_v3, 0.0 }
 0x18a   : > { %v1907_v20 = vadd.f32 %v1847_v4, %v1587_v22  ;;  %v4816_v36 = vpop.eup %4815  ;;  %1939 = vst.msk [vmem:[#allocation3 + $0xb8] sm:$0xff] %vm472_vm0, %v1906_v63  ;;  %v2034_v40 = vmax.f32 %v6243_v50, 1.0  ;;  %vm2002_vm3 = vcmp.gt.f32.partialorder %v6243_v50, 0.0 }
 0x18b   : > { %2212 = vperm.xlu1 %4684, %v2118_v45   ;;  %v4818_v37 = vpop.eup %4817  ;;  %v1852_v47 = vpop.xlane.xlu1 %1851  ;;  %v2124_v27 = vsel %vm1996_vm12, %v4816_v36, 0.0  ;;  %v6268_v2 = vld [vmem:[#allocation3 + $0xa0] sm:$0xff] }
 0x18c   : > { %1940 = vst.msk [vmem:[#allocation3 + $0xc0] sm:$0xff] %vm472_vm0, %v1907_v20  ;;  %v1908_v1 = vadd.f32 %v1852_v47, %v1588_v5  ;;  %2242 = vperm.xlu0 %4683, %v2124_v27   ;;  %4827 = vrcp.f32 %v2034_v40  ;;  %v2121_v34 = vsel %vm1993_vm13, %v4818_v37, 0.0  ;;  %v2035_v54 = vmax.f32 %v6268_v2, 1.0 }
 0x18d   : > { %v1857_v26 = vpop.xlane.xlu0 %1856  ;;  %4829 = vrcp.f32 %v2031_v32  ;;  %v6263_v12 = vld [vmem:[#allocation3 + $0xa8] sm:$0xff] }
 0x18e   : > { %1483 = vmatmul.mubr.bf16.gmra.mrb[88].mxu1 %v7063_v53  ;;  %v1909_v52 = vadd.f32 %v1857_v26, %v1589_v56  ;;  %v4820_v61 = vpop.eup %4819  ;;  %1941 = vst.msk [vmem:[#allocation3 + $0xc8] sm:$0xff] %vm472_vm0, %v1908_v1  ;;  %v2036_v39 = vmax.f32 %v6263_v12, 1.0  ;;  %vm2004_vm5 = vcmp.gt.f32.partialorder %v6263_v12, 0.0 }
 0x18f   : > { %2217 = vperm.xlu1 %4684, %v2119_v23   ;;  %1490 = vmatprep.mubr.bf16.mxu1 %v7064_v28  ;;  %v4822_v42 = vpop.eup %4821  ;;  %v1862_v44 = vpop.xlane.xlu1 %1861  ;;  %v2126_v24 = vsel %vm1998_vm14, %v4820_v61, 0.0  ;;  %v6282_v46 = vld [vmem:[#allocation3 + $0xb0] sm:$0xff] }
 0x190   : > { %1942 = vst.msk [vmem:[#allocation3 + $0xd0] sm:$0xff] %vm472_vm0, %v1909_v52  ;;  %v1910_v13 = vadd.f32 %v1862_v44, %v1590_v31  ;;  %2252 = vperm.xlu0 %4683, %v2126_v24   ;;  %4831 = vrcp.f32 %v2036_v39  ;;  %v2123_v17 = vsel %vm1995_vm15, %v4822_v42, 0.0  ;;  %v2037_v43 = vmax.f32 %v6282_v46, 1.0 }
 0x191   : > { %v1867_v21 = vpop.xlane.xlu0 %1866  ;;  %4833 = vrcp.f32 %v2033_v30  ;;  %v6277_v7 = vld [vmem:[#allocation3 + $0xb8] sm:$0xff]  ;;  %vm2005_vm9 = vcmp.gt.f32.partialorder %v6282_v46, 0.0 }
 0x192   : > { %v1911_v19 = vadd.f32 %v1867_v21, %v1591_v16  ;;  %v4824_v58 = vpop.eup %4823  ;;  %1943 = vst.msk [vmem:[#allocation3 + $0xd8] sm:$0xff] %vm472_vm0, %v1910_v13  ;;  %v2038_v14 = vmax.f32 %v6277_v7, 1.0  ;;  %vm2006_vm7 = vcmp.gt.f32.partialorder %v6277_v7, 0.0 }
 0x193   : > { %2227 = vperm.xlu1 %4684, %v2121_v34   ;;  %v4826_v10 = vpop.eup %4825  ;;  %v1872_v35 = vpop.xlane.xlu1 %1871  ;;  %v2128_v25 = vsel %vm2000_vm1, %v4824_v58, 0.0  ;;  %v6297_v51 = vld [vmem:[#allocation3 + $0xc0] sm:$0xff] }
 0x194   : > { %1944 = vst.msk [vmem:[#allocation3 + $0xe0] sm:$0xff] %vm472_vm0, %v1911_v19  ;;  %v1912_v57 = vadd.f32 %v1872_v35, %v1592_v8  ;;  %2262 = vperm.xlu0 %4683, %v2128_v25   ;;  %4835 = vrcp.f32 %v2038_v14  ;;  %v2125_v11 = vsel %vm1997_vm2, %v4826_v10, 0.0  ;;  %v2039_v6 = vmax.f32 %v6297_v51, 1.0 }
 0x195   : > { %v1877_v33 = vpop.xlane.xlu0 %1876  ;;  %4837 = vrcp.f32 %v2035_v54  ;;  %v1976_v18 = vld [vmem:[#allocation3 + $0xc8] sm:$0xff]  ;;  %vm2007_vm11 = vcmp.gt.f32.partialorder %v6297_v51, 0.0 }
 0x196   : > { %1491 = vmatmul.mubr.bf16.gmra.mrb[92].mxu1 %v3923_v15  ;;  %v1913_v41 = vadd.f32 %v1877_v33, %v1593_v29  ;;  %v4828_v48 = vpop.eup %4827  ;;  %1945 = vst.msk [vmem:[#allocation3 + $0xe8] sm:$0xff] %vm472_vm0, %v1912_v57  ;;  %v2040_v0 = vmax.f32 %v1976_v18, 1.0  ;;  %vm2008_vm8 = vcmp.gt.f32.partialorder %v1976_v18, 0.0 }
 0x197   : > { %2237 = vperm.xlu1 %4684, %v2123_v17   ;;  %v4830_v15 = vpop.eup %4829  ;;  %v1882_v60 = vpop.xlane.xlu1 %1881  ;;  %v2130_v45 = vsel %vm2002_vm3, %v4828_v48, 0.0  ;;  %v1977_v49 = vld [vmem:[#allocation3 + $0xd0] sm:$0xff] }
 0x198   : > { %1946 = vst.msk [vmem:[#allocation3 + $0xf0] sm:$0xff] %vm472_vm0, %v1913_v41  ;;  %v1914_v22 = vadd.f32 %v1882_v60, %v1594_v59  ;;  %2272 = vperm.xlu0 %4683, %v2130_v45   ;;  %4839 = vrcp.f32 %v2040_v0  ;;  %v2127_v55 = vsel %vm1999_vm4, %v4830_v15, 0.0  ;;  %v2041_v20 = vmax.f32 %v1977_v49, 1.0 }
 0x199   : > { %4841 = vrcp.f32 %v2037_v43  ;;  %v1978_v62 = vld [vmem:[#allocation3 + $0xd8] sm:$0xff]  ;;  %vm2009_vm13 = vcmp.gt.f32.partialorder %v1977_v49, 0.0 }
 0x19a   : > { %v4832_v9 = vpop.eup %4831  ;;  %1947 = vst.msk [vmem:[#allocation3 + $0xf8] sm:$0xff] %vm472_vm0, %v1914_v22  ;;  %v2042_v38 = vmax.f32 %v1978_v62, 1.0  ;;  %vm2003_vm0 = vcmp.gt.f32.partialorder %v6268_v2, 0.0  ;;  %vm2010_vm10 = vcmp.gt.f32.partialorder %v1978_v62, 0.0 }
 0x19b   : > { %2247 = vperm.xlu1 %4684, %v2125_v11   ;;  %v4834_v63 = vpop.eup %4833  ;;  %v2132_v4 = vsel %vm2004_vm5, %v4832_v9, 0.0  ;;  %v1979_v36 = vld [vmem:[#allocation3 + $0xe0] sm:$0xff] }
 0x19c   : > { %2282 = vperm.xlu0 %4683, %v2132_v4   ;;  %4843 = vrcp.f32 %v2042_v38  ;;  %v2129_v50 = vsel %vm2001_vm6, %v4834_v63, 0.0  ;;  %v2043_v3 = vmax.f32 %v1979_v36, 1.0  ;;  %vm2011_vm15 = vcmp.gt.f32.partialorder %v1979_v36, 0.0 }
 0x19d   : > { %4845 = vrcp.f32 %v2039_v6  ;;  %v1980_v5 = vld [vmem:[#allocation3 + $0xe8] sm:$0xff] }
 0x19e   : > { %v4836_v32 = vpop.eup %4835  ;;  %v2044_v23 = vmax.f32 %v1980_v5, 1.0  ;;  %vm2012_vm12 = vcmp.gt.f32.partialorder %v1980_v5, 0.0 }
 0x19f   : > { %2257 = vperm.xlu1 %4684, %v2127_v55   ;;  %v4838_v56 = vpop.eup %4837  ;;  %v2134_v40 = vsel %vm2006_vm7, %v4836_v32, 0.0  ;;  %v1981_v53 = vld [vmem:[#allocation3 + $0xf0] sm:$0xff] }
 0x1a0   : > { %2292 = vperm.xlu0 %4683, %v2134_v40   ;;  %4847 = vrcp.f32 %v2044_v23  ;;  %v2131_v27 = vsel %vm2003_vm0, %v4838_v56, 0.0  ;;  %v2045_v52 = vmax.f32 %v1981_v53, 1.0  ;;  %vm2013_vm1 = vcmp.gt.f32.partialorder %v1981_v53, 0.0 }
 0x1a1   : > { %4849 = vrcp.f32 %v2041_v20  ;;  %v1982_v37 = vld [vmem:[#allocation3 + $0xf8] sm:$0xff] }
 0x1a2   : > { %v4840_v47 = vpop.eup %4839  ;;  %v2046_v1 = vmax.f32 %v1982_v37, 1.0  ;;  %vm2014_vm14 = vcmp.gt.f32.partialorder %v1982_v37, 0.0 }
 0x1a3   : > { %2267 = vperm.xlu1 %4684, %v2129_v50   ;;  %v4842_v26 = vpop.eup %4841  ;;  %v2136_v28 = vsel %vm2008_vm8, %v4840_v47, 0.0 }
 0x1a4   : > { %2302 = vperm.xlu0 %4683, %v2136_v28   ;;  %4851 = vrcp.f32 %v2046_v1  ;;  %v2133_v30 = vsel %vm2005_vm9, %v4842_v26, 0.0 }
 0x1a5   : > { %4853 = vrcp.f32 %v2043_v3 }
 0x1a6   : > { %v4844_v31 = vpop.eup %4843  ;;  %4855 = vrcp.f32 %v2045_v52 }
 0x1a7   : > { %2277 = vperm.xlu1 %4684, %v2131_v27   ;;  %v4846_v12 = vpop.eup %4845  ;;  %v2138_v61 = vsel %vm2010_vm10, %v4844_v31, 0.0 }
 0x1a8   : > { %2312 = vperm.xlu0 %4683, %v2138_v61   ;;  %v2135_v16 = vsel %vm2007_vm11, %v4846_v12, 0.0 }
 0x1aa   : > { %v4848_v34 = vpop.eup %4847 }
 0x1ab   : > { %2287 = vperm.xlu1 %4684, %v2133_v30   ;;  %v4850_v2 = vpop.eup %4849  ;;  %v2140_v39 = vsel %vm2012_vm12, %v4848_v34, 0.0 }
 0x1ac   : > { %2322 = vperm.xlu0 %4683, %v2140_v39   ;;  %v2137_v44 = vsel %vm2009_vm13, %v4850_v2, 0.0 }
 0x1ae   : > { %v4852_v42 = vpop.eup %4851 }
 0x1af   : > { %2297 = vperm.xlu1 %4684, %v2135_v16   ;;  %v4854_v24 = vpop.eup %4853  ;;  %v2142_v21 = vsel %vm2014_vm14, %v4852_v42, 0.0 }
 0x1b0   : > { %2332 = vperm.xlu0 %4683, %v2142_v21   ;;  %v2139_v7 = vsel %vm2011_vm15, %v4854_v24, 0.0  ;;  %v4856_v29 = vpop.eup %4855 }
 0x1b1   : > { %v4225_v13 = vpop.f32.mrb[0].mxu1  ;;  %v4177_v17 = vpop.f32.mrb[0].mxu0  ;;  %v2141_v57 = vsel %vm2013_vm1, %v4856_v29, 0.0 }
 0x1b2   : > { %v4226_v19 = vpop.f32.mrb[1].mxu1  ;;  %v4178_v14 = vpop.f32.mrb[1].mxu0 }
 0x1b3   : > { %2307 = vperm.xlu1 %4684, %v2137_v44   ;;  %v6311_v8 = vadd.f32 %v4226_v19, %v4225_v13  ;;  %v4228_v54 = vpop.f32.mrb[2].mxu1  ;;  %v6315_v10 = vadd.f32 %v4178_v14, %v4177_v17  ;;  %v4180_v35 = vpop.f32.mrb[2].mxu0 }
 0x1b4   : > { %v4229_v58 = vpop.f32.mrb[3].mxu1  ;;  %v4181_v25 = vpop.f32.mrb[3].mxu0 }
 0x1b5   : > { %v6313_v46 = vadd.f32 %v4229_v58, %v4228_v54  ;;  %v6317_v33 = vadd.f32 %v4181_v25, %v4180_v35 }
 0x1b7   : > { %2317 = vperm.xlu1 %4684, %v2139_v7  }
 0x1b9   : > { %v4231_v41 = vpop.f32.mrb[4].mxu1 }
 0x1ba   : > { %v4232_v59 = vpop.f32.mrb[5].mxu1 }
 0x1bb   : > { %2327 = vperm.xlu1 %4684, %v2141_v57   ;;  %v6319_v43 = vadd.f32 %v4232_v59, %v4231_v41  ;;  %v4234_v18 = vpop.f32.mrb[6].mxu1 }
 0x1bc   : > { %v4235_v48 = vpop.f32.mrb[7].mxu1 }
 0x1bd   : > { %v4183_v11 = vpop.f32.mrb[4].mxu0  ;;  %v6321_v51 = vadd.f32 %v4235_v48, %v4234_v18 }
 0x1be   : > { %v4184_v0 = vpop.f32.mrb[5].mxu0 }
 0x1bf   : > { %v6323_v15 = vadd.f32 %v4184_v0, %v4183_v11  ;;  %v4186_v60 = vpop.f32.mrb[6].mxu0 }
 0x1c0   : > { %v4187_v45 = vpop.f32.mrb[7].mxu0 }
 0x1c1   : > { %v6325_v22 = vadd.f32 %v4187_v45, %v4186_v60  ;;  %v4237_v6 = vpop.f32.mrb[8].mxu1 }
 0x1c2   : > { %v4238_v62 = vpop.f32.mrb[9].mxu1 }
 0x1c3   : > { %v6327_v9 = vadd.f32 %v4238_v62, %v4237_v6  ;;  %v4240_v55 = vpop.f32.mrb[10].mxu1 }
 0x1c4   : > { %v4241_v49 = vpop.f32.mrb[11].mxu1 }
 0x1c5   : > { %v4189_v38 = vpop.f32.mrb[8].mxu0  ;;  %v6329_v63 = vadd.f32 %v4241_v49, %v4240_v55 }
 0x1c6   : > { %v4190_v4 = vpop.f32.mrb[9].mxu0 }
 0x1c7   : > { %v6331_v20 = vadd.f32 %v4190_v4, %v4189_v38  ;;  %v4192_v5 = vpop.f32.mrb[10].mxu0 }
 0x1c8   : > { %v4193_v32 = vpop.f32.mrb[11].mxu0 }
 0x1c9   : > { %v6333_v50 = vadd.f32 %v4193_v32, %v4192_v5  ;;  %v4243_v36 = vpop.f32.mrb[12].mxu1 }
 0x1ca   : > { %v4244_v23 = vpop.f32.mrb[13].mxu1 }
 0x1cb   : > { %v6335_v56 = vadd.f32 %v4244_v23, %v4243_v36  ;;  %v4246_v40 = vpop.f32.mrb[14].mxu1 }
 0x1cc   : > { %v4247_v3 = vpop.f32.mrb[15].mxu1 }
 0x1cd   : > { %v6337_v37 = vadd.f32 %v4247_v3, %v4246_v40 }
 0x1d1   : > { %v4249_v47 = vpop.f32.mrb[16].mxu1 }
 0x1d2   : > { %v4250_v27 = vpop.f32.mrb[17].mxu1 }
 0x1d3   : > { %v6339_v53 = vadd.f32 %v4250_v27, %v4249_v47  ;;  %v4252_v1 = vpop.f32.mrb[18].mxu1 }
 0x1d4   : > { %v4253_v26 = vpop.f32.mrb[19].mxu1 }
 0x1d5   : > { %v6341_v28 = vadd.f32 %v4253_v26, %v4252_v1 }
 0x1d7   : > { %v4195_v52 = vpop.f32.mrb[12].mxu0 }
 0x1d8   : > { %v4196_v30 = vpop.f32.mrb[13].mxu0 }
 0x1d9   : > { %v4255_v31 = vpop.f32.mrb[20].mxu1  ;;  %v6343_v61 = vadd.f32 %v4196_v30, %v4195_v52  ;;  %v4198_v34 = vpop.f32.mrb[14].mxu0 }
 0x1da   : > { %v4256_v12 = vpop.f32.mrb[21].mxu1  ;;  %v4199_v39 = vpop.f32.mrb[15].mxu0 }
 0x1db   : > { %v6345_v16 = vadd.f32 %v4256_v12, %v4255_v31  ;;  %v4258_v2 = vpop.f32.mrb[22].mxu1  ;;  %v6347_v44 = vadd.f32 %v4199_v39, %v4198_v34 }
 0x1dc   : > { %v4259_v42 = vpop.f32.mrb[23].mxu1 }
 0x1dd   : > { %v6349_v24 = vadd.f32 %v4259_v42, %v4258_v2 }
 0x1df   : > { %v4201_v13 = vpop.f32.mrb[16].mxu0 }
 0x1e0   : > { %v4202_v19 = vpop.f32.mrb[17].mxu0 }
 0x1e1   : > { %v4261_v21 = vpop.f32.mrb[24].mxu1  ;;  %v6351_v7 = vadd.f32 %v4202_v19, %v4201_v13  ;;  %v4204_v58 = vpop.f32.mrb[18].mxu0 }
 0x1e2   : > { %v4262_v54 = vpop.f32.mrb[25].mxu1  ;;  %v4205_v14 = vpop.f32.mrb[19].mxu0 }
 0x1e3   : > { %v6353_v17 = vadd.f32 %v4262_v54, %v4261_v21  ;;  %v4264_v29 = vpop.f32.mrb[26].mxu1  ;;  %v6355_v25 = vadd.f32 %v4205_v14, %v4204_v58 }
 0x1e4   : > { %v4265_v35 = vpop.f32.mrb[27].mxu1 }
 0x1e5   : > { %v6357_v57 = vadd.f32 %v4265_v35, %v4264_v29 }
 0x1e7   : > { %v4207_v41 = vpop.f32.mrb[20].mxu0 }
 0x1e8   : > { %v4208_v18 = vpop.f32.mrb[21].mxu0 }
 0x1e9   : > { %v4267_v59 = vpop.f32.mrb[28].mxu1  ;;  %v6359_v11 = vadd.f32 %v4208_v18, %v4207_v41  ;;  %v4210_v0 = vpop.f32.mrb[22].mxu0 }
 0x1ea   : > { %v4268_v48 = vpop.f32.mrb[29].mxu1  ;;  %v4211_v6 = vpop.f32.mrb[23].mxu0 }
 0x1eb   : > { %v6361_v60 = vadd.f32 %v4268_v48, %v4267_v59  ;;  %v4270_v45 = vpop.f32.mrb[30].mxu1  ;;  %v6363_v55 = vadd.f32 %v4211_v6, %v4210_v0 }
 0x1ec   : > { %v4271_v62 = vpop.f32.mrb[31].mxu1 }
 0x1ed   : > { %v6365_v49 = vadd.f32 %v4271_v62, %v4270_v45 }
 0x1ee   : > { %v2178_v12 = vpop.permute.xlu0 %2177 }
 0x1ef   : > { %v4213_v38 = vpop.f32.mrb[24].mxu0 }
 0x1f0   : > { %v4214_v5 = vpop.f32.mrb[25].mxu0 }
 0x1f1   : > { %v4289_v4 = vpop.f32.mrb[32].mxu1  ;;  %v6367_v23 = vadd.f32 %v4214_v5, %v4213_v38  ;;  %v4216_v47 = vpop.f32.mrb[26].mxu0 }
 0x1f2   : > { %v2183_v32 = vpop.permute.xlu1 %2182  ;;  %v4290_v36 = vpop.f32.mrb[33].mxu1 }
 0x1f3   : > { %v4291_v40 = vadd.f32 %v4290_v36, %v4289_v4  ;;  %v4292_v3 = vpop.f32.mrb[34].mxu1  ;;  %v4217_v1 = vpop.f32.mrb[27].mxu0 }
 0x1f4   : > { %v4293_v27 = vpop.f32.mrb[35].mxu1  ;;  %v6370_v31 = vadd.f32 %v4217_v1, %v4216_v47 }
 0x1f5   : > { %v4294_v26 = vadd.f32 %v4293_v27, %v4292_v3  ;;  %v1373_v52 = vadd.f32 %v4291_v40, %v6315_v10 }
 0x1f6   : > { %v2188_v30 = vpop.permute.xlu1 %2187 }
 0x1f7   : > { %v1376_v34 = vadd.f32 %v4294_v26, %v6317_v33  ;;  %v4219_v2 = vpop.f32.mrb[28].mxu0  ;;  %v2335_v42 = vmul.f32 %v2178_v12, %v1373_v52 }
 0x1f8   : > { %v4220_v21 = vpop.f32.mrb[29].mxu0 }
 0x1f9   : > { %v2336_v39 = vmul.f32 %v2183_v32, %v1376_v34  ;;  %v4295_v13 = vpop.f32.mrb[36].mxu1  ;;  %v6373_v58 = vadd.f32 %v4220_v21, %v4219_v2  ;;  %v4222_v41 = vpop.f32.mrb[30].mxu0 }
 0x1fa   : > { %v2193_v19 = vpop.permute.xlu1 %2192  ;;  %v4296_v54 = vpop.f32.mrb[37].mxu1 }
 0x1fb   : > { %v2367_v29 = vpack.c.bf16 %v2336_v39, %v2335_v42  ;;  %v4297_v14 = vadd.f32 %v4296_v54, %v4295_v13  ;;  %v4298_v35 = vpop.f32.mrb[38].mxu1  ;;  %v4223_v59 = vpop.f32.mrb[31].mxu0 }
 0x1fc   : > { %v4299_v10 = vpop.f32.mrb[39].mxu1  ;;  %v6376_v33 = vadd.f32 %v4223_v59, %v4222_v41 }
 0x1fd   : > { %v1381_v18 = vadd.f32 %v4297_v14, %v6323_v15  ;;  %v4300_v48 = vadd.f32 %v4299_v10, %v4298_v35  ;;  %4497 = vmatprep.mubr.bf16.mxu0 %v2367_v29 }
 0x1fe   : > { %v2198_v0 = vpop.permute.xlu1 %2197 }
 0x1ff   : > { %v1384_v45 = vadd.f32 %v4300_v48, %v6325_v22  ;;  %v2337_v6 = vmul.f32 %v2188_v30, %v1381_v18 }
 0x201   : > { %v2338_v62 = vmul.f32 %v2193_v19, %v1384_v45  ;;  %v4301_v38 = vpop.f32.mrb[40].mxu1 }
 0x202   : > { %v4302_v4 = vpop.f32.mrb[41].mxu1  ;;  %v2203_v40 = vpop.permute.xlu1 %2202 }
 0x203   : > { %v2368_v5 = vpack.c.bf16 %v2338_v62, %v2337_v6  ;;  %v4303_v32 = vadd.f32 %v4302_v4, %v4301_v38  ;;  %v4304_v36 = vpop.f32.mrb[42].mxu1 }
 0x204   : > { %v4305_v3 = vpop.f32.mrb[43].mxu1 }
 0x205   : > { %v1389_v47 = vadd.f32 %v4303_v32, %v6331_v20  ;;  %v4306_v27 = vadd.f32 %v4305_v3, %v4304_v36  ;;  %4498 = vmatmul.mubr.bf16.vlgmr.msra.gmra.mrb[32].mxu0 %v2368_v5 }
 0x206   : > { %v2208_v12 = vpop.permute.xlu1 %2207 }
 0x207   : > { %v1392_v15 = vadd.f32 %v4306_v27, %v6333_v50  ;;  %v2339_v1 = vmul.f32 %v2198_v0, %v1389_v47  ;;  %v2223_v0 = vpop.permute.xlu0 %2222 }
 0x209   : > { %v2340_v26 = vmul.f32 %v2203_v40, %v1392_v15  ;;  %v4307_v52 = vpop.f32.mrb[44].mxu1 }
 0x20a   : > { %v4308_v22 = vpop.f32.mrb[45].mxu1  ;;  %v2213_v20 = vpop.permute.xlu1 %2212 }
 0x20b   : > { %v4309_v30 = vadd.f32 %v4308_v22, %v4307_v52  ;;  %v4310_v34 = vpop.f32.mrb[46].mxu1  ;;  %v2369_v2 = vpack.c.bf16 %v2340_v26, %v2339_v1  ;;  %v2233_v47 = vpop.permute.xlu0 %2232 }
 0x20c   : > { %v4311_v39 = vpop.f32.mrb[47].mxu1 }
 0x20d   : > { %v1397_v42 = vadd.f32 %v4309_v30, %v6343_v61  ;;  %v4312_v13 = vadd.f32 %v4311_v39, %v4310_v34  ;;  %4501 = vmatprep.mubr.bf16.mxu0 %v2369_v2 }
 0x20e   : > { %v2218_v61 = vpop.permute.xlu1 %2217 }
 0x20f   : > { %v1400_v21 = vadd.f32 %v4312_v13, %v6347_v44  ;;  %v2341_v19 = vmul.f32 %v2208_v12, %v1397_v42  ;;  %v2243_v39 = vpop.permute.xlu0 %2242 }
 0x211   : > { %v2342_v54 = vmul.f32 %v2213_v20, %v1400_v21  ;;  %v4313_v29 = vpop.f32.mrb[48].mxu1 }
 0x212   : > { %v4314_v50 = vpop.f32.mrb[49].mxu1  ;;  %v2228_v3 = vpop.permute.xlu1 %2227 }
 0x213   : > { %v4315_v14 = vadd.f32 %v4314_v50, %v4313_v29  ;;  %v4316_v35 = vpop.f32.mrb[50].mxu1  ;;  %v2370_v41 = vpack.c.bf16 %v2342_v54, %v2341_v19 }
 0x214   : > { %v4317_v10 = vpop.f32.mrb[51].mxu1 }
 0x215   : > { %v1405_v59 = vadd.f32 %v4315_v14, %v6351_v7  ;;  %v4318_v18 = vadd.f32 %v4317_v10, %v4316_v35  ;;  %4502 = vmatmul.mubr.bf16.gmra.mrb[36].mxu0 %v2370_v41  ;;  %v2253_v41 = vpop.permute.xlu0 %2252 }
 0x216   : > { %v2238_v2 = vpop.permute.xlu1 %2237 }
 0x217   : > { %v1408_v48 = vadd.f32 %v4318_v18, %v6355_v25  ;;  %v2343_v45 = vmul.f32 %v2218_v61, %v1405_v59 }
 0x219   : > { %v2344_v6 = vmul.f32 %v2223_v0, %v1408_v48  ;;  %v4319_v44 = vpop.f32.mrb[52].mxu1 }
 0x21a   : > { %v4320_v62 = vpop.f32.mrb[53].mxu1  ;;  %v2248_v35 = vpop.permute.xlu1 %2247 }
 0x21b   : > { %v4321_v38 = vadd.f32 %v4320_v62, %v4319_v44  ;;  %v4322_v4 = vpop.f32.mrb[54].mxu1  ;;  %v2371_v5 = vpack.c.bf16 %v2344_v6, %v2343_v45 }
 0x21c   : > { %v4323_v32 = vpop.f32.mrb[55].mxu1 }
 0x21d   : > { %v1413_v36 = vadd.f32 %v4321_v38, %v6359_v11  ;;  %v4324_v40 = vadd.f32 %v4323_v32, %v4322_v4  ;;  %4505 = vmatprep.mubr.bf16.mxu0 %v2371_v5  ;;  %v2263_v38 = vpop.permute.xlu0 %2262 }
 0x21e   : > { %v2258_v62 = vpop.permute.xlu1 %2257 }
 0x21f   : > { %v1416_v7 = vadd.f32 %v4324_v40, %v6363_v55  ;;  %v2345_v27 = vmul.f32 %v2228_v3, %v1413_v36 }
 0x221   : > { %v2346_v25 = vmul.f32 %v2233_v47, %v1416_v7  ;;  %v4325_v15 = vpop.f32.mrb[56].mxu1 }
 0x222   : > { %v4326_v1 = vpop.f32.mrb[57].mxu1 }
 0x223   : > { %v4327_v26 = vadd.f32 %v4326_v1, %v4325_v15  ;;  %v4328_v52 = vpop.f32.mrb[58].mxu1  ;;  %v2372_v12 = vpack.c.bf16 %v2346_v25, %v2345_v27  ;;  %v2268_v25 = vpop.permute.xlu1 %2267 }
 0x224   : > { %v4329_v22 = vpop.f32.mrb[59].mxu1  ;;  %v2273_v15 = vpop.permute.xlu0 %2272 }
 0x225   : > { %v1421_v30 = vadd.f32 %v4327_v26, %v6367_v23  ;;  %v4330_v34 = vadd.f32 %v4329_v22, %v4328_v52  ;;  %4506 = vmatmul.mubr.bf16.gmra.mrb[40].mxu0 %v2372_v12 }
 0x227   : > { %v1424_v11 = vadd.f32 %v4330_v34, %v6370_v31  ;;  %v2347_v42 = vmul.f32 %v2238_v2, %v1421_v30 }
 0x229   : > { %v2348_v55 = vmul.f32 %v2243_v39, %v1424_v11  ;;  %v4331_v13 = vpop.f32.mrb[60].mxu1  ;;  %v2278_v39 = vpop.permute.xlu1 %2277 }
 0x22a   : > { %v4332_v21 = vpop.f32.mrb[61].mxu1 }
 0x22b   : > { %v4333_v20 = vadd.f32 %v4332_v21, %v4331_v13  ;;  %v4334_v19 = vpop.f32.mrb[62].mxu1  ;;  %v2373_v54 = vpack.c.bf16 %v2348_v55, %v2347_v42  ;;  %v2283_v42 = vpop.permute.xlu0 %2282 }
 0x22c   : > { %v4335_v29 = vpop.f32.mrb[63].mxu1 }
 0x22d   : > { %v1429_v50 = vadd.f32 %v4333_v20, %v6373_v58  ;;  %v4336_v14 = vadd.f32 %v4335_v29, %v4334_v19  ;;  %4509 = vmatprep.mubr.bf16.mxu0 %v2373_v54 }
 0x22f   : > { %v1432_v23 = vadd.f32 %v4336_v14, %v6376_v33  ;;  %v2349_v10 = vmul.f32 %v2248_v35, %v1429_v50  ;;  %v2293_v35 = vpop.permute.xlu0 %2292 }
 0x231   : > { %v2350_v31 = vmul.f32 %v2253_v41, %v1432_v23  ;;  %v4337_v59 = vpop.f32.mrb[64].mxu1  ;;  %v2288_v23 = vpop.permute.xlu1 %2287 }
 0x232   : > { %v4338_v18 = vpop.f32.mrb[65].mxu1 }
 0x233   : > { %v4339_v48 = vadd.f32 %v4338_v18, %v4337_v59  ;;  %v4340_v61 = vpop.f32.mrb[66].mxu1  ;;  %v2374_v0 = vpack.c.bf16 %v2350_v31, %v2349_v10 }
 0x234   : > { %v4341_v45 = vpop.f32.mrb[67].mxu1 }
 0x235   : > { %v1437_v6 = vadd.f32 %v4339_v48, %v6311_v8  ;;  %v4342_v44 = vadd.f32 %v4341_v45, %v4340_v61  ;;  %4510 = vmatmul.mubr.bf16.gmra.mrb[44].mxu0 %v2374_v0 }
 0x237   : > { %v1440_v58 = vadd.f32 %v4342_v44, %v6313_v46  ;;  %v2351_v4 = vmul.f32 %v2258_v62, %v1437_v6  ;;  %v2298_v6 = vpop.permute.xlu1 %2297  ;;  %v2303_v44 = vpop.permute.xlu0 %2302 }
 0x239   : > { %v2352_v33 = vmul.f32 %v2263_v38, %v1440_v58  ;;  %v4343_v5 = vpop.f32.mrb[68].mxu1 }
 0x23a   : > { %v4344_v32 = vpop.f32.mrb[69].mxu1 }
 0x23b   : > { %v4345_v36 = vadd.f32 %v4344_v32, %v4343_v5  ;;  %v4346_v40 = vpop.f32.mrb[70].mxu1  ;;  %v2375_v7 = vpack.c.bf16 %v2352_v33, %v2351_v4 }
 0x23c   : > { %v4347_v3 = vpop.f32.mrb[71].mxu1 }
 0x23d   : > { %v1445_v47 = vadd.f32 %v4345_v36, %v6319_v43  ;;  %v4348_v27 = vadd.f32 %v4347_v3, %v4346_v40  ;;  %4513 = vmatprep.mubr.bf16.mxu0 %v2375_v7  ;;  %v2308_v7 = vpop.permute.xlu1 %2307  ;;  %v2313_v3 = vpop.permute.xlu0 %2312 }
 0x23f   : > { %v1448_v8 = vadd.f32 %v4348_v27, %v6321_v51  ;;  %v2353_v1 = vmul.f32 %v2268_v25, %v1445_v47 }
 0x241   : > { %v2354_v46 = vmul.f32 %v2273_v15, %v1448_v8  ;;  %v4349_v26 = vpop.f32.mrb[72].mxu1 }
 0x242   : > { %v4350_v52 = vpop.f32.mrb[73].mxu1 }
 0x243   : > { %v4351_v12 = vadd.f32 %v4350_v52, %v4349_v26  ;;  %v4352_v22 = vpop.f32.mrb[74].mxu1  ;;  %v2376_v30 = vpack.c.bf16 %v2354_v46, %v2353_v1 }
 0x244   : > { %v4353_v34 = vpop.f32.mrb[75].mxu1 }
 0x245   : > { %v1453_v11 = vadd.f32 %v4351_v12, %v6327_v9  ;;  %v4354_v2 = vadd.f32 %v4353_v34, %v4352_v22  ;;  %4514 = vmatmul.mubr.bf16.gmra.mrb[48].mxu0 %v2376_v30  ;;  %v2318_v12 = vpop.permute.xlu1 %2317  ;;  %v2323_v22 = vpop.permute.xlu0 %2322 }
 0x247   : > { %v1456_v43 = vadd.f32 %v4354_v2, %v6329_v63  ;;  %v2355_v55 = vmul.f32 %v2278_v39, %v1453_v11 }
 0x249   : > { %v2356_v51 = vmul.f32 %v2283_v42, %v1456_v43  ;;  %v4355_v13 = vpop.f32.mrb[76].mxu1 }
 0x24a   : > { %v4356_v21 = vpop.f32.mrb[77].mxu1 }
 0x24b   : > { %v4357_v20 = vadd.f32 %v4356_v21, %v4355_v13  ;;  %v4358_v19 = vpop.f32.mrb[78].mxu1  ;;  %v2377_v54 = vpack.c.bf16 %v2356_v51, %v2355_v55  ;;  %v2328_v13 = vpop.permute.xlu1 %2327 }
 0x24c   : > { %v4359_v29 = vpop.f32.mrb[79].mxu1  ;;  %v2333_v21 = vpop.permute.xlu0 %2332 }
 0x24d   : > { %v1461_v50 = vadd.f32 %v4357_v20, %v6335_v56  ;;  %v4360_v14 = vadd.f32 %v4359_v29, %v4358_v19  ;;  %4517 = vmatprep.mubr.bf16.mxu0 %v2377_v54  ;;  %v3000_v54 = vlaneseq }
 0x24f   : > { %v1464_v9 = vadd.f32 %v4360_v14, %v6337_v37  ;;  %v2357_v41 = vmul.f32 %v2288_v23, %v1461_v50  ;;  %v3001_v29 = vand.u32 127, %v3000_v54  ;;  %v6410_v50 = vld [vmem:[%s6954_s5] ss:$0 sm:$0xff] }
 0x251   : > { %v2358_v63 = vmul.f32 %v2293_v35, %v1464_v9  ;;  %v4361_v10 = vpop.f32.mrb[80].mxu1  ;;  %vm3002_vm2 = vcmp.lt.s32.totalorder %v3001_v29, 32 }
 0x252   : > { %v4362_v31 = vpop.f32.mrb[81].mxu1 }
 0x253   : > { %v4363_v59 = vadd.f32 %v4362_v31, %v4361_v10  ;;  %v4364_v18 = vpop.f32.mrb[82].mxu1  ;;  %v2378_v48 = vpack.c.bf16 %v2358_v63, %v2357_v41 }
 0x254   : > { %v4365_v61 = vpop.f32.mrb[83].mxu1 }
 0x255   : > { %v1469_v0 = vadd.f32 %v4363_v59, %v6339_v53  ;;  %v4366_v45 = vadd.f32 %v4365_v61, %v4364_v18  ;;  %4518 = vmatmul.mubr.bf16.gmra.mrb[52].mxu0 %v2378_v48 }
 0x257   : > { %v1472_v56 = vadd.f32 %v4366_v45, %v6341_v28  ;;  %v2359_v58 = vmul.f32 %v2298_v6, %v1469_v0 }
 0x259   : > { %v2360_v37 = vmul.f32 %v2303_v44, %v1472_v56  ;;  %v4367_v62 = vpop.f32.mrb[84].mxu1 }
 0x25a   : > { %v4368_v38 = vpop.f32.mrb[85].mxu1 }
 0x25b   : > { %v4369_v4 = vadd.f32 %v4368_v38, %v4367_v62  ;;  %v4370_v33 = vpop.f32.mrb[86].mxu1  ;;  %v2379_v5 = vpack.c.bf16 %v2360_v37, %v2359_v58 }
 0x25c   : > { %v4371_v32 = vpop.f32.mrb[87].mxu1 }
 0x25d   : > { %v1477_v36 = vadd.f32 %v4369_v4, %v6345_v16  ;;  %v4372_v40 = vadd.f32 %v4371_v32, %v4370_v33  ;;  %4521 = vmatprep.mubr.bf16.mxu0 %v2379_v5 }
 0x25f   : > { %v1480_v53 = vadd.f32 %v4372_v40, %v6349_v24  ;;  %v2361_v47 = vmul.f32 %v2308_v7, %v1477_v36 }
 0x261   : > { %v2362_v28 = vmul.f32 %v2313_v3, %v1480_v53  ;;  %v4373_v27 = vpop.f32.mrb[88].mxu1 }
 0x262   : > { %v4374_v8 = vpop.f32.mrb[89].mxu1 }
 0x263   : > { %v4375_v25 = vadd.f32 %v4374_v8, %v4373_v27  ;;  %v4376_v15 = vpop.f32.mrb[90].mxu1  ;;  %v2380_v1 = vpack.c.bf16 %v2362_v28, %v2361_v47 }
 0x264   : > { %v4377_v46 = vpop.f32.mrb[91].mxu1 }
 0x265   : > { %v1485_v26 = vadd.f32 %v4375_v25, %v6353_v17  ;;  %v4378_v52 = vadd.f32 %v4377_v46, %v4376_v15  ;;  %4522 = vmatmul.mubr.bf16.gmra.mrb[56].mxu0 %v2380_v1 }
 0x267   : > { %v1488_v16 = vadd.f32 %v4378_v52, %v6357_v57  ;;  %v2363_v30 = vmul.f32 %v2318_v12, %v1485_v26 }
 0x269   : > { %v2364_v24 = vmul.f32 %v2323_v22, %v1488_v16  ;;  %v4379_v34 = vpop.f32.mrb[92].mxu1 }
 0x26a   : > { %v4380_v11 = vpop.f32.mrb[93].mxu1 }
 0x26b   : > { %v4381_v2 = vadd.f32 %v4380_v11, %v4379_v34  ;;  %v4382_v43 = vpop.f32.mrb[94].mxu1  ;;  %v2381_v39 = vpack.c.bf16 %v2364_v24, %v2363_v30 }
 0x26c   : > { %v4383_v42 = vpop.f32.mrb[95].mxu1 }
 0x26d   : > { %v1493_v55 = vadd.f32 %v4381_v2, %v6361_v60  ;;  %v4384_v51 = vadd.f32 %v4383_v42, %v4382_v43  ;;  %4525 = vmatprep.mubr.bf16.mxu0 %v2381_v39  ;;  %v7065_v60 = vmov 0.0  }
 0x26e   : > { %v6413_v9 = vsel %vm3002_vm2, 1.0, %v7065_v60 }
 0x26f   : > { %v1496_v17 = vadd.f32 %v4384_v51, %v6365_v49  ;;  %v2365_v20 = vmul.f32 %v2328_v13, %v1493_v55 }
 0x271   : > { %v2366_v57 = vmul.f32 %v2333_v21, %v1496_v17 }
 0x273   : > { %v2382_v19 = vpack.c.bf16 %v2366_v57, %v2365_v20 }
 0x275   : > { %4526 = vmatmul.mubr.bf16.gmra.mrb[60].mxu0 %v2382_v19 }
 0x2d8   : > { %v4499_v14 = vpop.f32.mrb[32].mxu0 }
 0x2d9   : > { %v6416_v49 = vadd.f32 %v4499_v14, %v6410_v50  ;;  %v2834_v23 = vpop.f32.mrb[33].mxu0 }
 0x2da   : > { %v6419_v35 = vadd.f32 %v6410_v50, %v2834_v23  ;;  %v4500_v41 = vpop.f32.mrb[34].mxu0 }
 0x2db   : > { %v2837_v63 = vpop.f32.mrb[35].mxu0  ;;  %v3007_v10 = vmul.f32 %v6413_v9, %v6416_v49  ;;  %v6424_v31 = vadd.f32 %v4500_v41, %v6410_v50 }
 0x2dc   : > { %v6427_v59 = vadd.f32 %v6410_v50, %v2837_v63  ;;  %v3005_v18 = vmul.f32 %v6413_v9, %v6419_v35 }
 0x2dd   : > { %3041 = vadd.xlane.f32.xlu0 %v3007_v10  ;;  %v3008_v61 = vmul.f32 %v6413_v9, %v6424_v31 }
 0x2de   : > { %3037 = vadd.xlane.f32.xlu1 %v3005_v18  ;;  %v3006_v48 = vmul.f32 %v6413_v9, %v6427_v59 }
 0x2e1   : > { %3039 = vadd.xlane.f32.xlu0 %v3006_v48 }
 0x2e2   : > { %3043 = vadd.xlane.f32.xlu1 %v3008_v61 }
 0x2e8   : > { %v4503_v0 = vpop.f32.mrb[36].mxu0 }
 0x2e9   : > { %v6436_v45 = vadd.f32 %v4503_v0, %v6410_v50  ;;  %v2850_v56 = vpop.f32.mrb[37].mxu0 }
 0x2ea   : > { %v4504_v6 = vpop.f32.mrb[38].mxu0  ;;  %v6439_v44 = vadd.f32 %v6410_v50, %v2850_v56 }
 0x2eb   : > { %v6442_v58 = vadd.f32 %v4504_v6, %v6410_v50  ;;  %v2853_v37 = vpop.f32.mrb[39].mxu0  ;;  %v3011_v62 = vmul.f32 %v6413_v9, %v6436_v45 }
 0x2ec   : > { %v6447_v38 = vadd.f32 %v6410_v50, %v2853_v37  ;;  %v3009_v33 = vmul.f32 %v6413_v9, %v6439_v44 }
 0x2ed   : > { %3049 = vadd.xlane.f32.xlu0 %v3011_v62  ;;  %v3012_v4 = vmul.f32 %v6413_v9, %v6442_v58 }
 0x2ee   : > { %v3010_v5 = vmul.f32 %v6413_v9, %v6447_v38 }
 0x2ef   : > { %3051 = vadd.xlane.f32.xlu1 %v3012_v4 }
 0x2f1   : > { %3045 = vadd.xlane.f32.xlu0 %v3009_v33 }
 0x2f3   : > { %3047 = vadd.xlane.f32.xlu1 %v3010_v5 }
 0x2f8   : > { %v4507_v32 = vpop.f32.mrb[40].mxu0 }
 0x2f9   : > { %v6456_v36 = vadd.f32 %v4507_v32, %v6410_v50  ;;  %v2866_v40 = vpop.f32.mrb[41].mxu0 }
 0x2fa   : > { %v4508_v53 = vpop.f32.mrb[42].mxu0  ;;  %v6459_v7 = vadd.f32 %v6410_v50, %v2866_v40 }
 0x2fb   : > { %v6462_v3 = vadd.f32 %v4508_v53, %v6410_v50  ;;  %v2869_v47 = vpop.f32.mrb[43].mxu0  ;;  %v3015_v28 = vmul.f32 %v6413_v9, %v6456_v36 }
 0x2fc   : > { %v6467_v27 = vadd.f32 %v6410_v50, %v2869_v47  ;;  %v3013_v25 = vmul.f32 %v6413_v9, %v6459_v7 }
 0x2fd   : > { %3057 = vadd.xlane.f32.xlu0 %v3015_v28  ;;  %v3016_v8 = vmul.f32 %v6413_v9, %v6462_v3 }
 0x2fe   : > { %v3014_v15 = vmul.f32 %v6413_v9, %v6467_v27 }
 0x2ff   : > { %3059 = vadd.xlane.f32.xlu1 %v3016_v8 }
 0x301   : > { %3053 = vadd.xlane.f32.xlu0 %v3013_v25 }
 0x303   : > { %3055 = vadd.xlane.f32.xlu1 %v3014_v15 }
 0x308   : > { %v4511_v1 = vpop.f32.mrb[44].mxu0 }
 0x309   : > { %v6476_v46 = vadd.f32 %v4511_v1, %v6410_v50  ;;  %v2882_v26 = vpop.f32.mrb[45].mxu0 }
 0x30a   : > { %v4512_v52 = vpop.f32.mrb[46].mxu0  ;;  %v6479_v16 = vadd.f32 %v6410_v50, %v2882_v26 }
 0x30b   : > { %v6482_v12 = vadd.f32 %v4512_v52, %v6410_v50  ;;  %v2885_v22 = vpop.f32.mrb[47].mxu0  ;;  %v3019_v30 = vmul.f32 %v6413_v9, %v6476_v46 }
 0x30c   : > { %v6487_v24 = vadd.f32 %v6410_v50, %v2885_v22  ;;  %v3017_v11 = vmul.f32 %v6413_v9, %v6479_v16 }
 0x30d   : > { %3065 = vadd.xlane.f32.xlu0 %v3019_v30  ;;  %v3020_v34 = vmul.f32 %v6413_v9, %v6482_v12 }
 0x30e   : > { %v3018_v2 = vmul.f32 %v6413_v9, %v6487_v24 }
 0x30f   : > { %3067 = vadd.xlane.f32.xlu1 %v3020_v34 }
 0x311   : > { %3061 = vadd.xlane.f32.xlu0 %v3017_v11 }
 0x313   : > { %3063 = vadd.xlane.f32.xlu1 %v3018_v2 }
 0x318   : > { %v4515_v43 = vpop.f32.mrb[48].mxu0 }
 0x319   : > { %v6496_v39 = vadd.f32 %v4515_v43, %v6410_v50  ;;  %v2898_v42 = vpop.f32.mrb[49].mxu0 }
 0x31a   : > { %v4516_v55 = vpop.f32.mrb[50].mxu0  ;;  %v6499_v51 = vadd.f32 %v6410_v50, %v2898_v42 }
 0x31b   : > { %v6502_v17 = vadd.f32 %v4516_v55, %v6410_v50  ;;  %v2901_v13 = vpop.f32.mrb[51].mxu0  ;;  %v3023_v21 = vmul.f32 %v6413_v9, %v6496_v39 }
 0x31c   : > { %v6507_v20 = vadd.f32 %v6410_v50, %v2901_v13  ;;  %v3021_v19 = vmul.f32 %v6413_v9, %v6499_v51 }
 0x31d   : > { %3073 = vadd.xlane.f32.xlu0 %v3023_v21  ;;  %v3024_v57 = vmul.f32 %v6413_v9, %v6502_v17 }
 0x31e   : > { %v3022_v54 = vmul.f32 %v6413_v9, %v6507_v20 }
 0x31f   : > { %3075 = vadd.xlane.f32.xlu1 %v3024_v57 }
 0x321   : > { %3069 = vadd.xlane.f32.xlu0 %v3021_v19 }
 0x323   : > { %3071 = vadd.xlane.f32.xlu1 %v3022_v54 }
 0x328   : > { %v4519_v29 = vpop.f32.mrb[52].mxu0 }
 0x329   : > { %v6516_v14 = vadd.f32 %v4519_v29, %v6410_v50  ;;  %v2914_v60 = vpop.f32.mrb[53].mxu0 }
 0x32a   : > { %v4520_v23 = vpop.f32.mrb[54].mxu0  ;;  %v6519_v41 = vadd.f32 %v6410_v50, %v2914_v60 }
 0x32b   : > { %v6522_v63 = vadd.f32 %v4520_v23, %v6410_v50  ;;  %v2917_v10 = vpop.f32.mrb[55].mxu0  ;;  %v3027_v18 = vmul.f32 %v6413_v9, %v6516_v14 }
 0x32c   : > { %v6527_v48 = vadd.f32 %v6410_v50, %v2917_v10  ;;  %v3025_v0 = vmul.f32 %v6413_v9, %v6519_v41 }
 0x32d   : > { %3081 = vadd.xlane.f32.xlu0 %v3027_v18  ;;  %v3028_v61 = vmul.f32 %v6413_v9, %v6522_v63 }
 0x32e   : > { %v3026_v56 = vmul.f32 %v6413_v9, %v6527_v48 }
 0x32f   : > { %3083 = vadd.xlane.f32.xlu1 %v3028_v61 }
 0x331   : > { %3077 = vadd.xlane.f32.xlu0 %v3025_v0 }
 0x333   : > { %3079 = vadd.xlane.f32.xlu1 %v3026_v56 }
 0x338   : > { %v4523_v6 = vpop.f32.mrb[56].mxu0 }
 0x339   : > { %v6536_v37 = vadd.f32 %v4523_v6, %v6410_v50  ;;  %v2930_v62 = vpop.f32.mrb[57].mxu0 }
 0x33a   : > { %v4524_v4 = vpop.f32.mrb[58].mxu0  ;;  %v6539_v33 = vadd.f32 %v6410_v50, %v2930_v62 }
 0x33b   : > { %v6542_v5 = vadd.f32 %v4524_v4, %v6410_v50  ;;  %v2933_v32 = vpop.f32.mrb[59].mxu0  ;;  %v3031_v40 = vmul.f32 %v6413_v9, %v6536_v37 }
 0x33c   : > { %v6547_v53 = vadd.f32 %v6410_v50, %v2933_v32  ;;  %v3029_v28 = vmul.f32 %v6413_v9, %v6539_v33 }
 0x33d   : > { %3089 = vadd.xlane.f32.xlu0 %v3031_v40  ;;  %v3032_v47 = vmul.f32 %v6413_v9, %v6542_v5 }
 0x33e   : > { %v3030_v8 = vmul.f32 %v6413_v9, %v6547_v53 }
 0x33f   : > { %3091 = vadd.xlane.f32.xlu1 %v3032_v47 }
 0x341   : > { %3085 = vadd.xlane.f32.xlu0 %v3029_v28 }
 0x343   : > { %3087 = vadd.xlane.f32.xlu1 %v3030_v8 }
 0x348   : > { %v4527_v25 = vpop.f32.mrb[60].mxu0 }
 0x349   : > { %v2946_v15 = vpop.f32.mrb[61].mxu0  ;;  %v6559_v22 = vadd.f32 %v4527_v25, %v6410_v50 }
 0x34a   : > { %v6556_v1 = vadd.f32 %v6410_v50, %v2946_v15  ;;  %v4528_v26 = vpop.f32.mrb[62].mxu0 }
 0x34b   : > { %v2949_v52 = vpop.f32.mrb[63].mxu0  ;;  %v6567_v11 = vadd.f32 %v4528_v26, %v6410_v50  ;;  %v3035_v43 = vmul.f32 %v6413_v9, %v6559_v22 }
 0x34c   : > { %v6562_v30 = vadd.f32 %v6410_v50, %v2949_v52  ;;  %v3033_v34 = vmul.f32 %v6413_v9, %v6556_v1 }
 0x34d   : > { %v3036_v42 = vmul.f32 %v6413_v9, %v6567_v11 }
 0x34e   : > { %v3034_v2 = vmul.f32 %v6413_v9, %v6562_v30  ;;  %3093 = vadd.xlane.f32.xlu0 %v3033_v34 }
 0x350   : > { %3095 = vadd.xlane.f32.xlu1 %v3034_v2 }
 0x352   : > { %3097 = vadd.xlane.f32.xlu0 %v3035_v43 }
 0x354   : > { %3099 = vadd.xlane.f32.xlu1 %v3036_v42 }
 0x36a   : > { %v3042_v55 = vpop.xlane.xlu0 %3041 }
 0x36b   : > { %v3103_v13 = vmul.f32 0.03125, %v3042_v55  ;;  %v3038_v21 = vpop.xlane.xlu1 %3037 }
 0x36c   : > { %v3101_v57 = vmul.f32 0.03125, %v3038_v21 }
 0x36d   : > { %v3135_v50 = vsub.f32 %v6416_v49, %v3103_v13 }
 0x36e   : > { %v3133_v19 = vsub.f32 %v6419_v35, %v3101_v57  ;;  %v3040_v54 = vpop.xlane.xlu0 %3039 }
 0x36f   : > { %v3102_v29 = vmul.f32 0.03125, %v3040_v54  ;;  %v3044_v60 = vpop.xlane.xlu1 %3043  ;;  %v6578_v23 = vmul.f32 %v6413_v9, %v3135_v50 }
 0x370   : > { %v3104_v10 = vmul.f32 0.03125, %v3044_v60  ;;  %v6583_v61 = vmul.f32 %v6413_v9, %v3133_v19 }
 0x371   : > { %v3199_v18 = vmul.f32 %v6578_v23, %v6578_v23  ;;  %v3134_v0 = vsub.f32 %v6427_v59, %v3102_v29 }
 0x372   : > { %v3136_v56 = vsub.f32 %v6424_v31, %v3104_v10  ;;  %v3197_v35 = vmul.f32 %v6583_v61, %v6583_v61 }
 0x373   : > { %3233 = vadd.xlane.f32.xlu0 %v3199_v18  ;;  %v6593_v6 = vmul.f32 %v6413_v9, %v3134_v0 }
 0x374   : > { %v6588_v49 = vmul.f32 %v6413_v9, %v3136_v56 }
 0x375   : > { %v3198_v59 = vmul.f32 %v6593_v6, %v6593_v6 }
 0x376   : > { %v3200_v62 = vmul.f32 %v6588_v49, %v6588_v49 }
 0x377   : > { %3229 = vadd.xlane.f32.xlu0 %v3197_v35 }
 0x378   : > { %3235 = vadd.xlane.f32.xlu1 %v3200_v62 }
 0x37a   : > { %v3050_v4 = vpop.xlane.xlu0 %3049 }
 0x37b   : > { %v3107_v31 = vmul.f32 0.03125, %v3050_v4 }
 0x37c   : > { %v3052_v32 = vpop.xlane.xlu1 %3051  ;;  %3231 = vadd.xlane.f32.xlu1 %v3198_v59 }
 0x37d   : > { %v3139_v40 = vsub.f32 %v6436_v45, %v3107_v31  ;;  %v3108_v47 = vmul.f32 0.03125, %v3052_v32 }
 0x37e   : > { %v3046_v28 = vpop.xlane.xlu0 %3045 }
 0x37f   : > { %v3140_v8 = vsub.f32 %v6442_v58, %v3108_v47  ;;  %v3105_v25 = vmul.f32 0.03125, %v3046_v28  ;;  %v6602_v15 = vmul.f32 %v6413_v9, %v3139_v40 }
 0x380   : > { %v3048_v26 = vpop.xlane.xlu1 %3047 }
 0x381   : > { %v6605_v52 = vmul.f32 %v6413_v9, %v3140_v8  ;;  %v3137_v34 = vsub.f32 %v6439_v44, %v3105_v25  ;;  %v3106_v2 = vmul.f32 0.03125, %v3048_v26  ;;  %v3203_v43 = vmul.f32 %v6602_v15, %v6602_v15 }
 0x383   : > { %v3138_v45 = vsub.f32 %v6447_v38, %v3106_v2  ;;  %3241 = vadd.xlane.f32.xlu0 %v3203_v43  ;;  %v3204_v58 = vmul.f32 %v6605_v52, %v6605_v52  ;;  %v6614_v42 = vmul.f32 %v6413_v9, %v3137_v34 }
 0x385   : > { %v6617_v55 = vmul.f32 %v6413_v9, %v3138_v45  ;;  %3243 = vadd.xlane.f32.xlu1 %v3204_v58  ;;  %v3201_v44 = vmul.f32 %v6614_v42, %v6614_v42 }
 0x387   : > { %3237 = vadd.xlane.f32.xlu0 %v3201_v44  ;;  %v3202_v13 = vmul.f32 %v6617_v55, %v6617_v55 }
 0x389   : > { %3239 = vadd.xlane.f32.xlu1 %v3202_v13 }
 0x38a   : > { %v3058_v38 = vpop.xlane.xlu0 %3057 }
 0x38b   : > { %v3111_v21 = vmul.f32 0.03125, %v3058_v38 }
 0x38c   : > { %v3060_v57 = vpop.xlane.xlu1 %3059 }
 0x38d   : > { %v3143_v50 = vsub.f32 %v6456_v36, %v3111_v21  ;;  %v3112_v19 = vmul.f32 0.03125, %v3060_v57 }
 0x38e   : > { %v3054_v54 = vpop.xlane.xlu0 %3053 }
 0x38f   : > { %v6625_v29 = vmul.f32 %v6413_v9, %v3143_v50  ;;  %v3144_v60 = vsub.f32 %v6462_v3, %v3112_v19  ;;  %v3109_v10 = vmul.f32 0.03125, %v3054_v54 }
 0x390   : > { %v3056_v18 = vpop.xlane.xlu1 %3055 }
 0x391   : > { %v6629_v0 = vmul.f32 %v6413_v9, %v3144_v60  ;;  %v3141_v56 = vsub.f32 %v6459_v7, %v3109_v10  ;;  %v3110_v35 = vmul.f32 0.03125, %v3056_v18  ;;  %v3207_v62 = vmul.f32 %v6625_v29, %v6625_v29 }
 0x393   : > { %v6635_v36 = vmul.f32 %v6413_v9, %v3141_v56  ;;  %v3142_v4 = vsub.f32 %v6467_v27, %v3110_v35  ;;  %3249 = vadd.xlane.f32.xlu0 %v3207_v62  ;;  %v3208_v3 = vmul.f32 %v6629_v0, %v6629_v0 }
 0x395   : > { %v6641_v59 = vmul.f32 %v6413_v9, %v3142_v4  ;;  %3251 = vadd.xlane.f32.xlu1 %v3208_v3  ;;  %v3205_v7 = vmul.f32 %v6635_v36, %v6635_v36 }
 0x397   : > { %3245 = vadd.xlane.f32.xlu0 %v3205_v7  ;;  %v3206_v31 = vmul.f32 %v6641_v59, %v6641_v59 }
 0x399   : > { %3247 = vadd.xlane.f32.xlu1 %v3206_v31 }
 0x39a   : > { %v3066_v32 = vpop.xlane.xlu0 %3065 }
 0x39b   : > { %v3115_v40 = vmul.f32 0.03125, %v3066_v32 }
 0x39c   : > { %v3068_v47 = vpop.xlane.xlu1 %3067 }
 0x39d   : > { %v3147_v27 = vsub.f32 %v6476_v46, %v3115_v40  ;;  %v3116_v28 = vmul.f32 0.03125, %v3068_v47 }
 0x39e   : > { %v3062_v8 = vpop.xlane.xlu0 %3061 }
 0x39f   : > { %v6649_v25 = vmul.f32 %v6413_v9, %v3147_v27  ;;  %v3148_v26 = vsub.f32 %v6482_v12, %v3116_v28  ;;  %v3113_v34 = vmul.f32 0.03125, %v3062_v8 }
 0x3a0   : > { %v3064_v2 = vpop.xlane.xlu1 %3063 }
 0x3a1   : > { %v6653_v43 = vmul.f32 %v6413_v9, %v3148_v26  ;;  %v3145_v45 = vsub.f32 %v6479_v16, %v3113_v34  ;;  %v3114_v58 = vmul.f32 0.03125, %v3064_v2  ;;  %v3211_v44 = vmul.f32 %v6649_v25, %v6649_v25 }
 0x3a3   : > { %v6659_v46 = vmul.f32 %v6413_v9, %v3145_v45  ;;  %v3146_v13 = vsub.f32 %v6487_v24, %v3114_v58  ;;  %3257 = vadd.xlane.f32.xlu0 %v3211_v44  ;;  %v3212_v12 = vmul.f32 %v6653_v43, %v6653_v43 }
 0x3a5   : > { %v6665_v38 = vmul.f32 %v6413_v9, %v3146_v13  ;;  %3259 = vadd.xlane.f32.xlu1 %v3212_v12  ;;  %v3209_v16 = vmul.f32 %v6659_v46, %v6659_v46 }
 0x3a7   : > { %3253 = vadd.xlane.f32.xlu0 %v3209_v16  ;;  %v3210_v21 = vmul.f32 %v6665_v38, %v6665_v38 }
 0x3a9   : > { %3255 = vadd.xlane.f32.xlu1 %v3210_v21 }
 0x3aa   : > { %v3074_v57 = vpop.xlane.xlu0 %3073 }
 0x3ab   : > { %v3119_v50 = vmul.f32 0.03125, %v3074_v57 }
 0x3ac   : > { %v3076_v19 = vpop.xlane.xlu1 %3075 }
 0x3ad   : > { %v3151_v24 = vsub.f32 %v6496_v39, %v3119_v50  ;;  %v3120_v54 = vmul.f32 0.03125, %v3076_v19 }
 0x3ae   : > { %v3070_v60 = vpop.xlane.xlu0 %3069 }
 0x3af   : > { %v6673_v10 = vmul.f32 %v6413_v9, %v3151_v24  ;;  %v3152_v18 = vsub.f32 %v6502_v17, %v3120_v54  ;;  %v3117_v56 = vmul.f32 0.03125, %v3070_v60 }
 0x3b0   : > { %v3072_v35 = vpop.xlane.xlu1 %3071 }
 0x3b1   : > { %v6677_v62 = vmul.f32 %v6413_v9, %v3152_v18  ;;  %v3149_v4 = vsub.f32 %v6499_v51, %v3117_v56  ;;  %v3118_v3 = vmul.f32 0.03125, %v3072_v35  ;;  %v3215_v7 = vmul.f32 %v6673_v10, %v6673_v10 }
 0x3b3   : > { %v6683_v39 = vmul.f32 %v6413_v9, %v3149_v4  ;;  %v3150_v31 = vsub.f32 %v6507_v20, %v3118_v3  ;;  %3265 = vadd.xlane.f32.xlu0 %v3215_v7  ;;  %v3216_v17 = vmul.f32 %v6677_v62, %v6677_v62 }
 0x3b5   : > { %v6689_v32 = vmul.f32 %v6413_v9, %v3150_v31  ;;  %3267 = vadd.xlane.f32.xlu1 %v3216_v17  ;;  %v3213_v51 = vmul.f32 %v6683_v39, %v6683_v39 }
 0x3b7   : > { %3261 = vadd.xlane.f32.xlu0 %v3213_v51  ;;  %v3214_v40 = vmul.f32 %v6689_v32, %v6689_v32 }
 0x3b9   : > { %3263 = vadd.xlane.f32.xlu1 %v3214_v40 }
 0x3ba   : > { %v3082_v47 = vpop.xlane.xlu0 %3081 }
 0x3bb   : > { %v3123_v27 = vmul.f32 0.03125, %v3082_v47 }
 0x3bc   : > { %v3084_v28 = vpop.xlane.xlu1 %3083 }
 0x3bd   : > { %v3155_v20 = vsub.f32 %v6516_v14, %v3123_v27  ;;  %v3124_v8 = vmul.f32 0.03125, %v3084_v28 }
 0x3be   : > { %v3078_v26 = vpop.xlane.xlu0 %3077 }
 0x3bf   : > { %v6697_v34 = vmul.f32 %v6413_v9, %v3155_v20  ;;  %v3156_v2 = vsub.f32 %v6522_v63, %v3124_v8  ;;  %v3121_v45 = vmul.f32 0.03125, %v3078_v26 }
 0x3c0   : > { %v3080_v58 = vpop.xlane.xlu1 %3079 }
 0x3c1   : > { %v6701_v44 = vmul.f32 %v6413_v9, %v3156_v2  ;;  %v3153_v13 = vsub.f32 %v6519_v41, %v3121_v45  ;;  %v3122_v12 = vmul.f32 0.03125, %v3080_v58  ;;  %v3219_v16 = vmul.f32 %v6697_v34, %v6697_v34 }
 0x3c3   : > { %v6707_v14 = vmul.f32 %v6413_v9, %v3153_v13  ;;  %v3154_v21 = vsub.f32 %v6527_v48, %v3122_v12  ;;  %3273 = vadd.xlane.f32.xlu0 %v3219_v16  ;;  %v3220_v63 = vmul.f32 %v6701_v44, %v6701_v44 }
 0x3c5   : > { %v6713_v57 = vmul.f32 %v6413_v9, %v3154_v21  ;;  %3275 = vadd.xlane.f32.xlu1 %v3220_v63  ;;  %v3217_v41 = vmul.f32 %v6707_v14, %v6707_v14 }
 0x3c7   : > { %3269 = vadd.xlane.f32.xlu0 %v3217_v41  ;;  %v3218_v50 = vmul.f32 %v6713_v57, %v6713_v57 }
 0x3c9   : > { %3271 = vadd.xlane.f32.xlu1 %v3218_v50 }
 0x3ca   : > { %v3090_v19 = vpop.xlane.xlu0 %3089 }
 0x3cb   : > { %v3127_v24 = vmul.f32 0.03125, %v3090_v19 }
 0x3cc   : > { %v3092_v54 = vpop.xlane.xlu1 %3091 }
 0x3cd   : > { %v3159_v48 = vsub.f32 %v6536_v37, %v3127_v24  ;;  %v3128_v60 = vmul.f32 0.03125, %v3092_v54 }
 0x3ce   : > { %v3086_v18 = vpop.xlane.xlu0 %3085 }
 0x3cf   : > { %v6721_v56 = vmul.f32 %v6413_v9, %v3159_v48  ;;  %v3160_v35 = vsub.f32 %v6542_v5, %v3128_v60  ;;  %v3125_v4 = vmul.f32 0.03125, %v3086_v18 }
 0x3d0   : > { %v3088_v3 = vpop.xlane.xlu1 %3087 }
 0x3d1   : > { %v6725_v7 = vmul.f32 %v6413_v9, %v3160_v35  ;;  %v3157_v31 = vsub.f32 %v6539_v33, %v3125_v4  ;;  %v3126_v17 = vmul.f32 0.03125, %v3088_v3  ;;  %v3223_v51 = vmul.f32 %v6721_v56, %v6721_v56 }
 0x3d3   : > { %v6731_v37 = vmul.f32 %v6413_v9, %v3157_v31  ;;  %v3158_v40 = vsub.f32 %v6547_v53, %v3126_v17  ;;  %3281 = vadd.xlane.f32.xlu0 %v3223_v51  ;;  %v3224_v5 = vmul.f32 %v6725_v7, %v6725_v7 }
 0x3d5   : > { %v6737_v47 = vmul.f32 %v6413_v9, %v3158_v40  ;;  %3283 = vadd.xlane.f32.xlu1 %v3224_v5  ;;  %v3221_v33 = vmul.f32 %v6731_v37, %v6731_v37  ;;  %v6770_v5 = vld [vmem:[%s6955_s6] ss:$0 sm:$0xff] }
 0x3d7   : > { %3277 = vadd.xlane.f32.xlu0 %v3221_v33  ;;  %v3222_v27 = vmul.f32 %v6737_v47, %v6737_v47 }
 0x3d9   : > { %3279 = vadd.xlane.f32.xlu1 %v3222_v27 }
 0x3db   : > { %v3094_v28 = vpop.xlane.xlu0 %3093 }
 0x3dc   : > { %v3129_v20 = vmul.f32 0.03125, %v3094_v28 }
 0x3dd   : > { %v3096_v8 = vpop.xlane.xlu1 %3095 }
 0x3de   : > { %v3161_v53 = vsub.f32 %v6556_v1, %v3129_v20  ;;  %v3130_v26 = vmul.f32 0.03125, %v3096_v8 }
 0x3df   : > { %v3098_v2 = vpop.xlane.xlu0 %3097 }
 0x3e0   : > { %v6745_v45 = vmul.f32 %v6413_v9, %v3161_v53  ;;  %v3162_v58 = vsub.f32 %v6562_v30, %v3130_v26  ;;  %v3131_v13 = vmul.f32 0.03125, %v3098_v2  ;;  %v6777_v26 = vld [vmem:[%s7066_s25] ss:$0 sm:$0xff] }
 0x3e1   : > { %v3100_v12 = vpop.xlane.xlu1 %3099 }
 0x3e2   : > { %v6749_v16 = vmul.f32 %v6413_v9, %v3162_v58  ;;  %v3163_v21 = vsub.f32 %v6559_v22, %v3131_v13  ;;  %v3132_v63 = vmul.f32 0.03125, %v3100_v12  ;;  %v3225_v41 = vmul.f32 %v6745_v45, %v6745_v45 }
 0x3e4   : > { %v6755_v1 = vmul.f32 %v6413_v9, %v3163_v21  ;;  %v3164_v50 = vsub.f32 %v6567_v11, %v3132_v63  ;;  %3285 = vadd.xlane.f32.xlu0 %v3225_v41  ;;  %v3226_v30 = vmul.f32 %v6749_v16, %v6749_v16 }
 0x3e6   : > { %v6761_v19 = vmul.f32 %v6413_v9, %v3164_v50  ;;  %3287 = vadd.xlane.f32.xlu1 %v3226_v30  ;;  %v3227_v22 = vmul.f32 %v6755_v1, %v6755_v1 }
 0x3e8   : > { %3289 = vadd.xlane.f32.xlu0 %v3227_v22  ;;  %v3228_v24 = vmul.f32 %v6761_v19, %v6761_v19 }
 0x3ea   : > { %3291 = vadd.xlane.f32.xlu1 %v3228_v24 }
 0x400   : > { %v3234_v54 = vpop.xlane.xlu0 %3233 }
 0x401   : > { %v3295_v48 = vmul.f32 0.03125, %v3234_v54 }
 0x403   : > { %v3327_v60 = vadd.f32 1e-05, %v3295_v48 }
 0x404   : > { %v3230_v11 = vpop.xlane.xlu0 %3229 }
 0x405   : > { %4857 = vrsqrt.f32 %v3327_v60  ;;  %v3293_v18 = vmul.f32 0.03125, %v3230_v11  ;;  %v3236_v35 = vpop.xlane.xlu1 %3235 }
 0x406   : > { %v3296_v4 = vmul.f32 0.03125, %v3236_v35 }
 0x407   : > { %v3325_v3 = vadd.f32 1e-05, %v3293_v18 }
 0x408   : > { %v3328_v9 = vadd.f32 1e-05, %v3296_v4 }
 0x409   : > { %4859 = vrsqrt.f32 %v3325_v3  ;;  %v3232_v31 = vpop.xlane.xlu1 %3231 }
 0x40a   : > { %4861 = vrsqrt.f32 %v3328_v9  ;;  %v3294_v17 = vmul.f32 0.03125, %v3232_v31 }
 0x40c   : > { %v3326_v51 = vadd.f32 1e-05, %v3294_v17 }
 0x40e   : > { %4863 = vrsqrt.f32 %v3326_v51 }
 0x40f   : > { %v4858_v40 = vpop.eup %4857 }
 0x410   : > { %v3391_v33 = vmul.f32 %v4858_v40, %v6578_v23  ;;  %v3242_v27 = vpop.xlane.xlu0 %3241 }
 0x411   : > { %v3299_v28 = vmul.f32 0.03125, %v3242_v27 }
 0x412   : > { %v3430_v20 = vmul.f32 %v6770_v5, %v3391_v33  ;;  %v3244_v8 = vpop.xlane.xlu1 %3243 }
 0x413   : > { %v4860_v53 = vpop.eup %4859  ;;  %v3331_v2 = vadd.f32 1e-05, %v3299_v28  ;;  %v3300_v58 = vmul.f32 0.03125, %v3244_v8 }
 0x414   : > { %v4862_v13 = vpop.eup %4861  ;;  %v3389_v12 = vmul.f32 %v4860_v53, %v6583_v61  ;;  %v3238_v21 = vpop.xlane.xlu0 %3237  ;;  %v3469_v50 = vadd.f32 %v6777_v26, %v3430_v20 }
 0x415   : > { %v3392_v63 = vmul.f32 %v4862_v13, %v6588_v49  ;;  %4865 = vrsqrt.f32 %v3331_v2  ;;  %v3332_v23 = vadd.f32 1e-05, %v3300_v58  ;;  %v3297_v41 = vmul.f32 0.03125, %v3238_v21 }
 0x416   : > { %v3428_v30 = vmul.f32 %v6770_v5, %v3389_v12  ;;  %v3240_v22 = vpop.xlane.xlu1 %3239  ;;  %v3501_v18 = vmax.f32 %v3469_v50, 0.0 }
 0x417   : > { %v3431_v24 = vmul.f32 %v6770_v5, %v3392_v63  ;;  %4867 = vrsqrt.f32 %v3332_v23  ;;  %v3329_v54 = vadd.f32 1e-05, %v3297_v41  ;;  %v3298_v48 = vmul.f32 0.03125, %v3240_v22 }
 0x418   : > { %v4864_v60 = vpop.eup %4863  ;;  %v3467_v35 = vadd.f32 %v6777_v26, %v3428_v30 }
 0x419   : > { %v3470_v61 = vadd.f32 %v6777_v26, %v3431_v24  ;;  %v3390_v11 = vmul.f32 %v4864_v60, %v6593_v6  ;;  %4869 = vrsqrt.f32 %v3329_v54  ;;  %v3330_v49 = vadd.f32 1e-05, %v3298_v48 }
 0x41a   : > { %v3499_v51 = vmax.f32 %v3467_v35, 0.0 }
 0x41b   : > { %v3502_v4 = vmax.f32 %v3470_v61, 0.0  ;;  %v3429_v3 = vmul.f32 %v6770_v5, %v3390_v11  ;;  %4871 = vrsqrt.f32 %v3330_v49 }
 0x41d   : > { %v4074_v9 = vpack.c.bf16 %v3502_v4, %v3501_v18  ;;  %v3468_v31 = vadd.f32 %v6777_v26, %v3429_v3 }
 0x41f   : > { %v4866_v17 = vpop.eup %4865  ;;  %4146 = vst [vmem:[%s6791_s26 + $0x8] sm:$0xff] %v4074_v9   ;;  %v3500_v6 = vmax.f32 %v3468_v31, 0.0 }
 0x420   : > { %v3395_v40 = vmul.f32 %v4866_v17, %v6602_v15  ;;  %v3250_v33 = vpop.xlane.xlu0 %3249 }
 0x421   : > { %v4868_v27 = vpop.eup %4867  ;;  %v4069_v28 = vpack.c.bf16 %v3500_v6, %v3499_v51  ;;  %v3303_v20 = vmul.f32 0.03125, %v3250_v33 }
 0x422   : > { %v3434_v8 = vmul.f32 %v6770_v5, %v3395_v40  ;;  %v3396_v53 = vmul.f32 %v4868_v27, %v6605_v52  ;;  %v3252_v2 = vpop.xlane.xlu1 %3251 }
 0x423   : > { %v4870_v58 = vpop.eup %4869  ;;  %4070 = vst [vmem:[%s6791_s26] sm:$0xff] %v4069_v28   ;;  %v3335_v13 = vadd.f32 1e-05, %v3303_v20  ;;  %v3304_v12 = vmul.f32 0.03125, %v3252_v2 }
 0x424   : > { %v3473_v21 = vadd.f32 %v6777_v26, %v3434_v8  ;;  %v3435_v63 = vmul.f32 %v6770_v5, %v3396_v53  ;;  %v3393_v23 = vmul.f32 %v4870_v58, %v6614_v42  ;;  %v3246_v15 = vpop.xlane.xlu0 %3245 }
 0x425   : > { %v4872_v41 = vpop.eup %4871  ;;  %4873 = vrsqrt.f32 %v3335_v13  ;;  %v3336_v50 = vadd.f32 1e-05, %v3304_v12  ;;  %v3301_v30 = vmul.f32 0.03125, %v3246_v15 }
 0x426   : > { %v3474_v22 = vadd.f32 %v6777_v26, %v3435_v63  ;;  %v3432_v52 = vmul.f32 %v6770_v5, %v3393_v23  ;;  %v3394_v24 = vmul.f32 %v4872_v41, %v6617_v55  ;;  %v3248_v54 = vpop.xlane.xlu1 %3247  ;;  %v3505_v61 = vmax.f32 %v3473_v21, 0.0 }
 0x427   : > { %4875 = vrsqrt.f32 %v3336_v50  ;;  %v3333_v48 = vadd.f32 1e-05, %v3301_v30  ;;  %v3302_v60 = vmul.f32 0.03125, %v3248_v54 }
 0x428   : > { %v3506_v11 = vmax.f32 %v3474_v22, 0.0  ;;  %v3471_v42 = vadd.f32 %v6777_v26, %v3432_v52  ;;  %v3433_v49 = vmul.f32 %v6770_v5, %v3394_v24 }
 0x429   : > { %4877 = vrsqrt.f32 %v3333_v48  ;;  %v3334_v18 = vadd.f32 1e-05, %v3302_v60 }
 0x42a   : > { %v4084_v35 = vpack.c.bf16 %v3506_v11, %v3505_v61  ;;  %v3472_v4 = vadd.f32 %v6777_v26, %v3433_v49  ;;  %v3503_v3 = vmax.f32 %v3471_v42, 0.0 }
 0x42b   : > { %4879 = vrsqrt.f32 %v3334_v18 }
 0x42c   : > { %4148 = vst [vmem:[%s6791_s26 + $0x18] sm:$0xff] %v4084_v35   ;;  %v3504_v55 = vmax.f32 %v3472_v4, 0.0 }
 0x42e   : > { %v4079_v9 = vpack.c.bf16 %v3504_v55, %v3503_v3 }
 0x42f   : > { %v4874_v31 = vpop.eup %4873 }
 0x430   : > { %4147 = vst [vmem:[%s6791_s26 + $0x10] sm:$0xff] %v4079_v9   ;;  %v3399_v17 = vmul.f32 %v4874_v31, %v6625_v29  ;;  %v3258_v51 = vpop.xlane.xlu0 %3257 }
 0x431   : > { %v4876_v6 = vpop.eup %4875  ;;  %v3307_v40 = vmul.f32 0.03125, %v3258_v51 }
 0x432   : > { %v3438_v33 = vmul.f32 %v6770_v5, %v3399_v17  ;;  %v3400_v27 = vmul.f32 %v4876_v6, %v6629_v0  ;;  %v3260_v28 = vpop.xlane.xlu1 %3259 }
 0x433   : > { %v4878_v20 = vpop.eup %4877  ;;  %v3339_v8 = vadd.f32 1e-05, %v3307_v40  ;;  %v3308_v53 = vmul.f32 0.03125, %v3260_v28 }
 0x434   : > { %v3477_v2 = vadd.f32 %v6777_v26, %v3438_v33  ;;  %v3439_v58 = vmul.f32 %v6770_v5, %v3400_v27  ;;  %v3397_v13 = vmul.f32 %v4878_v20, %v6635_v36  ;;  %v3254_v12 = vpop.xlane.xlu0 %3253 }
 0x435   : > { %v4880_v21 = vpop.eup %4879  ;;  %4881 = vrsqrt.f32 %v3339_v8  ;;  %v3340_v29 = vadd.f32 1e-05, %v3308_v53  ;;  %v3305_v63 = vmul.f32 0.03125, %v3254_v12 }
 0x436   : > { %v3478_v23 = vadd.f32 %v6777_v26, %v3439_v58  ;;  %v3436_v0 = vmul.f32 %v6770_v5, %v3397_v13  ;;  %v3398_v15 = vmul.f32 %v4880_v21, %v6641_v59  ;;  %v3256_v41 = vpop.xlane.xlu1 %3255  ;;  %v3509_v22 = vmax.f32 %v3477_v2, 0.0 }
 0x437   : > { %4883 = vrsqrt.f32 %v3340_v29  ;;  %v3337_v50 = vadd.f32 1e-05, %v3305_v63  ;;  %v3306_v30 = vmul.f32 0.03125, %v3256_v41 }
 0x438   : > { %v3510_v52 = vmax.f32 %v3478_v23, 0.0  ;;  %v3475_v36 = vadd.f32 %v6777_v26, %v3436_v0  ;;  %v3437_v24 = vmul.f32 %v6770_v5, %v3398_v15 }
 0x439   : > { %4885 = vrsqrt.f32 %v3337_v50  ;;  %v3338_v54 = vadd.f32 1e-05, %v3306_v30 }
 0x43a   : > { %v4094_v48 = vpack.c.bf16 %v3510_v52, %v3509_v22  ;;  %v3476_v60 = vadd.f32 %v6777_v26, %v3437_v24  ;;  %v3507_v61 = vmax.f32 %v3475_v36, 0.0 }
 0x43b   : > { %4887 = vrsqrt.f32 %v3338_v54 }
 0x43c   : > { %4150 = vst [vmem:[%s6791_s26 + $0x28] sm:$0xff] %v4094_v48   ;;  %v3508_v59 = vmax.f32 %v3476_v60, 0.0 }
 0x43e   : > { %v4089_v11 = vpack.c.bf16 %v3508_v59, %v3507_v61 }
 0x43f   : > { %v4882_v42 = vpop.eup %4881 }
 0x440   : > { %4149 = vst [vmem:[%s6791_s26 + $0x20] sm:$0xff] %v4089_v11   ;;  %v3403_v49 = vmul.f32 %v4882_v42, %v6649_v25  ;;  %v3266_v18 = vpop.xlane.xlu0 %3265 }
 0x441   : > { %v4884_v35 = vpop.eup %4883  ;;  %v3311_v4 = vmul.f32 0.03125, %v3266_v18 }
 0x442   : > { %v3442_v3 = vmul.f32 %v6770_v5, %v3403_v49  ;;  %v3404_v55 = vmul.f32 %v4884_v35, %v6653_v43  ;;  %v3268_v9 = vpop.xlane.xlu1 %3267 }
 0x443   : > { %v4886_v31 = vpop.eup %4885  ;;  %v3343_v17 = vadd.f32 1e-05, %v3311_v4  ;;  %v3312_v51 = vmul.f32 0.03125, %v3268_v9 }
 0x444   : > { %v3481_v6 = vadd.f32 %v6777_v26, %v3442_v3  ;;  %v3443_v40 = vmul.f32 %v6770_v5, %v3404_v55  ;;  %v3401_v33 = vmul.f32 %v4886_v31, %v6659_v46  ;;  %v3262_v27 = vpop.xlane.xlu0 %3261 }
 0x445   : > { %v4888_v28 = vpop.eup %4887  ;;  %4889 = vrsqrt.f32 %v3343_v17  ;;  %v3344_v25 = vadd.f32 1e-05, %v3312_v51  ;;  %v3309_v20 = vmul.f32 0.03125, %v3262_v27 }
 0x446   : > { %v3482_v8 = vadd.f32 %v6777_v26, %v3443_v40  ;;  %v3440_v43 = vmul.f32 %v6770_v5, %v3401_v33  ;;  %v3402_v53 = vmul.f32 %v4888_v28, %v6665_v38  ;;  %v3264_v2 = vpop.xlane.xlu1 %3263  ;;  %v3513_v12 = vmax.f32 %v3481_v6, 0.0 }
 0x447   : > { %4891 = vrsqrt.f32 %v3344_v25  ;;  %v3341_v58 = vadd.f32 1e-05, %v3309_v20  ;;  %v3310_v13 = vmul.f32 0.03125, %v3264_v2 }
 0x448   : > { %v3514_v21 = vmax.f32 %v3482_v8, 0.0  ;;  %v3479_v46 = vadd.f32 %v6777_v26, %v3440_v43  ;;  %v3441_v29 = vmul.f32 %v6770_v5, %v3402_v53 }
 0x449   : > { %4893 = vrsqrt.f32 %v3341_v58  ;;  %v3342_v63 = vadd.f32 1e-05, %v3310_v13 }
 0x44a   : > { %v4104_v23 = vpack.c.bf16 %v3514_v21, %v3513_v12  ;;  %v3480_v0 = vadd.f32 %v6777_v26, %v3441_v29  ;;  %v3511_v15 = vmax.f32 %v3479_v46, 0.0 }
 0x44b   : > { %4895 = vrsqrt.f32 %v3342_v63 }
 0x44c   : > { %4152 = vst [vmem:[%s6791_s26 + $0x38] sm:$0xff] %v4104_v23   ;;  %v3512_v38 = vmax.f32 %v3480_v0, 0.0 }
 0x44e   : > { %v4099_v41 = vpack.c.bf16 %v3512_v38, %v3511_v15 }
 0x44f   : > { %v4890_v50 = vpop.eup %4889 }
 0x450   : > { %4151 = vst [vmem:[%s6791_s26 + $0x30] sm:$0xff] %v4099_v41   ;;  %v3407_v30 = vmul.f32 %v4890_v50, %v6673_v10  ;;  %v3274_v22 = vpop.xlane.xlu0 %3273 }
 0x451   : > { %v4892_v52 = vpop.eup %4891  ;;  %v3315_v36 = vmul.f32 0.03125, %v3274_v22 }
 0x452   : > { %v3446_v24 = vmul.f32 %v6770_v5, %v3407_v30  ;;  %v3408_v54 = vmul.f32 %v4892_v52, %v6677_v62  ;;  %v3276_v48 = vpop.xlane.xlu1 %3275 }
 0x453   : > { %v4894_v60 = vpop.eup %4893  ;;  %v3347_v61 = vadd.f32 1e-05, %v3315_v36  ;;  %v3316_v59 = vmul.f32 0.03125, %v3276_v48 }
 0x454   : > { %v3485_v11 = vadd.f32 %v6777_v26, %v3446_v24  ;;  %v3447_v42 = vmul.f32 %v6770_v5, %v3408_v54  ;;  %v3405_v49 = vmul.f32 %v4894_v60, %v6683_v39  ;;  %v3270_v18 = vpop.xlane.xlu0 %3269 }
 0x455   : > { %v4896_v35 = vpop.eup %4895  ;;  %4897 = vrsqrt.f32 %v3347_v61  ;;  %v3348_v10 = vadd.f32 1e-05, %v3316_v59  ;;  %v3313_v4 = vmul.f32 0.03125, %v3270_v18 }
 0x456   : > { %v3486_v3 = vadd.f32 %v6777_v26, %v3447_v42  ;;  %v3444_v62 = vmul.f32 %v6770_v5, %v3405_v49  ;;  %v3406_v55 = vmul.f32 %v4896_v35, %v6689_v32  ;;  %v3272_v9 = vpop.xlane.xlu1 %3271  ;;  %v3517_v51 = vmax.f32 %v3485_v11, 0.0 }
 0x457   : > { %4899 = vrsqrt.f32 %v3348_v10  ;;  %v3345_v31 = vadd.f32 1e-05, %v3313_v4  ;;  %v3314_v17 = vmul.f32 0.03125, %v3272_v9 }
 0x458   : > { %v3518_v6 = vmax.f32 %v3486_v3, 0.0  ;;  %v3483_v39 = vadd.f32 %v6777_v26, %v3444_v62  ;;  %v3445_v40 = vmul.f32 %v6770_v5, %v3406_v55 }
 0x459   : > { %4901 = vrsqrt.f32 %v3345_v31  ;;  %v3346_v33 = vadd.f32 1e-05, %v3314_v17 }
 0x45a   : > { %v4114_v27 = vpack.c.bf16 %v3518_v6, %v3517_v51  ;;  %v3484_v28 = vadd.f32 %v6777_v26, %v3445_v40  ;;  %v3515_v25 = vmax.f32 %v3483_v39, 0.0 }
 0x45b   : > { %4903 = vrsqrt.f32 %v3346_v33 }
 0x45c   : > { %4154 = vst [vmem:[%s6791_s26 + $0x48] sm:$0xff] %v4114_v27   ;;  %v3516_v32 = vmax.f32 %v3484_v28, 0.0 }
 0x45e   : > { %v4109_v20 = vpack.c.bf16 %v3516_v32, %v3515_v25 }
 0x45f   : > { %v4898_v8 = vpop.eup %4897 }
 0x460   : > { %4153 = vst [vmem:[%s6791_s26 + $0x40] sm:$0xff] %v4109_v20   ;;  %v3411_v43 = vmul.f32 %v4898_v8, %v6697_v34  ;;  %v3282_v53 = vpop.xlane.xlu0 %3281 }
 0x461   : > { %v4900_v2 = vpop.eup %4899  ;;  %v3319_v58 = vmul.f32 0.03125, %v3282_v53 }
 0x462   : > { %v3450_v13 = vmul.f32 %v6770_v5, %v3411_v43  ;;  %v3412_v12 = vmul.f32 %v4900_v2, %v6701_v44  ;;  %v3284_v21 = vpop.xlane.xlu1 %3283 }
 0x463   : > { %v4902_v46 = vpop.eup %4901  ;;  %v3351_v29 = vadd.f32 1e-05, %v3319_v58  ;;  %v3320_v63 = vmul.f32 0.03125, %v3284_v21 }
 0x464   : > { %v3489_v23 = vadd.f32 %v6777_v26, %v3450_v13  ;;  %v3451_v0 = vmul.f32 %v6770_v5, %v3412_v12  ;;  %v3409_v15 = vmul.f32 %v4902_v46, %v6707_v14  ;;  %v3278_v38 = vpop.xlane.xlu0 %3277 }
 0x465   : > { %v4904_v41 = vpop.eup %4903  ;;  %4905 = vrsqrt.f32 %v3351_v29  ;;  %v3352_v34 = vadd.f32 1e-05, %v3320_v63  ;;  %v3317_v50 = vmul.f32 0.03125, %v3278_v38 }
 0x466   : > { %v3490_v30 = vadd.f32 %v6777_v26, %v3451_v0  ;;  %v3448_v44 = vmul.f32 %v6770_v5, %v3409_v15  ;;  %v3410_v22 = vmul.f32 %v4904_v41, %v6713_v57  ;;  %v3280_v52 = vpop.xlane.xlu1 %3279  ;;  %v3521_v54 = vmax.f32 %v3489_v23, 0.0 }
 0x467   : > { %4907 = vrsqrt.f32 %v3352_v34  ;;  %v3349_v36 = vadd.f32 1e-05, %v3317_v50  ;;  %v3318_v24 = vmul.f32 0.03125, %v3280_v52 }
 0x468   : > { %v3522_v48 = vmax.f32 %v3490_v30, 0.0  ;;  %v3487_v14 = vadd.f32 %v6777_v26, %v3448_v44  ;;  %v3449_v60 = vmul.f32 %v6770_v5, %v3410_v22 }
 0x469   : > { %4909 = vrsqrt.f32 %v3349_v36  ;;  %v3350_v61 = vadd.f32 1e-05, %v3318_v24 }
 0x46a   : > { %v4124_v59 = vpack.c.bf16 %v3522_v48, %v3521_v54  ;;  %v3488_v11 = vadd.f32 %v6777_v26, %v3449_v60  ;;  %v3519_v42 = vmax.f32 %v3487_v14, 0.0 }
 0x46b   : > { %4911 = vrsqrt.f32 %v3350_v61 }
 0x46c   : > { %4156 = vst [vmem:[%s6791_s26 + $0x58] sm:$0xff] %v4124_v59   ;;  %v3520_v57 = vmax.f32 %v3488_v11, 0.0 }
 0x46e   : > { %v4119_v49 = vpack.c.bf16 %v3520_v57, %v3519_v42 }
 0x46f   : > { %v4906_v18 = vpop.eup %4905 }
 0x470   : > { %4155 = vst [vmem:[%s6791_s26 + $0x50] sm:$0xff] %v4119_v49   ;;  %v3415_v35 = vmul.f32 %v4906_v18, %v6721_v56 }
 0x471   : > { %v4908_v10 = vpop.eup %4907  ;;  %v3286_v4 = vpop.xlane.xlu0 %3285 }
 0x472   : > { %v3454_v3 = vmul.f32 %v6770_v5, %v3415_v35  ;;  %v3416_v62 = vmul.f32 %v4908_v10, %v6725_v7  ;;  %v3321_v55 = vmul.f32 0.03125, %v3286_v4 }
 0x473   : > { %v4910_v9 = vpop.eup %4909  ;;  %v3288_v31 = vpop.xlane.xlu1 %3287 }
 0x474   : > { %v3493_v17 = vadd.f32 %v6777_v26, %v3454_v3  ;;  %v3455_v51 = vmul.f32 %v6770_v5, %v3416_v62  ;;  %v3413_v6 = vmul.f32 %v4910_v9, %v6731_v37  ;;  %v3353_v39 = vadd.f32 1e-05, %v3321_v55 }
 0x475   : > { %v4912_v40 = vpop.eup %4911  ;;  %v3322_v33 = vmul.f32 0.03125, %v3288_v31  ;;  %v3290_v27 = vpop.xlane.xlu0 %3289 }
 0x476   : > { %v3494_v56 = vadd.f32 %v6777_v26, %v3455_v51  ;;  %v3452_v28 = vmul.f32 %v6770_v5, %v3413_v6  ;;  %v3414_v25 = vmul.f32 %v4912_v40, %v6737_v47  ;;  %v3525_v7 = vmax.f32 %v3493_v17, 0.0 }
 0x477   : > { %4913 = vrsqrt.f32 %v3353_v39  ;;  %v3354_v32 = vadd.f32 1e-05, %v3322_v33  ;;  %v3323_v20 = vmul.f32 0.03125, %v3290_v27  ;;  %v3292_v8 = vpop.xlane.xlu1 %3291 }
 0x478   : > { %v3526_v43 = vmax.f32 %v3494_v56, 0.0  ;;  %v3491_v37 = vadd.f32 %v6777_v26, %v3452_v28  ;;  %v3453_v53 = vmul.f32 %v6770_v5, %v3414_v25  ;;  %v3324_v2 = vmul.f32 0.03125, %v3292_v8 }
 0x479   : > { %4915 = vrsqrt.f32 %v3354_v32  ;;  %v3355_v58 = vadd.f32 1e-05, %v3323_v20 }
 0x47a   : > { %v4134_v13 = vpack.c.bf16 %v3526_v43, %v3525_v7  ;;  %v3492_v12 = vadd.f32 %v6777_v26, %v3453_v53  ;;  %v3356_v21 = vadd.f32 1e-05, %v3324_v2  ;;  %v3523_v47 = vmax.f32 %v3491_v37, 0.0 }
 0x47b   : > { %4917 = vrsqrt.f32 %v3355_v58 }
 0x47c   : > { %4158 = vst [vmem:[%s6791_s26 + $0x68] sm:$0xff] %v4134_v13   ;;  %v3524_v46 = vmax.f32 %v3492_v12, 0.0  ;;  %4919 = vrsqrt.f32 %v3356_v21 }
 0x47e   : > { %v4129_v29 = vpack.c.bf16 %v3524_v46, %v3523_v47 }
 0x480   : > { %4157 = vst [vmem:[%s6791_s26 + $0x60] sm:$0xff] %v4129_v29  }
 0x481   : > { %v4914_v63 = vpop.eup %4913 }
 0x482   : > { %v3417_v23 = vmul.f32 %v4914_v63, %v6745_v45 }
 0x483   : > { %v4916_v0 = vpop.eup %4915 }
 0x484   : > { %v3456_v15 = vmul.f32 %v6770_v5, %v3417_v23  ;;  %v3418_v38 = vmul.f32 %v4916_v0, %v6749_v16 }
 0x485   : > { %v4918_v41 = vpop.eup %4917 }
 0x486   : > { %v4920_v34 = vpop.eup %4919  ;;  %v3495_v50 = vadd.f32 %v6777_v26, %v3456_v15  ;;  %v3457_v30 = vmul.f32 %v6770_v5, %v3418_v38  ;;  %v3419_v44 = vmul.f32 %v4918_v41, %v6755_v1 }
 0x487   : > { %v3420_v22 = vmul.f32 %v4920_v34, %v6761_v19 }
 0x488   : > { %v3496_v45 = vadd.f32 %v6777_v26, %v3457_v30  ;;  %v3458_v52 = vmul.f32 %v6770_v5, %v3419_v44  ;;  %v3527_v16 = vmax.f32 %v3495_v50, 0.0 }
 0x489   : > { %v3459_v36 = vmul.f32 %v6770_v5, %v3420_v22 }
 0x48a   : > { %v3528_v24 = vmax.f32 %v3496_v45, 0.0  ;;  %v3497_v54 = vadd.f32 %v6777_v26, %v3458_v52 }
 0x48b   : > { %v3498_v48 = vadd.f32 %v6777_v26, %v3459_v36 }
 0x48c   : > { %v4139_v1 = vpack.c.bf16 %v3528_v24, %v3527_v16  ;;  %v3529_v14 = vmax.f32 %v3497_v54, 0.0 }
 0x48d   : > { %v3530_v19 = vmax.f32 %v3498_v48, 0.0 }
 0x48e   : > { %4159 = vst [vmem:[%s6791_s26 + $0x70] sm:$0xff] %v4139_v1  }
 0x48f   : > { %v4144_v5 = vpack.c.bf16 %v3530_v19, %v3529_v14 }
 0x491   : > { %4160 = vst [vmem:[%s6791_s26 + $0x78] sm:$0xff] %v4144_v5  }
 0x492   : > { %5078 = shalt.err (!%p5075_p0)
}
 0x493   : > { %s5079_s24 = scalar_lea.hbm %s6897_s0, 2048  ;;  %s5083_s14 = scalar_lea.hbm %s7069_s7, 4096 }
 0x494   : > { %p5080_p7 = scmp.ne.s32.totalorder %s6897_s0, %s5079_s24  ;;  %p5084_p2 = scmp.lt.u32.totalorder %s6897_s0, %s7069_s7 }
 0x495   : > { %p5085_p11 = scmp.lt.u32.totalorder %s5083_s14, %s5079_s24  ;;  %p5087_p6 = scmp.lt.u32.totalorder %s5079_s24, %s6897_s0 }
 0x496   : > { %p5081_p5 = pnand %p5080_p7, %p7070_p13 }
 0x497   : > { %p5086_p4 = por %p5085_p11, %p5084_p2 }
 0x498   : > { %p5082_p9 = pneg %p5081_p5 }
 0x499   : > { %p5088_p10 = por %p5087_p6, %p5086_p4 }
 0x49b   : > { %p5089_p1 = pnand %p5088_p10, %p5082_p9 }
 0x49d   : > { %5092 = shalt.err (!%p5089_p1)
}
 0x49e   : > { %s5177_s8 = smov 64   ;;  %s5178_s25 = smov 4  }
 0x49f   : > { %4593 = dma.vmem_to_hbm [thread:$0]  (%p7070_p13), %s6899_s27, 2048, %s6897_s0, %s3692_s10, %s5177_s8, %s5177_s8, %s5178_s25  }
 0x4a0 PF: > { %s7071_s26 = sld [smem:[#allocation20_spill]]  ;;  %s7072_s18 = sld [smem:[#allocation23_spill]] }
 0x4a1   : > { %s7073_s21 = sld [smem:[#allocation22_spill]] }
 0x4a6   : > { %s3720_s1 = sand.u32 1, %s7071_s26   ;;  %p7074_p8 = scmp.ne.s32.totalorder %s7072_s18, 0 }
 0x4a7   : > { %p7075_p12 = scmp.ge.s32.totalorder %s7073_s21, 2  ;;  %s3721_s19 = scalar_lea.sflag [#allocation6], %s3720_s1 }
 0x4a9   : > { %p4613_p3 = pnand %p7075_p12, %p7074_p8 }
 0x4ab   : > { %5138 = dma.done.wait (!%p4613_p3), %s3721_s19, 2048  }
 0x4ac   : > { %5140 = vsyncadd (!%p4613_p3), %s3721_s19, 4294965248  ;;  %s26_s10 = sadd.s32 1, %s7073_s21   ;;  %s7076_s23 = sld [smem:[#allocation26_spill]] }
 0x4ad   : > { %p23_p0 = scmp.ge.s32.totalorder %s26_s10, 4   ;;  %s7077_s22 = sld [smem:[#allocation24_spill]] }
 0x4ae   : > { %s7078_s27 = smov %s5147_s28  ;;  %s7079_s28 = smov %s5151_s29 }
 0x4af   : > { %s7081_s30 = smov %s5159_s9  ;;  %25 = sbr.rel (!%p23_p0) target bundleno = 13 (0xd), region = 129 }
 0x4b2   : > { %s7080_s29 = smov %s7076_s23 }
 0x4b3   : > { %s7082_s9 = smov %s7077_s22 }
 0x4b6   :  { %3726 = vsyncpa [#allocation5], 1 }
 0x4b7   :  { %3728 = vsyncpa [#allocation5 + $0x1], 1 }
 0x4b8   :  { %3729 = vsyncpa [#allocation8], 1 }
 0x4b9   :  { %3730 = vsyncpa [#allocation12], 1 }
 0x4ba   :  { %3731 = vsyncpa [#allocation6], 1 }
 0x4bb   :  { %3733 = vsyncpa [#allocation6 + $0x1], 1 }

</bundles_post_ra>
